<compile_context>
chip_gen: v7x
topology: tpu7x:2x2x1
jax: 0.10.0
libtpu: 0.0.40
codegen_flags: <defaults>
</compile_context>

<pallas_src>
import functools

import jax
import jax.numpy as jnp
from jax.experimental import pallas as pl
from jax.experimental.pallas import tpu as pltpu

FP = 128                      # lane-dense padded feature width
_MiB = 1024 * 1024


# ------------------------------------------------------------------ kernels ---

def _gnn_fused_kernel(x0_ref, ah_ref, w_ref, b_ref, out_ref, pen_ref, act_ref,
                      *, num_layers, hidden_dim):
    """Whole GNN forward in one pallas_call; grid = (num_layers,).

    x0_ref : [Np, FP]    bf16  padded input features (resident)
    ah_ref : [Np, Np]    bf16  GCN-normalized adjacency (resident)
    w_ref  : [2*FP, FP]  bf16  this layer's fused [W1; W2] (layer dim squeezed)
    b_ref  : [1, FP]     f32   this layer's fused bias b1 + b2
    out_ref: [Np, FP]    f32   final-layer output (resident, written once)
    pen_ref: [Np, FP]    f32   penultimate activations (resident, written once)
    act_ref: [Np, FP]    bf16  activation carry across layers (VMEM scratch)
    """
    l = pl.program_id(0)

    @pl.when(l == 0)
    def _load_input():
        act_ref[...] = x0_ref[...]

    act = act_ref[...]                                           # bf16 [Np, FP]
    # Aggregation branch: agg = A_hat @ act (bf16 MXU, f32 accumulate).
    agg = jnp.dot(ah_ref[...], act, preferred_element_type=jnp.float32)
    # Identity + GCN projections as two 128-deep dots (no concat temp).
    h = jnp.dot(act, w_ref[:FP, :], preferred_element_type=jnp.float32)
    h = h + jnp.dot(agg.astype(jnp.bfloat16), w_ref[FP:, :],
                    preferred_element_type=jnp.float32)
    h = h + b_ref[...]
    # NOTE: padded lanes of h are exactly zero (zero-padded W columns and bias), so
    # InstanceNorm sums over the FP lanes equal sums over the true hidden_dim columns.
    # Padded lanes of `act` may become non-zero after normalization, but they only ever
    # multiply zero-padded W rows, so they never contaminate real columns.

    @pl.when(l < num_layers - 1)
    def _hidden_epilogue():
        f = float(hidden_dim)
        y = jnp.maximum(h, 0.0)                                  # ReLU
        mean = jnp.sum(y, axis=1, keepdims=True) * (1.0 / f)
        var = (jnp.sum(y * y, axis=1, keepdims=True) - f * mean * mean) / (f - 1.0)
        std = jnp.sqrt(jnp.maximum(var, 0.0)) + 1e-5             # torch: std(dim=1)+eps
        y = (y - mean) * pl.reciprocal(std, approx=True)
        act_ref[...] = y.astype(act_ref.dtype)

        @pl.when(l == num_layers - 2)
        def _save_penultimate():
            pen_ref[...] = y

    @pl.when(l == num_layers - 1)
    def _final_layer():
        out_ref[...] = h


def _gnn_layer_kernel(x_ref, ah_ref, w_ref, b_ref, o_ref, *, tm, true_f, relu_norm):
    """Large-graph fallback: one GNN layer, grid = (row tiles,).

    x is fully VMEM-resident, A_hat is streamed as a [tm, Np] row stripe and the
    reduction (k) axis is collapsed, so there is no accumulator scratch.
    """
    i = pl.program_id(0)
    row0 = pl.multiple_of(i * tm, 8)
    xr = x_ref[pl.ds(row0, tm), :]                               # identity-branch rows
    agg = jnp.dot(ah_ref[...], x_ref[...], preferred_element_type=jnp.float32)
    h = jnp.dot(xr, w_ref[:FP, :], preferred_element_type=jnp.float32)
    h = h + jnp.dot(agg.astype(jnp.bfloat16), w_ref[FP:, :],
                    preferred_element_type=jnp.float32)
    h = h + b_ref[...]
    if relu_norm:
        f = float(true_f)
        h = jnp.maximum(h, 0.0)
        mean = jnp.sum(h, axis=1, keepdims=True) * (1.0 / f)
        var = (jnp.sum(h * h, axis=1, keepdims=True) - f * mean * mean) / (f - 1.0)
        std = jnp.sqrt(jnp.maximum(var, 0.0)) + 1e-5
        h = (h - mean) * pl.reciprocal(std, approx=True)
    o_ref[...] = h.astype(o_ref.dtype)


# ----------------------------------------------------------------- wrappers ---

def gnn_forward_fused(x_pad, a_hat_pad, w_all, b_all, *, num_layers, hidden_dim):
    np_, fp = x_pad.shape
    kernel = functools.partial(_gnn_fused_kernel, num_layers=num_layers,
                               hidden_dim=hidden_dim)
    est = (2 * np_ * np_ * 2 + 2 * np_ * fp * 2       # A_hat + x0 (double-buffer budget)
           + 2 * (2 * fp * fp * 2 + fp * 4)           # per-layer W + bias
           + 2 * np_ * fp * 4                         # out + penultimate (f32)
           + np_ * fp * 2)                            # activation scratch (bf16)
    out, pen = pl.pallas_call(
        kernel,
        out_shape=(jax.ShapeDtypeStruct((np_, fp), jnp.float32),
                   jax.ShapeDtypeStruct((np_, fp), jnp.float32)),
        grid_spec=pltpu.PrefetchScalarGridSpec(
            num_scalar_prefetch=0,
            grid=(num_layers,),
            in_specs=[
                pl.BlockSpec((np_, fp), lambda l: (0, 0)),              # x0 (resident)
                pl.BlockSpec((np_, np_), lambda l: (0, 0)),             # A_hat (resident)
                pl.BlockSpec((None, 2 * fp, fp), lambda l: (l, 0, 0)),  # per-layer [W1;W2]
                pl.BlockSpec((None, 1, fp), lambda l: (l, 0, 0)),       # per-layer bias
            ],
            out_specs=(pl.BlockSpec((np_, fp), lambda l: (0, 0)),
                       pl.BlockSpec((np_, fp), lambda l: (0, 0))),
            scratch_shapes=[pltpu.VMEM((np_, fp), jnp.bfloat16)],
        ),
        compiler_params=pltpu.CompilerParams(
            dimension_semantics=("arbitrary",),      # sequential layer loop (carry)
            vmem_limit_bytes=int(min(max(2 * est, 8 * _MiB), 40 * _MiB)),
        ),
    )(x_pad, a_hat_pad, w_all, b_all)
    return out, pen


def _pick_row_tile(np_):
    cands = [t for t in (512, 384, 256, 192, 128) if t <= np_ and np_ % t == 0]
    # Prefer an even number of row tiles (v7x has 2 TensorCores), then the largest tile.
    return min(cands, key=lambda t: ((np_ // t) % 2, -t))


def gnn_layer_tiled(x_pad, a_hat_pad, w_cat, b_cat, *, true_f, relu_norm, out_dtype):
    np_, fp = x_pad.shape
    tm = _pick_row_tile(np_)
    out_bytes = 4 if out_dtype == jnp.float32 else 2
    est = (2 * np_ * fp * 2 + 2 * tm * np_ * 2
           + 2 * (2 * fp * fp * 2 + fp * 4) + 2 * tm * fp * out_bytes)
    kernel = functools.partial(_gnn_layer_kernel, tm=tm, true_f=true_f,
                               relu_norm=relu_norm)
    return pl.pallas_call(
        kernel,
        out_shape=jax.ShapeDtypeStruct((np_, fp), out_dtype),
        grid_spec=pltpu.PrefetchScalarGridSpec(
            num_scalar_prefetch=0,
            grid=(np_ // tm,),
            in_specs=[
                pl.BlockSpec((np_, fp), lambda i: (0, 0)),       # x fully resident
                pl.BlockSpec((tm, np_), lambda i: (i, 0)),       # A_hat row stripe
                pl.BlockSpec((2 * fp, fp), lambda i: (0, 0)),    # fused [W1; W2]
                pl.BlockSpec((1, fp), lambda i: (0, 0)),         # fused bias
            ],
            out_specs=pl.BlockSpec((tm, fp), lambda i: (i, 0)),
        ),
        compiler_params=pltpu.CompilerParams(
            dimension_semantics=("parallel",),
            vmem_limit_bytes=int(min(max(2 * est, 8 * _MiB), 40 * _MiB)),
        ),
    )(x_pad, a_hat_pad, w_cat, b_cat)


# --------------------------------------------------------------------- glue ---

def _round_up(v, m):
    return (v + m - 1) // m * m


def compute_a_hat(edge_index, num_nodes):
    """Dense GCN-normalized adjacency: D^{-1/2}(A + I)D^{-1/2}."""
    src = edge_index[0]
    dst = edge_index[1]
    a = jnp.zeros((num_nodes, num_nodes), jnp.float32)
    a = a.at[dst, src].add(1.0)
    a = a + jnp.eye(num_nodes, dtype=jnp.float32)
    deg = jnp.sum(a, axis=1)
    dinv = jax.lax.rsqrt(deg)
    return a * dinv[:, None] * dinv[None, :]


def _fuse_and_pad(lin_p, gcn_p, fp=FP):
    """Concat [W1; W2] along the contraction axis, zero-pad to the 128-lane layout."""
    (w1, b1), (w2, b2) = lin_p, gcn_p
    din, dout = w1.shape
    w_cat = jnp.zeros((2 * fp, fp), jnp.float32)
    w_cat = w_cat.at[:din, :dout].set(w1)
    w_cat = w_cat.at[fp:fp + din, :dout].set(w2)
    b_cat = jnp.zeros((1, fp), jnp.float32).at[:, :dout].set(b1 + b2)
    return w_cat.astype(jnp.bfloat16), b_cat


def _stack_layer_params(params, num_layers):
    layers = [(params["conv1_1"], params["conv1_2"])]
    for i in range(num_layers - 2):
        layers.append((params["convs1"][i], params["convs2"][i]))
    layers.append((params["conv_out1"], params["conv_out2"]))
    ws, bs = [], []
    for lin_p, gcn_p in layers:
        w, b = _fuse_and_pad(lin_p, gcn_p)
        ws.append(w)
        bs.append(b)
    return jnp.stack(ws, 0), jnp.stack(bs, 0)      # [L,2FP,FP] bf16, [L,1,FP] f32


def init_gnn_params(key, num_layers, input_dim, hidden_dim, output_dim):
    """Deterministic synthetic parameters. Weights stored as [in, out]."""
    params = {}

    def lin(k, din, dout):
        kw, kb = jax.random.split(k)
        w = jax.random.normal(kw, (din, dout), jnp.float32) * (1.0 / jnp.sqrt(din))
        b = jax.random.normal(kb, (1, dout), jnp.float32) * 0.01
        return w, b

    keys = jax.random.split(key, 2 * num_layers)
    ki = iter(keys)
    params["conv1_1"] = lin(next(ki), input_dim, hidden_dim)
    params["conv1_2"] = lin(next(ki), input_dim, hidden_dim)
    params["convs1"] = []
    params["convs2"] = []
    for _ in range(num_layers - 2):
        params["convs1"].append(lin(next(ki), hidden_dim, hidden_dim))
        params["convs2"].append(lin(next(ki), hidden_dim, hidden_dim))
    params["conv_out1"] = lin(next(ki), hidden_dim, output_dim)
    params["conv_out2"] = lin(next(ki), hidden_dim, output_dim)
    return params


def gnn_f_forward(params, x, edge_index, num_layers, *, force_tiled=False):
    """Returns (out, penultimate) exactly like the PyTorch module."""
    n, din = x.shape
    hidden = params["conv1_1"][0].shape[1]
    out_dim = params["conv_out1"][0].shape[1]
    np_ = _round_up(n, 128)

    a_hat = compute_a_hat(edge_index, n)
    a_hat_pad = (jnp.zeros((np_, np_), jnp.float32).at[:n, :n].set(a_hat)
                 .astype(jnp.bfloat16))
    x_pad = (jnp.zeros((np_, FP), jnp.float32).at[:n, :din].set(x)
             .astype(jnp.bfloat16))
    w_all, b_all = _stack_layer_params(params, num_layers)

    # Residency estimate for the whole-network fused path (double-buffer budget).
    resident = (2 * np_ * np_ * 2 + 3 * np_ * FP * 2 + 2 * np_ * FP * 4
                + 4 * 2 * FP * FP * 2)
    if (not force_tiled) and resident <= 36 * _MiB:
        out_pad, pen_pad = gnn_forward_fused(x_pad, a_hat_pad, w_all, b_all,
                                             num_layers=num_layers, hidden_dim=hidden)
        return out_pad[:n, :out_dim], pen_pad[:n, :hidden]

    # Fallback: per-layer tiled kernels (x resident, A_hat row-striped, no k axis).
    act = x_pad
    pen = None
    h = None
    for l in range(num_layers):
        last = (l == num_layers - 1)
        h = gnn_layer_tiled(act, a_hat_pad, w_all[l], b_all[l],
                            true_f=hidden, relu_norm=not last,
                            out_dtype=jnp.float32 if last else jnp.bfloat16)
        if not last:
            act = h
            if l == num_layers - 2:
                pen = h
    return h[:n, :out_dim], pen[:n, :hidden].astype(jnp.float32)


# --------------------------------------------------------------------- main ---

if __name__ == "__main__":
    num_layers = 3
    num_nodes = 300            # pads to 384 rows / 128 feature lanes
    input_dim = 16
    hidden_dim = 32
    output_dim = 8

    key = jax.random.PRNGKey(0)
    k_param, k_x = jax.random.split(key)

    params = init_gnn_params(k_param, num_layers, input_dim, hidden_dim, output_dim)
    x = jax.random.normal(k_x, (num_nodes, input_dim), jnp.float32)

    # Bidirectional ring graph: edge_index [2, 2*num_nodes]
    src = jnp.arange(num_nodes, dtype=jnp.int32)
    dst = (src + 1) % num_nodes
    edge_index = jnp.stack(
        [jnp.concatenate([src, dst]), jnp.concatenate([dst, src])], axis=0
    )

    fwd_fused = jax.jit(functools.partial(gnn_f_forward, num_layers=num_layers))
    out, penult = fwd_fused(params, x, edge_index)
    jax.block_until_ready((out, penult))

    # Also exercise the large-graph tiled fallback and cross-check the two paths.
    fwd_tiled = jax.jit(functools.partial(gnn_f_forward, num_layers=num_layers,
                                          force_tiled=True))
    out_t, penult_t = fwd_tiled(params, x, edge_index)
    jax.block_until_ready((out_t, penult_t))

    assert out.shape == (num_nodes, output_dim)
    assert penult.shape == (num_nodes, hidden_dim)
    assert bool(jnp.all(jnp.isfinite(out)))
    assert bool(jnp.all(jnp.isfinite(penult)))
    assert float(jnp.max(jnp.abs(out - out_t))) < 0.25
    assert float(jnp.max(jnp.abs(penult - penult_t))) < 0.25
    print("KERNEL_OK")
</pallas_src>

<mosaic_0001>
module attributes {stable_mosaic.version = 11 : i64} {
  func.func @_gnn_fused_kernel(%arg0: i32, %arg1: memref<384x128xbf16, #tpu.memory_space<vmem>>, %arg2: memref<384x384xbf16, #tpu.memory_space<vmem>>, %arg3: memref<1x256x128xbf16, #tpu.memory_space<vmem>>, %arg4: memref<1x1x128xf32, #tpu.memory_space<vmem>>, %arg5: memref<384x128xf32, #tpu.memory_space<vmem>>, %arg6: memref<384x128xf32, #tpu.memory_space<vmem>>, %arg7: memref<384x128xbf16, #tpu.memory_space<vmem>>) attributes {dimension_semantics = [#tpu.dimension_semantics<arbitrary>], iteration_bounds = array<i64: 3>, scalar_prefetch = 0 : i64, scratch_operands = 1 : i64, tpu.core_type = #tpu.core_type<tc>, window_params = [{pipeline_mode = #tpu.pipeline_mode<synchronous>, transform_indices = @transform_0, window_bounds = array<i64: 384, 128>}, {pipeline_mode = #tpu.pipeline_mode<synchronous>, transform_indices = @transform_1, window_bounds = array<i64: 384, 384>}, {transform_indices = @transform_2, window_bounds = array<i64: 1, 256, 128>}, {transform_indices = @transform_3, window_bounds = array<i64: 1, 1, 128>}, {pipeline_mode = #tpu.pipeline_mode<synchronous>, transform_indices = @transform_4, window_bounds = array<i64: 384, 128>}, {pipeline_mode = #tpu.pipeline_mode<synchronous>, transform_indices = @transform_5, window_bounds = array<i64: 384, 128>}]} {
    %c0_i32 = arith.constant 0 : i32
    %0 = arith.cmpi eq, %arg0, %c0_i32 : i32
    %1 = arith.extui %0 : i1 to i32
    %c0_i32_0 = arith.constant 0 : i32
    %2 = arith.cmpi ne, %1, %c0_i32_0 : i32
    scf.if %2 {
      %c0_17 = arith.constant 0 : index
      %c0_18 = arith.constant 0 : index
      %24 = vector.load %arg1[%c0_17, %c0_18] : memref<384x128xbf16, #tpu.memory_space<vmem>>, vector<384x128xbf16>
      %c0_19 = arith.constant 0 : index
      %c0_20 = arith.constant 0 : index
      %25 = vector.load %arg7[%c0_19, %c0_20] : memref<384x128xbf16, #tpu.memory_space<vmem>>, vector<384x128xbf16>
      tpu.vector_store %arg7[%c0_19, %c0_20], %24 {strides = array<i32>} : memref<384x128xbf16, #tpu.memory_space<vmem>>, vector<384x128xbf16>,
    } else {
    }
    %c0 = arith.constant 0 : index
    %c0_1 = arith.constant 0 : index
    %3 = vector.load %arg7[%c0, %c0_1] : memref<384x128xbf16, #tpu.memory_space<vmem>>, vector<384x128xbf16>
    %c0_2 = arith.constant 0 : index
    %c0_3 = arith.constant 0 : index
    %4 = vector.load %arg2[%c0_2, %c0_3] : memref<384x384xbf16, #tpu.memory_space<vmem>>, vector<384x384xbf16>
    %cst = arith.constant dense<0.000000e+00> : vector<384x128xf32>
    %5 = tpu.matmul %4, %3, %cst {dimension_numbers = #tpu.dot_dimension_numbers<[1], [0], [0], [1], [0, 0, 1, 1], [], []>} : vector<384x384xbf16>, vector<384x128xbf16>, vector<384x128xf32> -> vector<384x128xf32>
    %c0_4 = arith.constant 0 : index
    %c0_5 = arith.constant 0 : index
    %c0_6 = arith.constant 0 : index
    %6 = vector.load %arg3[%c0_4, %c0_5, %c0_6] : memref<1x256x128xbf16, #tpu.memory_space<vmem>>, vector<1x128x128xbf16>
    %7 = vector.shape_cast %6 : vector<1x128x128xbf16> to vector<128x128xbf16>
    %cst_7 = arith.constant dense<0.000000e+00> : vector<384x128xf32>
    %8 = tpu.matmul %3, %7, %cst_7 {dimension_numbers = #tpu.dot_dimension_numbers<[1], [0], [0], [1], [0, 0, 1, 1], [], []>} : vector<384x128xbf16>, vector<128x128xbf16>, vector<384x128xf32> -> vector<384x128xf32>
    %9 = arith.truncf %5 : vector<384x128xf32> to vector<384x128xbf16>
    %c0_8 = arith.constant 0 : index
    %c128 = arith.constant 128 : index
    %c0_9 = arith.constant 0 : index
    %10 = vector.load %arg3[%c0_8, %c128, %c0_9] : memref<1x256x128xbf16, #tpu.memory_space<vmem>>, vector<1x128x128xbf16>
    %11 = vector.shape_cast %10 : vector<1x128x128xbf16> to vector<128x128xbf16>
    %cst_10 = arith.constant dense<0.000000e+00> : vector<384x128xf32>
    %12 = tpu.matmul %9, %11, %cst_10 {dimension_numbers = #tpu.dot_dimension_numbers<[1], [0], [0], [1], [0, 0, 1, 1], [], []>} : vector<384x128xbf16>, vector<128x128xbf16>, vector<384x128xf32> -> vector<384x128xf32>
    %13 = arith.addf %8, %12 : vector<384x128xf32>
    %c0_11 = arith.constant 0 : index
    %c0_12 = arith.constant 0 : index
    %c0_13 = arith.constant 0 : index
    %14 = vector.load %arg4[%c0_11, %c0_12, %c0_13] : memref<1x1x128xf32, #tpu.memory_space<vmem>>, vector<1x1x128xf32>
    %15 = vector.shape_cast %14 : vector<1x1x128xf32> to vector<1x128xf32>
    %16 = vector.broadcast %15 : vector<1x128xf32> to vector<384x128xf32>
    %17 = arith.addf %13, %16 : vector<384x128xf32>
    %c2_i32 = arith.constant 2 : i32
    %18 = arith.cmpi slt, %arg0, %c2_i32 : i32
    %19 = arith.extui %18 : i1 to i32
    %c0_i32_14 = arith.constant 0 : i32
    %20 = arith.cmpi ne, %19, %c0_i32_14 : i32
    scf.if %20 {
      %cst_17 = arith.constant 0.000000e+00 : f32
      %24 = vector.broadcast %cst_17 : f32 to vector<384x128xf32>
      %25 = arith.maximumf %17, %24 : vector<384x128xf32>
      %cst_18 = arith.constant dense<0.000000e+00> : vector<384xf32>
      %26 = vector.multi_reduction <add>, %25, %cst_18 [1] : vector<384x128xf32> to vector<384xf32>
      %27 = vector.shape_cast %26 : vector<384xf32> to vector<384x1xf32>
      %cst_19 = arith.constant 3.125000e-02 : f32
      %28 = vector.broadcast %cst_19 : f32 to vector<384x1xf32>
      %29 = arith.mulf %27, %28 : vector<384x1xf32>
      %30 = arith.mulf %25, %25 : vector<384x128xf32>
      %cst_20 = arith.constant dense<0.000000e+00> : vector<384xf32>
      %31 = vector.multi_reduction <add>, %30, %cst_20 [1] : vector<384x128xf32> to vector<384xf32>
      %32 = vector.shape_cast %31 : vector<384xf32> to vector<384x1xf32>
      %cst_21 = arith.constant 3.200000e+01 : f32
      %33 = vector.broadcast %cst_21 : f32 to vector<384x1xf32>
      %34 = arith.mulf %33, %29 : vector<384x1xf32>
      %35 = arith.mulf %34, %29 : vector<384x1xf32>
      %36 = arith.subf %32, %35 : vector<384x1xf32>
      %cst_22 = arith.constant 3.100000e+01 : f32
      %37 = vector.broadcast %cst_22 : f32 to vector<384x1xf32>
      %38 = arith.divf %36, %37 : vector<384x1xf32>
      %cst_23 = arith.constant 0.000000e+00 : f32
      %39 = vector.broadcast %cst_23 : f32 to vector<384x1xf32>
      %40 = arith.maximumf %38, %39 : vector<384x1xf32>
      %41 = math.sqrt %40 : vector<384x1xf32>
      %cst_24 = arith.constant 9.99999974E-6 : f32
      %42 = vector.broadcast %cst_24 : f32 to vector<384x1xf32>
      %43 = arith.addf %41, %42 : vector<384x1xf32>
      %44 = vector.broadcast %29 : vector<384x1xf32> to vector<384x128xf32>
      %45 = arith.subf %25, %44 : vector<384x128xf32>
      %46 = tpu.reciprocal %43 {approx = true} : vector<384x1xf32> -> vector<384x1xf32>
      %47 = vector.broadcast %46 : vector<384x1xf32> to vector<384x128xf32>
      %48 = arith.mulf %45, %47 : vector<384x128xf32>
      %49 = arith.truncf %48 : vector<384x128xf32> to vector<384x128xbf16>
      %c0_25 = arith.constant 0 : index
      %c0_26 = arith.constant 0 : index
      %50 = vector.load %arg7[%c0_25, %c0_26] : memref<384x128xbf16, #tpu.memory_space<vmem>>, vector<384x128xbf16>
      tpu.vector_store %arg7[%c0_25, %c0_26], %49 {strides = array<i32>} : memref<384x128xbf16, #tpu.memory_space<vmem>>, vector<384x128xbf16>,
      %c1_i32 = arith.constant 1 : i32
      %51 = arith.cmpi eq, %arg0, %c1_i32 : i32
      %52 = arith.extui %51 : i1 to i32
      %c0_i32_27 = arith.constant 0 : i32
      %53 = arith.cmpi ne, %52, %c0_i32_27 : i32
      scf.if %53 {
        %c0_28 = arith.constant 0 : index
        %c0_29 = arith.constant 0 : index
        %54 = vector.load %arg6[%c0_28, %c0_29] : memref<384x128xf32, #tpu.memory_space<vmem>>, vector<384x128xf32>
        tpu.vector_store %arg6[%c0_28, %c0_29], %48 {strides = array<i32>} : memref<384x128xf32, #tpu.memory_space<vmem>>, vector<384x128xf32>,
      } else {
      }
    } else {
    }
    %c2_i32_15 = arith.constant 2 : i32
    %21 = arith.cmpi eq, %arg0, %c2_i32_15 : i32
    %22 = arith.extui %21 : i1 to i32
    %c0_i32_16 = arith.constant 0 : i32
    %23 = arith.cmpi ne, %22, %c0_i32_16 : i32
    scf.if %23 {
      %c0_17 = arith.constant 0 : index
      %c0_18 = arith.constant 0 : index
      %24 = vector.load %arg5[%c0_17, %c0_18] : memref<384x128xf32, #tpu.memory_space<vmem>>, vector<384x128xf32>
      tpu.vector_store %arg5[%c0_17, %c0_18], %17 {strides = array<i32>} : memref<384x128xf32, #tpu.memory_space<vmem>>, vector<384x128xf32>,
    } else {
    }
    return
  }
  func.func @transform_0(%arg0: i32) -> (i32, i32) {
    %c0_i32 = arith.constant 0 : i32
    %c0_i32_0 = arith.constant 0 : i32
    %c0_i32_1 = arith.constant 0 : i32
    return %c0_i32, %c0_i32_0 : i32, i32
  }
  func.func @transform_1(%arg0: i32) -> (i32, i32) {
    %c0_i32 = arith.constant 0 : i32
    %c0_i32_0 = arith.constant 0 : i32
    %c0_i32_1 = arith.constant 0 : i32
    return %c0_i32, %c0_i32_0 : i32, i32
  }
  func.func @transform_2(%arg0: i32) -> (i32, i32, i32) {
    %c0_i32 = arith.constant 0 : i32
    %c0_i32_0 = arith.constant 0 : i32
    %c0_i32_1 = arith.constant 0 : i32
    return %arg0, %c0_i32, %c0_i32_0 : i32, i32, i32
  }
  func.func @transform_3(%arg0: i32) -> (i32, i32, i32) {
    %c0_i32 = arith.constant 0 : i32
    %c0_i32_0 = arith.constant 0 : i32
    %c0_i32_1 = arith.constant 0 : i32
    return %arg0, %c0_i32, %c0_i32_0 : i32, i32, i32
  }
  func.func @transform_4(%arg0: i32) -> (i32, i32) {
    %c0_i32 = arith.constant 0 : i32
    %c0_i32_0 = arith.constant 0 : i32
    %c0_i32_1 = arith.constant 0 : i32
    return %c0_i32, %c0_i32_0 : i32, i32
  }
  func.func @transform_5(%arg0: i32) -> (i32, i32) {
    %c0_i32 = arith.constant 0 : i32
    %c0_i32_0 = arith.constant 0 : i32
    %c0_i32_1 = arith.constant 0 : i32
    return %c0_i32, %c0_i32_0 : i32, i32
  }
}

</mosaic_0001>

<bundles_post_ra>
// kernel: gnn_f_forward.1
= control target key start
LH: loop header
LB: loop body
LE: loop exit
PB: predicated region body
PF: predicated region fallthrough
CT: control target
= control target key end

     0   :  { %s4233_s18 = smov 0   ;;  %s7073_s0 = inlined_call_operand.vmem [shape: bf16[384,128], index: 0, kind: input, shape index: {}]   ;;  %s7074_s1 = inlined_call_operand.vmem [shape: bf16[384,384], index: 1, kind: input, shape index: {}]   ;;  %s7075_s2 = inlined_call_operand.vmem [shape: bf16[3,256,128], index: 2, kind: input, shape index: {}]   ;;  %s7076_s3 = inlined_call_operand.vmem [shape: f32[3,1,128], index: 3, kind: input, shape index: {}]   ;;  %s7077_s4 = inlined_call_operand.vmem [shape: f32[384,128], index: 4, kind: output, shape index: {0}]   ;;  %s7078_s5 = inlined_call_operand.vmem [shape: f32[384,128], index: 5, kind: output, shape index: {1}]  }
   0x1 LB: > { %s4239_s19 = sadd.s32 4294967295, %s4200_s18   ;;  %p3361_p0 = scmp.ge.s32.totalorder %s4200_s18, 1  ;;  %s4200_s18 = sphi %s4233_s18, %s16_s18  }
   0x2   : > { %p188_p1 = scmp.lt.s32.totalorder %s4200_s18, 4 }
   0x4   : > { %p189_p2 = pnand %p3361_p0, %p188_p1 }
   0x6   : > { %192 = sbr.rel (%p189_p2) target bundleno = 1374 (0x55e), region = 36 }
   0xd   : > { %p214_p3 = scmp.lt.s32.totalorder %s4239_s19, 2  ;;  %p3364_p4 = scmp.ne.s32.totalorder %s4239_s19, 0 }
   0xe   : > { %v3845_v0 = vld [vmem:[%s7073_s0] sm:$0xff] (!%p3364_p4)   ;;  %v3846_v1 = vld [vmem:[%s7073_s0 + $0x8] sm:$0xff] (!%p3364_p4)   ;;  %v3847_v2 = vld [vmem:[%s7073_s0 + $0x10] sm:$0xff] (!%p3364_p4)  }
   0xf   : > { %s4245_s20 = scalar_select %p214_p3, %s4239_s19, 2 }
  0x10   : > { %226 = sbr.rel (%p3364_p4) target bundleno = 28 (0x1c), region = 40  ;;  %419 = vst [vmem:[#allocation2] sm:$0xff] (!%p3364_p4), %v3845_v0  ;;  %420 = vst [vmem:[#allocation2 + $0x8] sm:$0xff] (!%p3364_p4), %v3846_v1  ;;  %v3848_v3 = vld [vmem:[%s7073_s0 + $0x18] sm:$0xff] (!%p3364_p4)   ;;  %v3849_v4 = vld [vmem:[%s7073_s0 + $0x20] sm:$0xff] (!%p3364_p4)  }
  0x11   : > { %s3483_s21 = sshll.u32 %s4245_s20, 7  ;;  %s221_s24 = scalar_lea.vmem %s7076_s3, %s4245_s20  ;;  %421 = vst [vmem:[#allocation2 + $0x10] sm:$0xff] (!%p3364_p4), %v3847_v2  ;;  %422 = vst [vmem:[#allocation2 + $0x18] sm:$0xff] (!%p3364_p4), %v3848_v3  ;;  %v3850_v5 = vld [vmem:[%s7073_s0 + $0x28] sm:$0xff] (!%p3364_p4)   ;;  %v3851_v6 = vld [vmem:[%s7073_s0 + $0x30] sm:$0xff] (!%p3364_p4)  }
  0x12   : > { %s4255_s27 = scalar_lea.vmem %s7075_s2, %s3483_s21  ;;  %423 = vst [vmem:[#allocation2 + $0x20] sm:$0xff] (!%p3364_p4), %v3849_v4  ;;  %424 = vst [vmem:[#allocation2 + $0x28] sm:$0xff] (!%p3364_p4), %v3850_v5  ;;  %v3852_v7 = vld [vmem:[%s7073_s0 + $0x38] sm:$0xff] (!%p3364_p4)   ;;  %v3853_v8 = vld [vmem:[%s7073_s0 + $0x40] sm:$0xff] (!%p3364_p4)  }
  0x13   : > { %425 = vst [vmem:[#allocation2 + $0x30] sm:$0xff] (!%p3364_p4), %v3851_v6  ;;  %426 = vst [vmem:[#allocation2 + $0x38] sm:$0xff] (!%p3364_p4), %v3852_v7  ;;  %v3854_v9 = vld [vmem:[%s7073_s0 + $0x48] sm:$0xff] (!%p3364_p4)   ;;  %v3855_v10 = vld [vmem:[%s7073_s0 + $0x50] sm:$0xff] (!%p3364_p4)  }
  0x14   : > { %427 = vst [vmem:[#allocation2 + $0x40] sm:$0xff] (!%p3364_p4), %v3853_v8  ;;  %428 = vst [vmem:[#allocation2 + $0x48] sm:$0xff] (!%p3364_p4), %v3854_v9  ;;  %v3856_v11 = vld [vmem:[%s7073_s0 + $0x58] sm:$0xff] (!%p3364_p4)   ;;  %v3857_v12 = vld [vmem:[%s7073_s0 + $0x60] sm:$0xff] (!%p3364_p4)  }
  0x15   : > { %429 = vst [vmem:[#allocation2 + $0x50] sm:$0xff] (!%p3364_p4), %v3855_v10  ;;  %430 = vst [vmem:[#allocation2 + $0x58] sm:$0xff] (!%p3364_p4), %v3856_v11  ;;  %v3858_v13 = vld [vmem:[%s7073_s0 + $0x68] sm:$0xff] (!%p3364_p4)   ;;  %v3859_v14 = vld [vmem:[%s7073_s0 + $0x70] sm:$0xff] (!%p3364_p4)  }
  0x16   : > { %431 = vst [vmem:[#allocation2 + $0x60] sm:$0xff] (!%p3364_p4), %v3857_v12  ;;  %432 = vst [vmem:[#allocation2 + $0x68] sm:$0xff] (!%p3364_p4), %v3858_v13  ;;  %v3860_v15 = vld [vmem:[%s7073_s0 + $0x78] sm:$0xff] (!%p3364_p4)   ;;  %v3861_v16 = vld [vmem:[%s7073_s0 + $0x80] sm:$0xff] (!%p3364_p4)  }
  0x17   : > { %433 = vst [vmem:[#allocation2 + $0x70] sm:$0xff] %v3859_v14  ;;  %434 = vst [vmem:[#allocation2 + $0x78] sm:$0xff] %v3860_v15  ;;  %v3862_v17 = vld [vmem:[%s7073_s0 + $0x88] sm:$0xff]   ;;  %v3863_v18 = vld [vmem:[%s7073_s0 + $0x90] sm:$0xff]  }
  0x18   : > { %435 = vst [vmem:[#allocation2 + $0x80] sm:$0xff] %v3861_v16  ;;  %436 = vst [vmem:[#allocation2 + $0x88] sm:$0xff] %v3862_v17  ;;  %v3864_v19 = vld [vmem:[%s7073_s0 + $0x98] sm:$0xff]   ;;  %v3865_v20 = vld [vmem:[%s7073_s0 + $0xa0] sm:$0xff]  }
  0x19   : > { %437 = vst [vmem:[#allocation2 + $0x90] sm:$0xff] %v3863_v18  ;;  %438 = vst [vmem:[#allocation2 + $0x98] sm:$0xff] %v3864_v19  ;;  %v3866_v21 = vld [vmem:[%s7073_s0 + $0xa8] sm:$0xff]   ;;  %v3867_v22 = vld [vmem:[%s7073_s0 + $0xb0] sm:$0xff]  }
  0x1a   : > { %439 = vst [vmem:[#allocation2 + $0xa0] sm:$0xff] %v3865_v20  ;;  %440 = vst [vmem:[#allocation2 + $0xa8] sm:$0xff] %v3866_v21  ;;  %v3868_v23 = vld [vmem:[%s7073_s0 + $0xb8] sm:$0xff]  }
  0x1b   : > { %441 = vst [vmem:[#allocation2 + $0xb0] sm:$0xff] %v3867_v22  ;;  %442 = vst [vmem:[#allocation2 + $0xb8] sm:$0xff] %v3868_v23 }
  0x1c PF: > { %v443_v24 = vld [vmem:[#allocation2] sm:$0xff]  ;;  %v4202_v25 = vmov 0   ;;  %v444_v26 = vld [vmem:[#allocation2 + $0x8] sm:$0xff]  ;;  %v3904_v49 = vld [vmem:[%s7074_s1 + $0x110] ss:$12 sps:$4 sm:$0xff]   ;;  %p3478_p5 = scmp.ge.s32.totalorder %s4239_s19, 2 }
  0x1d   : > { %947 = vmatprep.subr.bf16.mxu0 %v4202_v25  ;;  %v3871_v27 = vld [vmem:[%s7074_s1 + $0x4] ss:$12 sps:$4 sm:$0xff]   ;;  %v446_v30 = vld [vmem:[#allocation2 + $0x18] sm:$0xff]  ;;  %v3893_v37 = vld [vmem:[%s7074_s1 + $0xc8] ss:$12 sps:$4 sm:$0xff]  }
  0x1e   : > { %948 = vmatpush1.bf16.msra.mxu0 %v443_v24  ;;  %v445_v29 = vld [vmem:[#allocation2 + $0x10] sm:$0xff]  ;;  %979 = vmatprep.mubr.bf16.mxu0 %v3871_v27  ;;  %v447_v33 = vld [vmem:[#allocation2 + $0x20] sm:$0xff]  ;;  %v448_v35 = vld [vmem:[#allocation2 + $0x28] sm:$0xff] }
  0x1f   : > { %949 = vmatprep.subr.bf16.mxu0 %v4202_v25  ;;  %v4335_v28 = vld [vmem:[#allocation2 + $0x80] sm:$0xff]  ;;  %v4341_v31 = vld [vmem:[#allocation2 + $0x88] sm:$0xff]  ;;  %3612 = vmatprep.mubr.bf16.mxu1 %v3893_v37  ;;  %v449_v38 = vld [vmem:[#allocation2 + $0x30] sm:$0xff] }
  0x20   : > { %3772 = vmatprep.subr.bf16.mxu1 %v4335_v28  ;;  %v4345_v32 = vld [vmem:[#allocation2 + $0x90] sm:$0xff]  ;;  %v4349_v34 = vld [vmem:[#allocation2 + $0x98] sm:$0xff]  ;;  %v451_v42 = vld [vmem:[#allocation2 + $0x40] sm:$0xff] }
  0x21   : > { %3780 = vmatpush3.bf16.msra.mxu1 %v4335_v28  ;;  %v4353_v36 = vld [vmem:[#allocation2 + $0xa0] sm:$0xff]  ;;  %v4362_v39 = vld [vmem:[#allocation2 + $0xa8] sm:$0xff]  ;;  %v450_v40 = vld [vmem:[#allocation2 + $0x38] sm:$0xff] }
  0x22   : > { %950 = vmatpush1.bf16.msra.mxu0 %v444_v26  ;;  %3773 = vmatprep.subr.bf16.mxu1 %v4341_v31  ;;  %v4367_v41 = vld [vmem:[#allocation2 + $0xb0] sm:$0xff]  ;;  %v4372_v43 = vld [vmem:[#allocation2 + $0xb8] sm:$0xff]  ;;  %v452_v44 = vld [vmem:[#allocation2 + $0x48] sm:$0xff] }
  0x23   : > { %951 = vmatprep.subr.bf16.mxu0 %v4202_v25  ;;  %v3896_v45 = vld [vmem:[%s7074_s1 + $0xe0] ss:$12 sps:$4 sm:$0xff]   ;;  %v3901_v46 = vld [vmem:[%s7074_s1 + $0xf8] ss:$12 sps:$4 sm:$0xff]   ;;  %v453_v47 = vld [vmem:[#allocation2 + $0x50] sm:$0xff] }
  0x24   : > { %v454_v48 = vld [vmem:[#allocation2 + $0x58] sm:$0xff]  ;;  %v3909_v50 = vld [vmem:[%s7074_s1 + $0x128] ss:$12 sps:$4 sm:$0xff]   ;;  %v455_v51 = vld [vmem:[#allocation2 + $0x60] sm:$0xff] }
  0x25   : > { %3781 = vmatpush3.bf16.msra.mxu1 %v4341_v31  ;;  %v4393_v52 = vld [vmem:[#allocation2 + $0x68] sm:$0xff]  ;;  %v3917_v54 = vld [vmem:[%s7074_s1 + $0x158] ss:$12 sps:$4 sm:$0xff]   ;;  %v4402_v55 = vld [vmem:[#allocation2 + $0x70] sm:$0xff] }
  0x26   : > { %952 = vmatpush1.bf16.msra.mxu0 %v445_v29  ;;  %3774 = vmatprep.subr.bf16.mxu1 %v4345_v32  ;;  %v3912_v53 = vld [vmem:[%s7074_s1 + $0x140] ss:$12 sps:$4 sm:$0xff]   ;;  %7234 = vst [vmem:[#allocation3_spill] sm:$0xff] %v4402_v55  ;;  %v4407_v56 = vld [vmem:[#allocation2 + $0x78] sm:$0xff]  ;;  %v3925_v59 = vld [vmem:[%s7074_s1 + $0x188] ss:$12 sps:$4 sm:$0xff]  }
  0x27   : > { %953 = vmatprep.subr.bf16.mxu0 %v4202_v25  ;;  %7235 = vst [vmem:[#allocation4_spill] sm:$0xff] %v4407_v56  ;;  %v3920_v57 = vld [vmem:[%s7074_s1 + $0x170] ss:$12 sps:$4 sm:$0xff]   ;;  %v3869_v58 = vld [vmem:[%s7074_s1] ss:$12 sps:$4 sm:$0xff]  }
  0x28   : > { %v3872_v60 = vld [vmem:[%s7074_s1 + $0x1c] ss:$12 sps:$4 sm:$0xff]   ;;  %v3928_v61 = vld [vmem:[%s7074_s1 + $0x1a0] ss:$12 sps:$4 sm:$0xff]   ;;  %v3874_v62 = vld [vmem:[%s7074_s1 + $0x18] ss:$12 sps:$4 sm:$0xff]  }
  0x29   : > { %3782 = vmatpush3.bf16.msra.mxu1 %v4345_v32  ;;  %v3875_v63 = vld [vmem:[%s7074_s1 + $0x34] ss:$12 sps:$4 sm:$0xff]   ;;  %v3933_v0 = vld [vmem:[%s7074_s1 + $0x1b8] ss:$12 sps:$4 sm:$0xff]   ;;  %v3936_v1 = vld [vmem:[%s7074_s1 + $0x1d0] ss:$12 sps:$4 sm:$0xff]  }
  0x2a   : > { %954 = vmatpush1.bf16.msra.mxu0 %v446_v30  ;;  %3775 = vmatprep.subr.bf16.mxu1 %v4349_v34  ;;  %v3877_v2 = vld [vmem:[%s7074_s1 + $0x30] ss:$12 sps:$4 sm:$0xff]   ;;  %v3878_v3 = vld [vmem:[%s7074_s1 + $0x4c] ss:$12 sps:$4 sm:$0xff]   ;;  %v3880_v4 = vld [vmem:[%s7074_s1 + $0x48] ss:$12 sps:$4 sm:$0xff]  }
  0x2b   : > { %955 = vmatprep.subr.bf16.mxu0 %v4202_v25  ;;  %v3881_v5 = vld [vmem:[%s7074_s1 + $0x64] ss:$12 sps:$4 sm:$0xff]   ;;  %v3941_v6 = vld [vmem:[%s7074_s1 + $0x1e8] ss:$12 sps:$4 sm:$0xff]   ;;  %v3944_v7 = vld [vmem:[%s7074_s1 + $0x200] ss:$12 sps:$4 sm:$0xff]  }
  0x2c   : > { %v3883_v8 = vld [vmem:[%s7074_s1 + $0x60] ss:$12 sps:$4 sm:$0xff]   ;;  %v3884_v9 = vld [vmem:[%s7074_s1 + $0x7c] ss:$12 sps:$4 sm:$0xff]   ;;  %v3886_v10 = vld [vmem:[%s7074_s1 + $0x78] ss:$12 sps:$4 sm:$0xff]  }
  0x2d   : > { %3783 = vmatpush3.bf16.msra.mxu1 %v4349_v34  ;;  %v3887_v11 = vld [vmem:[%s7074_s1 + $0x94] ss:$12 sps:$4 sm:$0xff]   ;;  %v3949_v12 = vld [vmem:[%s7074_s1 + $0x218] ss:$12 sps:$4 sm:$0xff]   ;;  %v3952_v13 = vld [vmem:[%s7074_s1 + $0x230] ss:$12 sps:$4 sm:$0xff]  }
  0x2e   : > { %956 = vmatpush1.bf16.msra.mxu0 %v447_v33  ;;  %3776 = vmatprep.subr.bf16.mxu1 %v4353_v36  ;;  %v3889_v14 = vld [vmem:[%s7074_s1 + $0x90] ss:$12 sps:$4 sm:$0xff]   ;;  %v3890_v15 = vld [vmem:[%s7074_s1 + $0xac] ss:$12 sps:$4 sm:$0xff]   ;;  %v3892_v16 = vld [vmem:[%s7074_s1 + $0xa8] ss:$12 sps:$4 sm:$0xff]  }
  0x2f   : > { %957 = vmatprep.subr.bf16.mxu0 %v4202_v25  ;;  %v3894_v17 = vld [vmem:[%s7074_s1 + $0xc4] ss:$12 sps:$4 sm:$0xff]   ;;  %v3897_v18 = vld [vmem:[%s7074_s1 + $0xc0] ss:$12 sps:$4 sm:$0xff]   ;;  %v3898_v19 = vld [vmem:[%s7074_s1 + $0xdc] ss:$12 sps:$4 sm:$0xff]  }
  0x30   : > { %v3900_v20 = vld [vmem:[%s7074_s1 + $0xd8] ss:$12 sps:$4 sm:$0xff]   ;;  %v3902_v21 = vld [vmem:[%s7074_s1 + $0xf4] ss:$12 sps:$4 sm:$0xff]   ;;  %v3905_v22 = vld [vmem:[%s7074_s1 + $0xf0] ss:$12 sps:$4 sm:$0xff]  }
  0x31   : > { %3784 = vmatpush3.bf16.msra.mxu1 %v4353_v36  ;;  %v3906_v23 = vld [vmem:[%s7074_s1 + $0x10c] ss:$12 sps:$4 sm:$0xff]   ;;  %v3908_v24 = vld [vmem:[%s7074_s1 + $0x108] ss:$12 sps:$4 sm:$0xff]   ;;  %v3921_v30 = vld [vmem:[%s7074_s1 + $0x150] ss:$12 sps:$4 sm:$0xff]  }
  0x32   : > { %958 = vmatpush1.bf16.msra.mxu0 %v448_v35  ;;  %3777 = vmatprep.subr.bf16.mxu1 %v4362_v39  ;;  %v3913_v26 = vld [vmem:[%s7074_s1 + $0x120] ss:$12 sps:$4 sm:$0xff]   ;;  %v3914_v27 = vld [vmem:[%s7074_s1 + $0x13c] ss:$12 sps:$4 sm:$0xff]   ;;  %v3926_v33 = vld [vmem:[%s7074_s1 + $0x184] ss:$12 sps:$4 sm:$0xff]  }
  0x33   : > { %959 = vmatprep.subr.bf16.mxu0 %v4202_v25  ;;  %v3918_v29 = vld [vmem:[%s7074_s1 + $0x154] ss:$12 sps:$4 sm:$0xff]   ;;  %v3930_v35 = vld [vmem:[%s7074_s1 + $0x19c] ss:$12 sps:$4 sm:$0xff]  }
  0x34   : > { %v3934_v37 = vld [vmem:[%s7074_s1 + $0x1b4] ss:$12 sps:$4 sm:$0xff]  }
  0x35   : > { %3785 = vmatpush3.bf16.msra.mxu1 %v4362_v39 }
  0x36   : > { %960 = vmatpush1.bf16.msra.mxu0 %v449_v38  ;;  %3778 = vmatprep.subr.bf16.mxu1 %v4367_v41  ;;  %v3937_v38 = vld [vmem:[%s7074_s1 + $0x1b0] ss:$12 sps:$4 sm:$0xff]  }
  0x37   : > { %961 = vmatprep.subr.bf16.mxu0 %v4202_v25 }
  0x39   : > { %3786 = vmatpush3.bf16.msra.mxu1 %v4367_v41 }
  0x3a   : > { %962 = vmatpush1.bf16.msra.mxu0 %v450_v40  ;;  %3779 = vmatprep.subr.bf16.mxu1 %v4372_v43  ;;  %v3940_v40 = vld [vmem:[%s7074_s1 + $0x1c8] ss:$12 sps:$4 sm:$0xff]  }
  0x3b   : > { %963 = vmatprep.subr.bf16.mxu0 %v4202_v25 }
  0x3d   : > { %3787 = vmatpush3.bf16.msra.mxu1 %v4372_v43 }
  0x3e   : > { %964 = vmatpush1.bf16.msra.mxu0 %v451_v42  ;;  %v3945_v42 = vld [vmem:[%s7074_s1 + $0x1e0] ss:$12 sps:$4 sm:$0xff]  }
  0x3f   : > { %965 = vmatprep.subr.bf16.mxu0 %v4202_v25 }
  0x40   : > { %3613 = vmatmul.mubr.bf16.vlgmr.msra.gmra.mrb[0].mxu1 %v3896_v45  ;;  %v3950_v45 = vld [vmem:[%s7074_s1 + $0x214] ss:$12 sps:$4 sm:$0xff]  }
  0x41   : > { %3616 = vmatprep.mubr.bf16.mxu1 %v3901_v46  ;;  %v3953_v46 = vld [vmem:[%s7074_s1 + $0x210] ss:$12 sps:$4 sm:$0xff]  }
  0x42   : > { %966 = vmatpush1.bf16.msra.mxu0 %v452_v44  ;;  %v3948_v44 = vld [vmem:[%s7074_s1 + $0x1f8] ss:$12 sps:$4 sm:$0xff]  }
  0x43   : > { %967 = vmatprep.subr.bf16.mxu0 %v4202_v25 }
  0x46   : > { %968 = vmatpush1.bf16.msra.mxu0 %v453_v47  ;;  %v3954_v47 = vld [vmem:[%s7074_s1 + $0x22c] ss:$12 sps:$4 sm:$0xff]  }
  0x47   : > { %969 = vmatprep.subr.bf16.mxu0 %v4202_v25 }
  0x48   : > { %3617 = vmatmul.mubr.bf16.gmra.mrb[4].mxu1 %v3904_v49  ;;  %v3957_v49 = vld [vmem:[%s7074_s1 + $0x8] ss:$12 sps:$4 sm:$0xff]  }
  0x49   : > { %3620 = vmatprep.mubr.bf16.mxu1 %v3909_v50 }
  0x4a   : > { %970 = vmatpush1.bf16.msra.mxu0 %v454_v48  ;;  %v3956_v48 = vld [vmem:[%s7074_s1 + $0x228] ss:$12 sps:$4 sm:$0xff]  }
  0x4b   : > { %971 = vmatprep.subr.bf16.mxu0 %v4202_v25 }
  0x4e   : > { %972 = vmatpush1.bf16.msra.mxu0 %v455_v51 }
  0x4f   : > { %973 = vmatprep.subr.bf16.mxu0 %v4202_v25 }
  0x50   : > { %3621 = vmatmul.mubr.bf16.gmra.mrb[8].mxu1 %v3912_v53  ;;  %v3958_v53 = vld [vmem:[%s7074_s1 + $0x20] ss:$12 sps:$4 sm:$0xff]  }
  0x51   : > { %3624 = vmatprep.mubr.bf16.mxu1 %v3917_v54 }
  0x52   : > { %974 = vmatpush1.bf16.msra.mxu0 %v4393_v52 }
  0x53   : > { %975 = vmatprep.subr.bf16.mxu0 %v4202_v25 }
  0x56   : > { %976 = vmatpush1.bf16.msra.mxu0 %v4402_v55 }
  0x57   : > { %977 = vmatprep.subr.bf16.mxu0 %v4202_v25  ;;  %v3910_v25 = vld [vmem:[%s7074_s1 + $0x124] ss:$12 sps:$4 sm:$0xff]  }
  0x58   : > { %3625 = vmatmul.mubr.bf16.gmra.mrb[12].mxu1 %v3920_v57  ;;  %v3959_v57 = vld [vmem:[%s7074_s1 + $0x38] ss:$12 sps:$4 sm:$0xff]  }
  0x59   : > { %3628 = vmatprep.mubr.bf16.mxu1 %v3925_v59 }
  0x5a   : > { %978 = vmatpush1.bf16.msra.mxu0 %v4407_v56 }
  0x5b   : > { %3580 = vmatprep.subr.bf16.mxu0 %v4335_v28 }
  0x5d   : > { %980 = vmatmul.mubr.bf16.vlgmr.msra.gmra.mrb[0].mxu0 %v3869_v58 }
  0x5e   : > { %3581 = vmatpush3.bf16.msra.mxu0 %v4335_v28  ;;  %987 = vmatprep.mubr.bf16.mxu0 %v3872_v60  ;;  %v3916_v28 = vld [vmem:[%s7074_s1 + $0x138] ss:$12 sps:$4 sm:$0xff]  }
  0x5f   : > { %3582 = vmatprep.subr.bf16.mxu0 %v4341_v31 }
  0x60   : > { %3629 = vmatmul.mubr.bf16.gmra.mrb[16].mxu1 %v3928_v61  ;;  %v3960_v61 = vld [vmem:[%s7074_s1 + $0x50] ss:$12 sps:$4 sm:$0xff]  }
  0x61   : > { %3632 = vmatprep.mubr.bf16.mxu1 %v3933_v0 }
  0x62   : > { %3583 = vmatpush3.bf16.msra.mxu0 %v4341_v31  ;;  %v3922_v31 = vld [vmem:[%s7074_s1 + $0x16c] ss:$12 sps:$4 sm:$0xff]  }
  0x63   : > { %3584 = vmatprep.subr.bf16.mxu0 %v4345_v32 }
  0x65   : > { %988 = vmatmul.mubr.bf16.gmra.mrb[4].mxu0 %v3874_v62 }
  0x66   : > { %995 = vmatprep.mubr.bf16.mxu0 %v3875_v63  ;;  %3585 = vmatpush3.bf16.msra.mxu0 %v4345_v32  ;;  %v3924_v32 = vld [vmem:[%s7074_s1 + $0x168] ss:$12 sps:$4 sm:$0xff]  }
  0x67   : > { %3586 = vmatprep.subr.bf16.mxu0 %v4349_v34  ;;  %v3961_v63 = vld [vmem:[%s7074_s1 + $0x68] ss:$12 sps:$4 sm:$0xff]  }
  0x68   : > { %3633 = vmatmul.mubr.bf16.gmra.mrb[20].mxu1 %v3936_v1 }
  0x69   : > { %3636 = vmatprep.mubr.bf16.mxu1 %v3941_v6 }
  0x6a   : > { %3587 = vmatpush3.bf16.msra.mxu0 %v4349_v34  ;;  %v3929_v34 = vld [vmem:[%s7074_s1 + $0x180] ss:$12 sps:$4 sm:$0xff]  }
  0x6b   : > { %3588 = vmatprep.subr.bf16.mxu0 %v4353_v36 }
  0x6d   : > { %996 = vmatmul.mubr.bf16.gmra.mrb[8].mxu0 %v3877_v2 }
  0x6e   : > { %1003 = vmatprep.mubr.bf16.mxu0 %v3878_v3  ;;  %3589 = vmatpush3.bf16.msra.mxu0 %v4353_v36  ;;  %v3932_v36 = vld [vmem:[%s7074_s1 + $0x198] ss:$12 sps:$4 sm:$0xff]   ;;  %v3962_v3 = vld [vmem:[%s7074_s1 + $0x80] ss:$12 sps:$4 sm:$0xff]  }
  0x6f   : > { %3590 = vmatprep.subr.bf16.mxu0 %v4362_v39 }
  0x70   : > { %3637 = vmatmul.mubr.bf16.gmra.mrb[24].mxu1 %v3944_v7 }
  0x71   : > { %3640 = vmatprep.mubr.bf16.mxu1 %v3949_v12 }
  0x72   : > { %3591 = vmatpush3.bf16.msra.mxu0 %v4362_v39  ;;  %v3938_v39 = vld [vmem:[%s7074_s1 + $0x1cc] ss:$12 sps:$4 sm:$0xff]  }
  0x73   : > { %3592 = vmatprep.subr.bf16.mxu0 %v4367_v41 }
  0x75   : > { %1004 = vmatmul.mubr.bf16.gmra.mrb[12].mxu0 %v3880_v4 }
  0x76   : > { %1011 = vmatprep.mubr.bf16.mxu0 %v3881_v5  ;;  %3593 = vmatpush3.bf16.msra.mxu0 %v4367_v41  ;;  %v3942_v41 = vld [vmem:[%s7074_s1 + $0x1e4] ss:$12 sps:$4 sm:$0xff]  }
  0x77   : > { %3594 = vmatprep.subr.bf16.mxu0 %v4372_v43  ;;  %v3963_v5 = vld [vmem:[%s7074_s1 + $0x98] ss:$12 sps:$4 sm:$0xff]  }
  0x78   : > { %3641 = vmatmul.mubr.bf16.gmra.mrb[28].mxu1 %v3952_v13 }
  0x7a   : > { %3595 = vmatpush3.bf16.msra.mxu0 %v4372_v43  ;;  %v3946_v43 = vld [vmem:[%s7074_s1 + $0x1fc] ss:$12 sps:$4 sm:$0xff]  }
  0x7d   : > { %1012 = vmatmul.mubr.bf16.gmra.mrb[16].mxu0 %v3883_v8 }
  0x7e   : > { %1019 = vmatprep.mubr.bf16.mxu0 %v3884_v9 }
  0x85   : > { %1020 = vmatmul.mubr.bf16.gmra.mrb[20].mxu0 %v3886_v10 }
  0x86   : > { %1027 = vmatprep.mubr.bf16.mxu0 %v3887_v11  ;;  %v3964_v11 = vld [vmem:[%s7074_s1 + $0xb0] ss:$12 sps:$4 sm:$0xff]  }
  0x8d   : > { %1028 = vmatmul.mubr.bf16.gmra.mrb[24].mxu0 %v3889_v14 }
  0x8e   : > { %1035 = vmatprep.mubr.bf16.mxu0 %v3890_v15 }
  0x95   : > { %1036 = vmatmul.mubr.bf16.gmra.mrb[28].mxu0 %v3892_v16 }
  0x96   : > { %1043 = vmatprep.mubr.bf16.mxu0 %v3894_v17 }
  0x9d   : > { %1044 = vmatmul.mubr.bf16.gmra.mrb[32].mxu0 %v3897_v18 }
  0x9e   : > { %1051 = vmatprep.mubr.bf16.mxu0 %v3898_v19 }
  0xa5   : > { %1052 = vmatmul.mubr.bf16.gmra.mrb[36].mxu0 %v3900_v20 }
  0xa6   : > { %1059 = vmatprep.mubr.bf16.mxu0 %v3902_v21  ;;  %v3965_v21 = vld [vmem:[%s4255_s27 + $0x40] sm:$0xff]  }
  0xa7   : > { %3644 = vmatprep.subr.bf16.mxu1 %v3965_v21 }
  0xa8   : > { %3645 = vmatpush3.bf16.msra.mxu1 %v3965_v21 }
  0xad   : > { %1060 = vmatmul.mubr.bf16.gmra.mrb[40].mxu0 %v3905_v22 }
  0xae   : > { %1067 = vmatprep.mubr.bf16.mxu0 %v3906_v23 }
  0xb5   : > { %1068 = vmatmul.mubr.bf16.gmra.mrb[44].mxu0 %v3908_v24 }
  0xb6   : > { %1075 = vmatprep.mubr.bf16.mxu0 %v3910_v25 }
  0xbd   : > { %1076 = vmatmul.mubr.bf16.gmra.mrb[48].mxu0 %v3913_v26 }
  0xbe   : > { %1083 = vmatprep.mubr.bf16.mxu0 %v3914_v27 }
  0xc5   : > { %1084 = vmatmul.mubr.bf16.gmra.mrb[52].mxu0 %v3916_v28 }
  0xc6   : > { %1091 = vmatprep.mubr.bf16.mxu0 %v3918_v29 }
  0xcd   : > { %1092 = vmatmul.mubr.bf16.gmra.mrb[56].mxu0 %v3921_v30  ;;  %v3966_v30 = vld [vmem:[%s4255_s27 + $0x48] sm:$0xff]  }
  0xce   : > { %1099 = vmatprep.mubr.bf16.mxu0 %v3922_v31  ;;  %3646 = vmatprep.subr.bf16.mxu1 %v3966_v30 }
  0xcf   : > { %3647 = vmatpush3.bf16.msra.mxu1 %v3966_v30 }
  0xd5   : > { %1100 = vmatmul.mubr.bf16.gmra.mrb[60].mxu0 %v3924_v32 }
  0xd6   : > { %1107 = vmatprep.mubr.bf16.mxu0 %v3926_v33 }
  0xdd   : > { %1108 = vmatmul.mubr.bf16.gmra.mrb[64].mxu0 %v3929_v34 }
  0xde   : > { %1115 = vmatprep.mubr.bf16.mxu0 %v3930_v35 }
  0xe5   : > { %1116 = vmatmul.mubr.bf16.gmra.mrb[68].mxu0 %v3932_v36  ;;  %v3967_v36 = vld [vmem:[%s4255_s27 + $0x50] sm:$0xff]  }
  0xe6   : > { %1123 = vmatprep.mubr.bf16.mxu0 %v3934_v37  ;;  %3648 = vmatprep.subr.bf16.mxu1 %v3967_v36 }
  0xe7   : > { %3649 = vmatpush3.bf16.msra.mxu1 %v3967_v36 }
  0xed   : > { %1124 = vmatmul.mubr.bf16.gmra.mrb[72].mxu0 %v3937_v38 }
  0xee   : > { %1131 = vmatprep.mubr.bf16.mxu0 %v3938_v39 }
  0xf5   : > { %1132 = vmatmul.mubr.bf16.gmra.mrb[76].mxu0 %v3940_v40 }
  0xf6   : > { %1139 = vmatprep.mubr.bf16.mxu0 %v3942_v41 }
  0xfd   : > { %1140 = vmatmul.mubr.bf16.gmra.mrb[80].mxu0 %v3945_v42 }
  0xfe   : > { %1147 = vmatprep.mubr.bf16.mxu0 %v3946_v43 }
 0x105   : > { %1148 = vmatmul.mubr.bf16.gmra.mrb[84].mxu0 %v3948_v44  ;;  %v3968_v44 = vld [vmem:[%s4255_s27 + $0x58] sm:$0xff]  }
 0x106   : > { %1155 = vmatprep.mubr.bf16.mxu0 %v3950_v45  ;;  %3650 = vmatprep.subr.bf16.mxu1 %v3968_v44 }
 0x107   : > { %3651 = vmatpush3.bf16.msra.mxu1 %v3968_v44 }
 0x10d   : > { %1156 = vmatmul.mubr.bf16.gmra.mrb[88].mxu0 %v3953_v46 }
 0x10e   : > { %1163 = vmatprep.mubr.bf16.mxu0 %v3954_v47 }
 0x113   : > { %v4598_v50 = vpop.f32.mrb[0].mxu1 }
 0x114   : > { %v4600_v51 = vpop.f32.mrb[1].mxu1 }
 0x115   : > { %1164 = vmatmul.mubr.bf16.gmra.mrb[92].mxu0 %v3956_v48  ;;  %v4605_v54 = vpop.f32.mrb[2].mxu1 }
 0x116   : > { %3596 = vmatprep.mubr.bf16.mxu0 %v3957_v49  ;;  %v4610_v58 = vpop.f32.mrb[3].mxu1 }
 0x11b   : > { %v4612_v59 = vpop.f32.mrb[4].mxu1 }
 0x11c   : > { %v4614_v60 = vpop.f32.mrb[5].mxu1 }
 0x11d   : > { %3597 = vmatmul.mubr.bf16.vlgmr.msra.gmra.mrb[96].mxu0 %v3958_v53  ;;  %v4619_v62 = vpop.f32.mrb[6].mxu1  ;;  %v3969_v53 = vld [vmem:[%s4255_s27 + $0x60] sm:$0xff]  }
 0x11e   : > { %3600 = vmatprep.mubr.bf16.mxu0 %v3959_v57  ;;  %v4624_v0 = vpop.f32.mrb[7].mxu1  ;;  %3652 = vmatprep.subr.bf16.mxu1 %v3969_v53 }
 0x11f   : > { %3653 = vmatpush3.bf16.msra.mxu1 %v3969_v53 }
 0x123   : > { %v4626_v1 = vpop.f32.mrb[8].mxu1 }
 0x124   : > { %v4628_v2 = vpop.f32.mrb[9].mxu1 }
 0x125   : > { %3601 = vmatmul.mubr.bf16.gmra.mrb[100].mxu0 %v3960_v61  ;;  %v4633_v4 = vpop.f32.mrb[10].mxu1 }
 0x126   : > { %3604 = vmatprep.mubr.bf16.mxu0 %v3961_v63  ;;  %v4638_v6 = vpop.f32.mrb[11].mxu1 }
 0x12b   : > { %v4640_v7 = vpop.f32.mrb[12].mxu1 }
 0x12c   : > { %v4644_v9 = vpop.f32.mrb[13].mxu1 }
 0x12d   : > { %3605 = vmatmul.mubr.bf16.gmra.mrb[104].mxu0 %v3962_v3  ;;  %v4649_v12 = vpop.f32.mrb[14].mxu1 }
 0x12e   : > { %3608 = vmatprep.mubr.bf16.mxu0 %v3963_v5  ;;  %v4653_v14 = vpop.f32.mrb[15].mxu1 }
 0x130   : > { %v4642_v8 = vpop.f32.mrb[0].mxu0 }
 0x131   : > { %v983_v10 = vpop.f32.mrb[1].mxu0 }
 0x132   : > { %v4651_v13 = vpop.f32.mrb[2].mxu0 }
 0x133   : > { %v986_v15 = vpop.f32.mrb[3].mxu0  ;;  %v4655_v16 = vpop.f32.mrb[16].mxu1 }
 0x134   : > { %v4659_v18 = vpop.f32.mrb[17].mxu1  ;;  %v3970_v15 = vld [vmem:[%s4255_s27 + $0x68] sm:$0xff]  }
 0x135   : > { %3609 = vmatmul.mubr.bf16.gmra.mrb[108].mxu0 %v3964_v11  ;;  %v4661_v20 = vpop.f32.mrb[18].mxu1  ;;  %3654 = vmatprep.subr.bf16.mxu1 %v3970_v15 }
 0x136   : > { %v4666_v23 = vpop.f32.mrb[19].mxu1  ;;  %3655 = vmatpush3.bf16.msra.mxu1 %v3970_v15 }
 0x138   : > { %v4657_v17 = vpop.f32.mrb[4].mxu0 }
 0x139   : > { %v991_v19 = vpop.f32.mrb[5].mxu0 }
 0x13a   : > { %v4664_v22 = vpop.f32.mrb[6].mxu0 }
 0x13b   : > { %v994_v24 = vpop.f32.mrb[7].mxu0  ;;  %v4668_v25 = vpop.f32.mrb[20].mxu1 }
 0x13c   : > { %v4672_v27 = vpop.f32.mrb[21].mxu1 }
 0x13d   : > { %v4674_v29 = vpop.f32.mrb[22].mxu1 }
 0x13e   : > { %v4679_v32 = vpop.f32.mrb[23].mxu1 }
 0x140   : > { %v4670_v26 = vpop.f32.mrb[8].mxu0 }
 0x141   : > { %v999_v28 = vpop.f32.mrb[9].mxu0 }
 0x142   : > { %v4677_v31 = vpop.f32.mrb[10].mxu0 }
 0x143   : > { %v1002_v33 = vpop.f32.mrb[11].mxu0  ;;  %v4686_v39 = vpop.f32.mrb[24].mxu1 }
 0x144   : > { %v4690_v41 = vpop.f32.mrb[25].mxu1  ;;  %v3971_v33 = vld [vmem:[%s4255_s27 + $0x70] sm:$0xff]  }
 0x145   : > { %v4692_v43 = vpop.f32.mrb[26].mxu1  ;;  %3656 = vmatprep.subr.bf16.mxu1 %v3971_v33 }
 0x146   : > { %v4697_v46 = vpop.f32.mrb[27].mxu1  ;;  %3657 = vmatpush3.bf16.msra.mxu1 %v3971_v33 }
 0x148   : > { %v4681_v34 = vpop.f32.mrb[12].mxu0 }
 0x149   : > { %v1007_v35 = vpop.f32.mrb[13].mxu0 }
 0x14a   : > { %v4684_v37 = vpop.f32.mrb[14].mxu0 }
 0x14b   : > { %v1010_v38 = vpop.f32.mrb[15].mxu0  ;;  %v4704_v63 = vpop.f32.mrb[28].mxu1 }
 0x14c   : > { %v4708_v5 = vpop.f32.mrb[29].mxu1 }
 0x14d   : > { %v4710_v11 = vpop.f32.mrb[30].mxu1 }
 0x14e   : > { %v4715_v21 = vpop.f32.mrb[31].mxu1 }
 0x150   : > { %v4688_v40 = vpop.f32.mrb[16].mxu0 }
 0x151   : > { %v1015_v42 = vpop.f32.mrb[17].mxu0 }
 0x152   : > { %v4695_v45 = vpop.f32.mrb[18].mxu0 }
 0x153   : > { %v1018_v47 = vpop.f32.mrb[19].mxu0 }
 0x158   : > { %v4699_v48 = vpop.f32.mrb[20].mxu0 }
 0x159   : > { %v1023_v49 = vpop.f32.mrb[21].mxu0 }
 0x15a   : > { %v4702_v57 = vpop.f32.mrb[22].mxu0  ;;  %v3972_v49 = vld [vmem:[%s4255_s27 + $0x78] sm:$0xff]  }
 0x15b   : > { %v1026_v61 = vpop.f32.mrb[23].mxu0  ;;  %3658 = vmatprep.subr.bf16.mxu1 %v3972_v49 }
 0x15c   : > { %3659 = vmatpush3.bf16.msra.mxu1 %v3972_v49 }
 0x160   : > { %v4706_v3 = vpop.f32.mrb[24].mxu0 }
 0x161   : > { %v1031_v10 = vpop.f32.mrb[25].mxu0 }
 0x162   : > { %v4713_v19 = vpop.f32.mrb[26].mxu0 }
 0x163   : > { %v1034_v24 = vpop.f32.mrb[27].mxu0 }
 0x168   : > { %v4717_v28 = vpop.f32.mrb[28].mxu0 }
 0x169   : > { %v1039_v30 = vpop.f32.mrb[29].mxu0 }
 0x16a   : > { %v4720_v35 = vpop.f32.mrb[30].mxu0 }
 0x16b   : > { %v1042_v36 = vpop.f32.mrb[31].mxu0 }
 0x170   : > { %v1045_v38 = vpop.f32.mrb[32].mxu0 }
 0x171   : > { %v4723_v42 = vadd.f32 %v4600_v51, %v1045_v38  ;;  %v1047_v44 = vpop.f32.mrb[33].mxu0  ;;  %v4735_v51 = vld [vmem:[%s4255_s27] sm:$0xff]  }
 0x172   : > { %v1048_v47 = vpop.f32.mrb[34].mxu0  ;;  %3708 = vmatprep.subr.bf16.mxu1 %v4735_v51 }
 0x173   : > { %v4727_v53 = vadd.f32 %v4610_v58, %v1048_v47  ;;  %v1050_v61 = vpop.f32.mrb[35].mxu0 }
 0x178   : > { %v1053_v15 = vpop.f32.mrb[36].mxu0 }
 0x179   : > { %v4732_v24 = vadd.f32 %v4598_v50, %v1053_v15  ;;  %v1055_v30 = vpop.f32.mrb[37].mxu0 }
 0x17a   : > { %v1056_v33 = vpop.f32.mrb[38].mxu0 }
 0x17b   : > { %v4738_v36 = vadd.f32 %v4605_v54, %v1056_v33  ;;  %v1058_v38 = vpop.f32.mrb[39].mxu0 }
 0x180   : > { %v1061_v44 = vpop.f32.mrb[40].mxu0 }
 0x181   : > { %v4744_v47 = vadd.f32 %v4614_v60, %v1061_v44  ;;  %v1063_v49 = vpop.f32.mrb[41].mxu0 }
 0x182   : > { %v1064_v50 = vpop.f32.mrb[42].mxu0 }
 0x183   : > { %v4747_v61 = vadd.f32 %v4624_v0, %v1064_v50  ;;  %v1066_v15 = vpop.f32.mrb[43].mxu0 }
 0x188   : > { %v1069_v30 = vpop.f32.mrb[44].mxu0 }
 0x189   : > { %v4752_v33 = vadd.f32 %v4612_v59, %v1069_v30  ;;  %v1071_v38 = vpop.f32.mrb[45].mxu0 }
 0x18a   : > { %v1072_v10 = vpop.f32.mrb[46].mxu0 }
 0x18b   : > { %v4755_v58 = vadd.f32 %v4619_v62, %v1072_v10  ;;  %v1074_v60 = vpop.f32.mrb[47].mxu0 }
 0x190   : > { %v1077_v49 = vpop.f32.mrb[48].mxu0 }
 0x191   : > { %v4760_v0 = vadd.f32 %v4628_v2, %v1077_v49  ;;  %v1079_v50 = vpop.f32.mrb[49].mxu0 }
 0x192   : > { %v1080_v15 = vpop.f32.mrb[50].mxu0 }
 0x193   : > { %v4763_v54 = vadd.f32 %v4638_v6, %v1080_v15  ;;  %v1082_v59 = vpop.f32.mrb[51].mxu0 }
 0x198   : > { %v1085_v38 = vpop.f32.mrb[52].mxu0 }
 0x199   : > { %v4768_v62 = vadd.f32 %v4626_v1, %v1085_v38  ;;  %v1087_v10 = vpop.f32.mrb[53].mxu0 }
 0x19a   : > { %v1088_v60 = vpop.f32.mrb[54].mxu0 }
 0x19b   : > { %v4771_v44 = vadd.f32 %v4633_v4, %v1088_v60  ;;  %v1090_v2 = vpop.f32.mrb[55].mxu0 }
 0x1a0   : > { %v1093_v50 = vpop.f32.mrb[56].mxu0 }
 0x1a1   : > { %v4776_v6 = vadd.f32 %v4644_v9, %v1093_v50  ;;  %v1095_v15 = vpop.f32.mrb[57].mxu0 }
 0x1a2   : > { %v1096_v59 = vpop.f32.mrb[58].mxu0 }
 0x1a3   : > { %v4779_v30 = vadd.f32 %v4653_v14, %v1096_v59  ;;  %v1098_v1 = vpop.f32.mrb[59].mxu0 }
 0x1a8   : > { %v1101_v10 = vpop.f32.mrb[60].mxu0 }
 0x1a9   : > { %v4784_v4 = vadd.f32 %v4640_v7, %v1101_v10  ;;  %v1103_v60 = vpop.f32.mrb[61].mxu0 }
 0x1aa   : > { %v1104_v2 = vpop.f32.mrb[62].mxu0 }
 0x1ab   : > { %v4787_v49 = vadd.f32 %v4649_v12, %v1104_v2  ;;  %v1106_v9 = vpop.f32.mrb[63].mxu0 }
 0x1b0   : > { %v1109_v15 = vpop.f32.mrb[64].mxu0 }
 0x1b1   : > { %v4792_v14 = vadd.f32 %v4659_v18, %v1109_v15  ;;  %v1111_v59 = vpop.f32.mrb[65].mxu0 }
 0x1b2   : > { %v1112_v1 = vpop.f32.mrb[66].mxu0 }
 0x1b3   : > { %v4795_v38 = vadd.f32 %v4666_v23, %v1112_v1  ;;  %v1114_v7 = vpop.f32.mrb[67].mxu0 }
 0x1b8   : > { %v1117_v60 = vpop.f32.mrb[68].mxu0 }
 0x1b9   : > { %v4800_v12 = vadd.f32 %v4655_v16, %v1117_v60  ;;  %v1119_v2 = vpop.f32.mrb[69].mxu0 }
 0x1ba   : > { %v1120_v9 = vpop.f32.mrb[70].mxu0 }
 0x1bb   : > { %v4803_v50 = vadd.f32 %v4661_v20, %v1120_v9  ;;  %v1122_v18 = vpop.f32.mrb[71].mxu0 }
 0x1c0   : > { %v1125_v59 = vpop.f32.mrb[72].mxu0 }
 0x1c1   : > { %v4808_v23 = vadd.f32 %v4672_v27, %v1125_v59  ;;  %v1127_v1 = vpop.f32.mrb[73].mxu0 }
 0x1c2   : > { %v1128_v7 = vpop.f32.mrb[74].mxu0 }
 0x1c3   : > { %v4811_v10 = vadd.f32 %v4679_v32, %v1128_v7  ;;  %v1130_v16 = vpop.f32.mrb[75].mxu0 }
 0x1c8   : > { %v1133_v2 = vpop.f32.mrb[76].mxu0 }
 0x1c9   : > { %v4816_v20 = vadd.f32 %v4668_v25, %v1133_v2  ;;  %v1135_v9 = vpop.f32.mrb[77].mxu0 }
 0x1ca   : > { %v1136_v18 = vpop.f32.mrb[78].mxu0 }
 0x1cb   : > { %v4819_v15 = vadd.f32 %v4674_v29, %v1136_v18  ;;  %v1138_v27 = vpop.f32.mrb[79].mxu0 }
 0x1d0   : > { %v1141_v1 = vpop.f32.mrb[80].mxu0 }
 0x1d1   : > { %v4824_v32 = vadd.f32 %v4690_v41, %v1141_v1  ;;  %v1143_v7 = vpop.f32.mrb[81].mxu0 }
 0x1d2   : > { %v1144_v16 = vpop.f32.mrb[82].mxu0 }
 0x1d3   : > { %v4827_v60 = vadd.f32 %v4697_v46, %v1144_v16  ;;  %v1146_v25 = vpop.f32.mrb[83].mxu0 }
 0x1d8   : > { %v1149_v9 = vpop.f32.mrb[84].mxu0 }
 0x1d9   : > { %v4832_v29 = vadd.f32 %v4686_v39, %v1149_v9  ;;  %v1151_v18 = vpop.f32.mrb[85].mxu0 }
 0x1da   : > { %v1152_v27 = vpop.f32.mrb[86].mxu0 }
 0x1db   : > { %v4835_v59 = vadd.f32 %v4692_v43, %v1152_v27  ;;  %v1154_v41 = vpop.f32.mrb[87].mxu0 }
 0x1e0   : > { %v1157_v7 = vpop.f32.mrb[88].mxu0 }
 0x1e1   : > { %v4840_v46 = vadd.f32 %v4708_v5, %v1157_v7  ;;  %v1159_v16 = vpop.f32.mrb[89].mxu0 }
 0x1e2   : > { %v1160_v25 = vpop.f32.mrb[90].mxu0 }
 0x1e3   : > { %v4843_v2 = vadd.f32 %v4715_v21, %v1160_v25  ;;  %v1162_v39 = vpop.f32.mrb[91].mxu0 }
 0x1e8   : > { %v1165_v18 = vpop.f32.mrb[92].mxu0 }
 0x1e9   : > { %v4848_v43 = vadd.f32 %v4704_v63, %v1165_v18  ;;  %v1167_v27 = vpop.f32.mrb[93].mxu0 }
 0x1ea   : > { %v1168_v41 = vpop.f32.mrb[94].mxu0 }
 0x1eb   : > { %v4851_v1 = vadd.f32 %v4710_v11, %v1168_v41  ;;  %v1170_v5 = vpop.f32.mrb[95].mxu0  ;;  %v3974_v41 = vld [vmem:[%s4255_s27 + $0x8] sm:$0xff]  }
 0x1f0   : > { %v3598_v21 = vpop.f32.mrb[96].mxu0 }
 0x1f1   : > { %v1215_v16 = vadd.f32 %v3598_v21, %v4657_v17  ;;  %v1206_v25 = vpop.f32.mrb[97].mxu0 }
 0x1f2   : > { %v1207_v39 = vadd.f32 %v1206_v25, %v4642_v8  ;;  %v3599_v9 = vpop.f32.mrb[98].mxu0 }
 0x1f3   : > { %v1218_v63 = vadd.f32 %v3599_v9, %v4664_v22  ;;  %v1209_v18 = vpop.f32.mrb[99].mxu0 }
 0x1f4   : > { %v1210_v27 = vadd.f32 %v1209_v18, %v4651_v13  ;;  %v3975_v13 = vld [vmem:[%s4255_s27 + $0x10] sm:$0xff]  }
 0x1f5   : > { %v1414_v56 = vpack.c.bf16 %v1218_v63, %v1215_v16 }
 0x1f6   : > { %v1413_v11 = vpack.c.bf16 %v1210_v27, %v1207_v39 }
 0x1f8   : > { %v3602_v5 = vpop.f32.mrb[100].mxu0  ;;  %3660 = vmatprep.mubr.bf16.mxu1 %v1413_v11  ;;  %v3978_v11 = vld [vmem:[%s4255_s27 + $0x28] sm:$0xff]  }
 0x1f9   : > { %v1231_v7 = vadd.f32 %v3602_v5, %v4681_v34  ;;  %v1222_v55 = vpop.f32.mrb[101].mxu0  ;;  %3661 = vmatmul.mubr.bf16.vlgmr.msra.gmra.mrb[32].mxu1 %v1414_v56  ;;  %v3976_v34 = vld [vmem:[%s4255_s27 + $0x18] sm:$0xff]  }
 0x1fa   : > { %v1223_v17 = vadd.f32 %v1222_v55, %v4670_v26  ;;  %v3603_v8 = vpop.f32.mrb[102].mxu0  ;;  %3709 = vmatpush3.bf16.msra.mxu1 %v4735_v51 }
 0x1fb   : > { %v1234_v22 = vadd.f32 %v3603_v8, %v4684_v37  ;;  %v1225_v9 = vpop.f32.mrb[103].mxu0  ;;  %3710 = vmatprep.subr.bf16.mxu1 %v3974_v41  ;;  %v3979_v8 = vld [vmem:[%s4255_s27 + $0x30] sm:$0xff]  }
 0x1fc   : > { %v1226_v21 = vadd.f32 %v1225_v9, %v4677_v31 }
 0x1fd   : > { %v1416_v16 = vpack.c.bf16 %v1234_v22, %v1231_v7  ;;  %v3977_v7 = vld [vmem:[%s4255_s27 + $0x20] sm:$0xff]  }
 0x1fe   : > { %v1415_v25 = vpack.c.bf16 %v1226_v21, %v1223_v17  ;;  %3711 = vmatpush3.bf16.msra.mxu1 %v3974_v41  ;;  %v3980_v21 = vld [vmem:[%s4255_s27 + $0x38] sm:$0xff]  }
 0x1ff   : > { %3712 = vmatprep.subr.bf16.mxu1 %v3975_v13 }
 0x200   : > { %v3606_v39 = vpop.f32.mrb[104].mxu0  ;;  %3664 = vmatprep.mubr.bf16.mxu1 %v1415_v25  ;;  %v4000_v25 = vld [vmem:[#allocation2 + $0xb0] sm:$0xff] }
 0x201   : > { %v1247_v55 = vadd.f32 %v3606_v39, %v4699_v48  ;;  %v1238_v56 = vpop.f32.mrb[105].mxu0  ;;  %3665 = vmatmul.mubr.bf16.gmra.mrb[36].mxu1 %v1416_v16  ;;  %v7240_v16 = vpack.c.bf16 %v4763_v54, %v4760_v0  ;;  %v7248_v54 = vpack.c.bf16 %v4827_v60, %v4824_v32  ;;  %v7251_v0 = vpack.c.bf16 %v4851_v1, %v4848_v43  ;;  %v3993_v60 = vld [vmem:[#allocation2 + $0x60] sm:$0xff]  ;;  %v3997_v1 = vld [vmem:[#allocation2 + $0x98] sm:$0xff]  ;;  %v3999_v43 = vld [vmem:[#allocation2 + $0xa8] sm:$0xff] }
 0x202   : > { %v1239_v26 = vadd.f32 %v1238_v56, %v4688_v40  ;;  %v3607_v37 = vpop.f32.mrb[106].mxu0  ;;  %3713 = vmatpush3.bf16.msra.mxu1 %v3975_v13  ;;  %v3994_v32 = vld [vmem:[#allocation2 + $0x80] sm:$0xff] }
 0x203   : > { %v1250_v51 = vadd.f32 %v3607_v37, %v4702_v57  ;;  %v1241_v31 = vpop.f32.mrb[107].mxu0  ;;  %3714 = vmatprep.subr.bf16.mxu1 %v3976_v34 }
 0x204   : > { %v1242_v63 = vadd.f32 %v1241_v31, %v4695_v45 }
 0x205   : > { %v1418_v18 = vpack.c.bf16 %v1250_v51, %v1247_v55 }
 0x206   : > { %v1417_v27 = vpack.c.bf16 %v1242_v63, %v1239_v26  ;;  %3715 = vmatpush3.bf16.msra.mxu1 %v3976_v34  ;;  %v4935_v34 = vld [vmem:[%s221_s24] ss:$0 sm:$0xff] }
 0x207   : > { %3716 = vmatprep.subr.bf16.mxu1 %v3977_v7 }
 0x208   : > { %v3610_v48 = vpop.f32.mrb[108].mxu0  ;;  %3668 = vmatprep.mubr.bf16.mxu1 %v1417_v27 }
 0x209   : > { %v1263_v40 = vadd.f32 %v3610_v48, %v4717_v28  ;;  %v1254_v41 = vpop.f32.mrb[109].mxu0  ;;  %3669 = vmatmul.mubr.bf16.gmra.mrb[40].mxu1 %v1418_v18  ;;  %v7236_v28 = vpack.c.bf16 %v4727_v53, %v4723_v42  ;;  %v7241_v42 = vpack.c.bf16 %v4771_v44, %v4768_v62  ;;  %v7242_v53 = vpack.c.bf16 %v4779_v30, %v4776_v6  ;;  %v3981_v30 = vld [vmem:[#allocation2] sm:$0xff]  ;;  %v3982_v62 = vld [vmem:[#allocation2 + $0x8] sm:$0xff]  ;;  %v3984_v6 = vld [vmem:[#allocation2 + $0x18] sm:$0xff] }
 0x20a   : > { %v1255_v57 = vadd.f32 %v1254_v41, %v4706_v3  ;;  %v3611_v5 = vpop.f32.mrb[110].mxu0  ;;  %3717 = vmatpush3.bf16.msra.mxu1 %v3977_v7  ;;  %v7237_v3 = vpack.c.bf16 %v4738_v36, %v4732_v24  ;;  %v7243_v24 = vpack.c.bf16 %v4787_v49, %v4784_v4  ;;  %v7244_v36 = vpack.c.bf16 %v4795_v38, %v4792_v14  ;;  %v3983_v49 = vld [vmem:[#allocation2 + $0x10] sm:$0xff]  ;;  %v3985_v38 = vld [vmem:[#allocation2 + $0x20] sm:$0xff]  ;;  %v3986_v4 = vld [vmem:[#allocation2 + $0x28] sm:$0xff] }
 0x20b   : > { %v1266_v17 = vadd.f32 %v3611_v5, %v4720_v35  ;;  %v1257_v45 = vpop.f32.mrb[111].mxu0  ;;  %3718 = vmatprep.subr.bf16.mxu1 %v3978_v11  ;;  %v7239_v35 = vpack.c.bf16 %v4755_v58, %v4752_v33  ;;  %v7245_v58 = vpack.c.bf16 %v4803_v50, %v4800_v12  ;;  %v7249_v33 = vpack.c.bf16 %v4835_v59, %v4832_v29  ;;  %v3987_v50 = vld [vmem:[#allocation2 + $0x30] sm:$0xff]  ;;  %v3988_v14 = vld [vmem:[#allocation2 + $0x38] sm:$0xff]  ;;  %v3990_v12 = vld [vmem:[#allocation2 + $0x48] sm:$0xff] }
 0x20c   : > { %v1258_v22 = vadd.f32 %v1257_v45, %v4713_v19  ;;  %v7238_v19 = vpack.c.bf16 %v4747_v61, %v4744_v47  ;;  %v7246_v47 = vpack.c.bf16 %v4811_v10, %v4808_v23  ;;  %v7247_v61 = vpack.c.bf16 %v4819_v15, %v4816_v20  ;;  %v3989_v10 = vld [vmem:[#allocation2 + $0x40] sm:$0xff]  ;;  %v3991_v15 = vld [vmem:[#allocation2 + $0x50] sm:$0xff]  ;;  %v3992_v23 = vld [vmem:[#allocation2 + $0x58] sm:$0xff] }
 0x20d   : > { %v1420_v9 = vpack.c.bf16 %v1266_v17, %v1263_v40  ;;  %v7250_v44 = vpack.c.bf16 %v4843_v2, %v4840_v46  ;;  %v7252_v20 = vld [vmem:[#allocation3_spill] sm:$0xff]  ;;  %v7253_v59 = vld [vmem:[#allocation4_spill] sm:$0xff]  ;;  %v3996_v29 = vld [vmem:[#allocation2 + $0x90] sm:$0xff] }
 0x20e   : > { %v1419_v13 = vpack.c.bf16 %v1258_v22, %v1255_v57  ;;  %3719 = vmatpush3.bf16.msra.mxu1 %v3978_v11  ;;  %v3995_v2 = vld [vmem:[#allocation2 + $0x88] sm:$0xff]  ;;  %v3998_v46 = vld [vmem:[#allocation2 + $0xa0] sm:$0xff] }
 0x20f   : > { %3720 = vmatprep.subr.bf16.mxu1 %v3979_v8 }
 0x210   : > { %3672 = vmatprep.mubr.bf16.mxu1 %v1419_v13 }
 0x211   : > { %3673 = vmatmul.mubr.bf16.gmra.mrb[44].mxu1 %v1420_v9 }
 0x212   : > { %3676 = vmatprep.mubr.bf16.mxu1 %v7236_v28  ;;  %3721 = vmatpush3.bf16.msra.mxu1 %v3979_v8 }
 0x213   : > { %3722 = vmatprep.subr.bf16.mxu1 %v3980_v21 }
 0x216   : > { %3723 = vmatpush3.bf16.msra.mxu1 %v3980_v21 }
 0x219   : > { %3677 = vmatmul.mubr.bf16.gmra.mrb[48].mxu1 %v7237_v3 }
 0x21a   : > { %3680 = vmatprep.mubr.bf16.mxu1 %v7238_v19 }
 0x221   : > { %3681 = vmatmul.mubr.bf16.gmra.mrb[52].mxu1 %v7239_v35 }
 0x222   : > { %3684 = vmatprep.mubr.bf16.mxu1 %v7240_v16 }
 0x229   : > { %3685 = vmatmul.mubr.bf16.gmra.mrb[56].mxu1 %v7241_v42 }
 0x22a   : > { %3688 = vmatprep.mubr.bf16.mxu1 %v7242_v53 }
 0x231   : > { %3689 = vmatmul.mubr.bf16.gmra.mrb[60].mxu1 %v7243_v24 }
 0x232   : > { %3692 = vmatprep.mubr.bf16.mxu1 %v7244_v36 }
 0x239   : > { %3693 = vmatmul.mubr.bf16.gmra.mrb[64].mxu1 %v7245_v58 }
 0x23a   : > { %3696 = vmatprep.mubr.bf16.mxu1 %v7246_v47 }
 0x241   : > { %3697 = vmatmul.mubr.bf16.gmra.mrb[68].mxu1 %v7247_v61 }
 0x242   : > { %3700 = vmatprep.mubr.bf16.mxu1 %v7248_v54 }
 0x249   : > { %3701 = vmatmul.mubr.bf16.gmra.mrb[72].mxu1 %v7249_v33 }
 0x24a   : > { %3704 = vmatprep.mubr.bf16.mxu1 %v7250_v44 }
 0x251   : > { %3705 = vmatmul.mubr.bf16.gmra.mrb[76].mxu1 %v7251_v0 }
 0x252   : > { %3724 = vmatprep.mubr.bf16.mxu1 %v3981_v30 }
 0x259   : > { %3725 = vmatmul.mubr.bf16.vlgmr.msra.gmra.mrb[32].mxu1 %v3982_v62 }
 0x25a   : > { %3728 = vmatprep.mubr.bf16.mxu1 %v3983_v49 }
 0x261   : > { %3729 = vmatmul.mubr.bf16.gmra.mrb[36].mxu1 %v3984_v6 }
 0x262   : > { %3732 = vmatprep.mubr.bf16.mxu1 %v3985_v38 }
 0x269   : > { %3733 = vmatmul.mubr.bf16.gmra.mrb[40].mxu1 %v3986_v4 }
 0x26a   : > { %3736 = vmatprep.mubr.bf16.mxu1 %v3987_v50 }
 0x271   : > { %3737 = vmatmul.mubr.bf16.gmra.mrb[44].mxu1 %v3988_v14 }
 0x272   : > { %3740 = vmatprep.mubr.bf16.mxu1 %v3989_v10 }
 0x279   : > { %3741 = vmatmul.mubr.bf16.gmra.mrb[48].mxu1 %v3990_v12 }
 0x27a   : > { %3744 = vmatprep.mubr.bf16.mxu1 %v3991_v15 }
 0x281   : > { %3745 = vmatmul.mubr.bf16.gmra.mrb[52].mxu1 %v3992_v23 }
 0x282   : > { %3748 = vmatprep.mubr.bf16.mxu1 %v3993_v60 }
 0x289   : > { %3749 = vmatmul.mubr.bf16.gmra.mrb[56].mxu1 %v4393_v52  ;;  %v4001_v52 = vld [vmem:[#allocation2 + $0xb8] sm:$0xff] }
 0x28a   : > { %3752 = vmatprep.mubr.bf16.mxu1 %v7252_v20 }
 0x291   : > { %3753 = vmatmul.mubr.bf16.gmra.mrb[60].mxu1 %v7253_v59 }
 0x292   : > { %3756 = vmatprep.mubr.bf16.mxu1 %v3994_v32 }
 0x299   : > { %3757 = vmatmul.mubr.bf16.gmra.mrb[64].mxu1 %v3995_v2 }
 0x29a   : > { %3760 = vmatprep.mubr.bf16.mxu1 %v3996_v29 }
 0x2a1   : > { %3761 = vmatmul.mubr.bf16.gmra.mrb[68].mxu1 %v3997_v1 }
 0x2a2   : > { %3764 = vmatprep.mubr.bf16.mxu1 %v3998_v46 }
 0x2a9   : > { %3765 = vmatmul.mubr.bf16.gmra.mrb[72].mxu1 %v3999_v43 }
 0x2aa   : > { %3768 = vmatprep.mubr.bf16.mxu1 %v4000_v25 }
 0x2b1   : > { %3769 = vmatmul.mubr.bf16.gmra.mrb[76].mxu1 %v4001_v52 }
 0x32c   : > { %v3726_v39 = vpop.f32.mrb[32].mxu1 }
 0x32d   : > { %v4938_v55 = vadd.f32 %v3726_v39, %v4935_v34  ;;  %v1808_v56 = vpop.f32.mrb[33].mxu1 }
 0x32e   : > { %v4941_v26 = vadd.f32 %v4935_v34, %v1808_v56  ;;  %v3727_v37 = vpop.f32.mrb[34].mxu1 }
 0x32f   : > { %7254 = vst [vmem:[#allocation3_spill] sm:$0xff] %v4938_v55  ;;  %v4944_v51 = vadd.f32 %v3727_v37, %v4935_v34  ;;  %v1811_v31 = vpop.f32.mrb[35].mxu1 }
 0x330   : > { %7255 = vst [vmem:[#allocation4_spill] sm:$0xff] %v4941_v26  ;;  %v4947_v7 = vadd.f32 %v4935_v34, %v1811_v31 }
 0x331   : > { %7256 = vst [vmem:[#allocation5_spill] sm:$0xff] %v4944_v51 }
 0x332   : > { %7257 = vst [vmem:[#allocation6_spill] sm:$0xff] %v4947_v7 }
 0x334   : > { %v3730_v63 = vpop.f32.mrb[36].mxu1 }
 0x335   : > { %v4950_v18 = vadd.f32 %v3730_v63, %v4935_v34  ;;  %v1824_v27 = vpop.f32.mrb[37].mxu1 }
 0x336   : > { %v4953_v11 = vadd.f32 %v4935_v34, %v1824_v27  ;;  %v3731_v48 = vpop.f32.mrb[38].mxu1 }
 0x337   : > { %7258 = vst [vmem:[#allocation7_spill] sm:$0xff] %v4950_v18  ;;  %v4956_v40 = vadd.f32 %v3731_v48, %v4935_v34  ;;  %v1827_v41 = vpop.f32.mrb[39].mxu1 }
 0x338   : > { %7259 = vst [vmem:[#allocation8_spill] sm:$0xff] %v4953_v11  ;;  %v4959_v57 = vadd.f32 %v4935_v34, %v1827_v41 }
 0x339   : > { %7260 = vst [vmem:[#allocation9_spill] sm:$0xff] %v4956_v40 }
 0x33a   : > { %7261 = vst [vmem:[#allocation10_spill] sm:$0xff] %v4959_v57 }
 0x33c   : > { %v3734_v5 = vpop.f32.mrb[40].mxu1 }
 0x33d   : > { %v4962_v17 = vadd.f32 %v3734_v5, %v4935_v34  ;;  %v1840_v45 = vpop.f32.mrb[41].mxu1 }
 0x33e   : > { %v4965_v8 = vadd.f32 %v4935_v34, %v1840_v45  ;;  %v3735_v22 = vpop.f32.mrb[42].mxu1 }
 0x33f   : > { %7262 = vst [vmem:[#allocation11_spill] sm:$0xff] %v4962_v17  ;;  %v4968_v9 = vadd.f32 %v3735_v22, %v4935_v34  ;;  %v1843_v13 = vpop.f32.mrb[43].mxu1 }
 0x340   : > { %7263 = vst [vmem:[#allocation12_spill] sm:$0xff] %v4965_v8  ;;  %v4971_v21 = vadd.f32 %v4935_v34, %v1843_v13 }
 0x341   : > { %7264 = vst [vmem:[#allocation13_spill] sm:$0xff] %v4968_v9 }
 0x342   : > { %7265 = vst [vmem:[#allocation14_spill] sm:$0xff] %v4971_v21 }
 0x344   : > { %v3738_v28 = vpop.f32.mrb[44].mxu1 }
 0x345   : > { %v4974_v3 = vadd.f32 %v3738_v28, %v4935_v34  ;;  %v1856_v19 = vpop.f32.mrb[45].mxu1 }
 0x346   : > { %v4977_v35 = vadd.f32 %v4935_v34, %v1856_v19  ;;  %v3739_v16 = vpop.f32.mrb[46].mxu1 }
 0x347   : > { %7266 = vst [vmem:[#allocation15_spill] sm:$0xff] %v4974_v3  ;;  %v4980_v42 = vadd.f32 %v3739_v16, %v4935_v34  ;;  %v1859_v53 = vpop.f32.mrb[47].mxu1 }
 0x348   : > { %7267 = vst [vmem:[#allocation16_spill] sm:$0xff] %v4977_v35  ;;  %v4983_v24 = vadd.f32 %v4935_v34, %v1859_v53 }
 0x349   : > { %7268 = vst [vmem:[#allocation17_spill] sm:$0xff] %v4980_v42 }
 0x34a   : > { %7269 = vst [vmem:[#allocation18_spill] sm:$0xff] %v4983_v24 }
 0x34c   : > { %v3742_v36 = vpop.f32.mrb[48].mxu1 }
 0x34d   : > { %v4986_v58 = vadd.f32 %v3742_v36, %v4935_v34  ;;  %v1872_v47 = vpop.f32.mrb[49].mxu1 }
 0x34e   : > { %v4989_v61 = vadd.f32 %v4935_v34, %v1872_v47  ;;  %v3743_v54 = vpop.f32.mrb[50].mxu1 }
 0x34f   : > { %7270 = vst [vmem:[#allocation19_spill] sm:$0xff] %v4986_v58  ;;  %v4992_v33 = vadd.f32 %v3743_v54, %v4935_v34  ;;  %v1875_v44 = vpop.f32.mrb[51].mxu1 }
 0x350   : > { %7271 = vst [vmem:[#allocation20_spill] sm:$0xff] %v4989_v61  ;;  %v4995_v0 = vadd.f32 %v4935_v34, %v1875_v44 }
 0x351   : > { %7272 = vst [vmem:[#allocation21_spill] sm:$0xff] %v4992_v33 }
 0x352   : > { %7273 = vst [vmem:[#allocation22_spill] sm:$0xff] %v4995_v0 }
 0x354   : > { %v3746_v30 = vpop.f32.mrb[52].mxu1 }
 0x355   : > { %v4998_v62 = vadd.f32 %v3746_v30, %v4935_v34  ;;  %v1888_v49 = vpop.f32.mrb[53].mxu1 }
 0x356   : > { %v5001_v6 = vadd.f32 %v4935_v34, %v1888_v49  ;;  %v3747_v38 = vpop.f32.mrb[54].mxu1 }
 0x357   : > { %7274 = vst [vmem:[#allocation23_spill] sm:$0xff] %v4998_v62  ;;  %v5004_v4 = vadd.f32 %v3747_v38, %v4935_v34  ;;  %v1891_v50 = vpop.f32.mrb[55].mxu1 }
 0x358   : > { %7275 = vst [vmem:[#allocation24_spill] sm:$0xff] %v5001_v6  ;;  %v5007_v14 = vadd.f32 %v4935_v34, %v1891_v50 }
 0x359   : > { %7276 = vst [vmem:[#allocation25_spill] sm:$0xff] %v5004_v4 }
 0x35a   : > { %7277 = vst [vmem:[#allocation26_spill] sm:$0xff] %v5007_v14 }
 0x35c   : > { %v3750_v10 = vpop.f32.mrb[56].mxu1 }
 0x35d   : > { %v5010_v12 = vadd.f32 %v3750_v10, %v4935_v34  ;;  %v1904_v15 = vpop.f32.mrb[57].mxu1 }
 0x35e   : > { %v5013_v23 = vadd.f32 %v4935_v34, %v1904_v15  ;;  %v3751_v60 = vpop.f32.mrb[58].mxu1 }
 0x35f   : > { %7278 = vst [vmem:[#allocation27_spill] sm:$0xff] %v5010_v12  ;;  %v5016_v20 = vadd.f32 %v3751_v60, %v4935_v34  ;;  %v1907_v59 = vpop.f32.mrb[59].mxu1 }
 0x360   : > { %7279 = vst [vmem:[#allocation28_spill] sm:$0xff] %v5013_v23  ;;  %v5019_v32 = vadd.f32 %v4935_v34, %v1907_v59 }
 0x361   : > { %7280 = vst [vmem:[#allocation29_spill] sm:$0xff] %v5016_v20 }
 0x362   : > { %7281 = vst [vmem:[#allocation30_spill] sm:$0xff] %v5019_v32 }
 0x364   : > { %v3754_v2 = vpop.f32.mrb[60].mxu1 }
 0x365   : > { %v5022_v29 = vadd.f32 %v3754_v2, %v4935_v34  ;;  %v1920_v1 = vpop.f32.mrb[61].mxu1 }
 0x366   : > { %v5025_v46 = vadd.f32 %v4935_v34, %v1920_v1  ;;  %v3755_v43 = vpop.f32.mrb[62].mxu1 }
 0x367   : > { %7282 = vst [vmem:[#allocation31_spill] sm:$0xff] %v5022_v29  ;;  %v5028_v25 = vadd.f32 %v3755_v43, %v4935_v34  ;;  %v1923_v52 = vpop.f32.mrb[63].mxu1 }
 0x368   : > { %7283 = vst [vmem:[#allocation32_spill] sm:$0xff] %v5025_v46  ;;  %v5031_v39 = vadd.f32 %v4935_v34, %v1923_v52 }
 0x369   : > { %7284 = vst [vmem:[#allocation33_spill] sm:$0xff] %v5028_v25 }
 0x36a   : > { %7285 = vst [vmem:[#allocation34_spill] sm:$0xff] %v5031_v39 }
 0x36c   : > { %v3758_v56 = vpop.f32.mrb[64].mxu1 }
 0x36d   : > { %v5034_v37 = vadd.f32 %v3758_v56, %v4935_v34  ;;  %v1936_v31 = vpop.f32.mrb[65].mxu1 }
 0x36e   : > { %v5037_v63 = vadd.f32 %v4935_v34, %v1936_v31  ;;  %v3759_v27 = vpop.f32.mrb[66].mxu1 }
 0x36f   : > { %7286 = vst [vmem:[#allocation35_spill] sm:$0xff] %v5034_v37  ;;  %v5040_v48 = vadd.f32 %v3759_v27, %v4935_v34  ;;  %v1939_v41 = vpop.f32.mrb[67].mxu1 }
 0x370   : > { %7287 = vst [vmem:[#allocation36_spill] sm:$0xff] %v5037_v63  ;;  %v5043_v5 = vadd.f32 %v4935_v34, %v1939_v41 }
 0x371   : > { %7288 = vst [vmem:[#allocation37_spill] sm:$0xff] %v5040_v48 }
 0x372   : > { %7289 = vst [vmem:[#allocation38_spill] sm:$0xff] %v5043_v5 }
 0x374   : > { %v3762_v45 = vpop.f32.mrb[68].mxu1 }
 0x375   : > { %v5046_v22 = vadd.f32 %v3762_v45, %v4935_v34  ;;  %v1952_v13 = vpop.f32.mrb[69].mxu1 }
 0x376   : > { %v5049_v28 = vadd.f32 %v4935_v34, %v1952_v13  ;;  %v3763_v19 = vpop.f32.mrb[70].mxu1 }
 0x377   : > { %7290 = vst [vmem:[#allocation39_spill] sm:$0xff] %v5046_v22  ;;  %v5052_v16 = vadd.f32 %v3763_v19, %v4935_v34  ;;  %v1955_v53 = vpop.f32.mrb[71].mxu1 }
 0x378   : > { %7291 = vst [vmem:[#allocation40_spill] sm:$0xff] %v5049_v28  ;;  %v5055_v36 = vadd.f32 %v4935_v34, %v1955_v53 }
 0x379   : > { %7292 = vst [vmem:[#allocation41_spill] sm:$0xff] %v5052_v16 }
 0x37a   : > { %7293 = vst [vmem:[#allocation42_spill] sm:$0xff] %v5055_v36 }
 0x37c   : > { %v3766_v47 = vpop.f32.mrb[72].mxu1 }
 0x37d   : > { %v5058_v54 = vadd.f32 %v3766_v47, %v4935_v34  ;;  %v1968_v44 = vpop.f32.mrb[73].mxu1 }
 0x37e   : > { %v5061_v30 = vadd.f32 %v4935_v34, %v1968_v44  ;;  %v3767_v49 = vpop.f32.mrb[74].mxu1 }
 0x37f   : > { %7294 = vst [vmem:[#allocation43_spill] sm:$0xff] %v5058_v54  ;;  %v5064_v38 = vadd.f32 %v3767_v49, %v4935_v34  ;;  %v1971_v50 = vpop.f32.mrb[75].mxu1 }
 0x380   : > { %7295 = vst [vmem:[#allocation44_spill] sm:$0xff] %v5061_v30  ;;  %v5067_v10 = vadd.f32 %v4935_v34, %v1971_v50 }
 0x381   : > { %7296 = vst [vmem:[#allocation45_spill] sm:$0xff] %v5064_v38 }
 0x382   : > { %7297 = vst [vmem:[#allocation46_spill] sm:$0xff] %v5067_v10 }
 0x384   : > { %v3770_v15 = vpop.f32.mrb[76].mxu1  ;;  %2057 = sbr.rel (%p3478_p5) target bundleno = 1348 (0x544), region = 44 }
 0x385   : > { %v5070_v60 = vadd.f32 %v3770_v15, %v4935_v34  ;;  %v1984_v59 = vpop.f32.mrb[77].mxu1 }
 0x386   : > { %v5073_v2 = vadd.f32 %v4935_v34, %v1984_v59  ;;  %v3771_v1 = vpop.f32.mrb[78].mxu1 }
 0x387   : > { %7298 = vst [vmem:[#allocation47_spill] sm:$0xff] %v5070_v60  ;;  %v5076_v43 = vadd.f32 %v3771_v1, %v4935_v34  ;;  %v1987_v52 = vpop.f32.mrb[79].mxu1 }
 0x388   : > { %7299 = vst [vmem:[#allocation48_spill] sm:$0xff] %v5073_v2  ;;  %v5079_v56 = vadd.f32 %v4935_v34, %v1987_v52 }
 0x389   : > { %7300 = vst [vmem:[#allocation49_spill] sm:$0xff] %v5076_v43 }
 0x38a   : > { %7301 = vst [vmem:[#allocation50_spill] sm:$0xff] %v5079_v56 }
 0x38b   : > { %v5083_v31 = vmax.f32 %v4938_v55, 0.0  ;;  %v5086_v27 = vmax.f32 %v4941_v26, 0.0  ;;  %v5091_v41 = vmax.f32 %v4944_v51, 0.0  ;;  %v5094_v45 = vmax.f32 %v4947_v7, 0.0  ;;  %p3479_p6 = scmp.ne.s32.totalorder %s4239_s19, 1 }
 0x38c   : > { %v5099_v34 = vmax.f32 %v4959_v57, 0.0  ;;  %v5102_v13 = vmax.f32 %v4953_v11, 0.0  ;;  %v5107_v19 = vmax.f32 %v4956_v40, 0.0  ;;  %v5110_v53 = vmax.f32 %v4950_v18, 0.0 }
 0x38d   : > { %7302 = vst [vmem:[#allocation51_spill] sm:$0xff] %v5083_v31  ;;  %7303 = vst [vmem:[#allocation52_spill] sm:$0xff] %v5086_v27  ;;  %2110 = vadd.xlane.f32.xlu1 %v5083_v31  ;;  %2106 = vadd.xlane.f32.xlu0 %v5086_v27  ;;  %v5115_v47 = vmax.f32 %v4971_v21, 0.0  ;;  %v5118_v44 = vmax.f32 %v4965_v8, 0.0  ;;  %v5123_v49 = vmax.f32 %v4968_v9, 0.0  ;;  %v5126_v50 = vmax.f32 %v4962_v17, 0.0 }
 0x38e   : > { %7304 = vst [vmem:[#allocation53_spill] sm:$0xff] %v5091_v41  ;;  %7305 = vst [vmem:[#allocation54_spill] sm:$0xff] %v5099_v34  ;;  %v5131_v15 = vmax.f32 %v4983_v24, 0.0  ;;  %v5134_v59 = vmax.f32 %v4977_v35, 0.0  ;;  %v5139_v1 = vmax.f32 %v4980_v42, 0.0  ;;  %v5142_v52 = vmax.f32 %v4974_v3, 0.0 }
 0x38f   : > { %7306 = vst [vmem:[#allocation55_spill] sm:$0xff] %v5102_v13  ;;  %7307 = vst [vmem:[#allocation56_spill] sm:$0xff] %v5110_v53  ;;  %v5147_v24 = vmax.f32 %v4995_v0, 0.0  ;;  %v5150_v35 = vmax.f32 %v4989_v61, 0.0  ;;  %v5155_v42 = vmax.f32 %v4992_v33, 0.0  ;;  %v5158_v3 = vmax.f32 %v4986_v58, 0.0 }
 0x390   : > { %7308 = vst [vmem:[#allocation57_spill] sm:$0xff] %v5118_v44  ;;  %7309 = vst [vmem:[#allocation58_spill] sm:$0xff] %v5123_v49  ;;  %v5163_v0 = vmax.f32 %v5007_v14, 0.0  ;;  %v5166_v61 = vmax.f32 %v5001_v6, 0.0  ;;  %v5171_v33 = vmax.f32 %v5004_v4, 0.0  ;;  %v5174_v58 = vmax.f32 %v4998_v62, 0.0 }
 0x391   : > { %2112 = vadd.xlane.f32.xlu1 %v5091_v41  ;;  %2108 = vadd.xlane.f32.xlu0 %v5094_v45  ;;  %7310 = vst [vmem:[#allocation59_spill] sm:$0xff] %v5126_v50  ;;  %7311 = vst [vmem:[#allocation60_spill] sm:$0xff] %v5131_v15  ;;  %v5179_v14 = vmax.f32 %v5019_v32, 0.0  ;;  %v5182_v6 = vmax.f32 %v5013_v23, 0.0  ;;  %v5187_v4 = vmax.f32 %v5016_v20, 0.0  ;;  %v5190_v62 = vmax.f32 %v5010_v12, 0.0 }
 0x392   : > { %7312 = vst [vmem:[#allocation61_spill] sm:$0xff] %v5134_v59  ;;  %7313 = vst [vmem:[#allocation62_spill] sm:$0xff] %v5139_v1  ;;  %v5195_v32 = vmax.f32 %v5031_v39, 0.0  ;;  %v5198_v23 = vmax.f32 %v5025_v46, 0.0  ;;  %v5203_v20 = vmax.f32 %v5028_v25, 0.0  ;;  %v5206_v12 = vmax.f32 %v5022_v29, 0.0 }
 0x393   : > { %7314 = vst [vmem:[#allocation63_spill] sm:$0xff] %v5142_v52  ;;  %7315 = vst [vmem:[#allocation64_spill] sm:$0xff] %v5147_v24  ;;  %v5211_v39 = vmax.f32 %v5043_v5, 0.0  ;;  %v5214_v46 = vmax.f32 %v5037_v63, 0.0  ;;  %v5219_v25 = vmax.f32 %v5040_v48, 0.0  ;;  %v5222_v29 = vmax.f32 %v5034_v37, 0.0 }
 0x394   : > { %7316 = vst [vmem:[#allocation65_spill] sm:$0xff] %v5150_v35  ;;  %7317 = vst [vmem:[#allocation66_spill] sm:$0xff] %v5155_v42  ;;  %v5227_v5 = vmax.f32 %v5055_v36, 0.0  ;;  %v5230_v63 = vmax.f32 %v5049_v28, 0.0  ;;  %v5235_v48 = vmax.f32 %v5052_v16, 0.0  ;;  %v5238_v37 = vmax.f32 %v5046_v22, 0.0 }
 0x395   : > { %2116 = vadd.xlane.f32.xlu1 %v5099_v34  ;;  %2114 = vadd.xlane.f32.xlu0 %v5102_v13  ;;  %7318 = vst [vmem:[#allocation67_spill] sm:$0xff] %v5158_v3  ;;  %7319 = vst [vmem:[#allocation68_spill] sm:$0xff] %v5163_v0  ;;  %v5243_v36 = vmax.f32 %v5067_v10, 0.0  ;;  %v5246_v28 = vmax.f32 %v5061_v30, 0.0  ;;  %v5251_v16 = vmax.f32 %v5064_v38, 0.0  ;;  %v5254_v22 = vmax.f32 %v5058_v54, 0.0 }
 0x396   : > { %7320 = vst [vmem:[#allocation69_spill] sm:$0xff] %v5166_v61  ;;  %7321 = vst [vmem:[#allocation70_spill] sm:$0xff] %v5171_v33  ;;  %v5259_v10 = vmax.f32 %v5079_v56, 0.0  ;;  %v5262_v30 = vmax.f32 %v5073_v2, 0.0  ;;  %v5267_v38 = vmax.f32 %v5076_v43, 0.0  ;;  %v5270_v54 = vmax.f32 %v5070_v60, 0.0 }
 0x397   : > { %7322 = vst [vmem:[#allocation71_spill] sm:$0xff] %v5174_v58  ;;  %7323 = vst [vmem:[#allocation72_spill] sm:$0xff] %v5179_v14  ;;  %v2251_v56 = vmul.f32 %v5094_v45, %v5094_v45  ;;  %v2250_v2 = vmul.f32 %v5086_v27, %v5086_v27  ;;  %v2253_v9 = vmul.f32 %v5091_v41, %v5091_v41 }
 0x398   : > { %7324 = vst [vmem:[#allocation73_spill] sm:$0xff] %v5182_v6  ;;  %7325 = vst [vmem:[#allocation74_spill] sm:$0xff] %v5187_v4  ;;  %v2252_v43 = vmul.f32 %v5083_v31, %v5083_v31  ;;  %v2255_v60 = vmul.f32 %v5099_v34, %v5099_v34  ;;  %v2254_v17 = vmul.f32 %v5102_v13, %v5102_v13 }
 0x399   : > { %2120 = vadd.xlane.f32.xlu1 %v5107_v19  ;;  %2118 = vadd.xlane.f32.xlu0 %v5110_v53  ;;  %7326 = vst [vmem:[#allocation75_spill] sm:$0xff] %v5190_v62  ;;  %7327 = vst [vmem:[#allocation76_spill] sm:$0xff] %v5195_v32  ;;  %v2279_v40 = vmul.f32 %v5195_v32, %v5195_v32  ;;  %v2278_v18 = vmul.f32 %v5198_v23, %v5198_v23 }
 0x39a   : > { %7328 = vst [vmem:[#allocation77_spill] sm:$0xff] %v5198_v23  ;;  %7329 = vst [vmem:[#allocation78_spill] sm:$0xff] %v5203_v20  ;;  %v2281_v57 = vmul.f32 %v5203_v20, %v5203_v20  ;;  %v2280_v11 = vmul.f32 %v5206_v12, %v5206_v12  ;;  %v2283_v51 = vmul.f32 %v5211_v39, %v5211_v39 }
 0x39b   : > { %7330 = vst [vmem:[#allocation79_spill] sm:$0xff] %v5206_v12  ;;  %7331 = vst [vmem:[#allocation80_spill] sm:$0xff] %v5211_v39  ;;  %v2282_v55 = vmul.f32 %v5214_v46, %v5214_v46  ;;  %v2285_v7 = vmul.f32 %v5219_v25, %v5219_v25  ;;  %v2284_v26 = vmul.f32 %v5222_v29, %v5222_v29 }
 0x39c   : > { %7332 = vst [vmem:[#allocation81_spill] sm:$0xff] %v5214_v46  ;;  %7333 = vst [vmem:[#allocation82_spill] sm:$0xff] %v5219_v25 }
 0x39d   : > { %2124 = vadd.xlane.f32.xlu1 %v5115_v47  ;;  %2122 = vadd.xlane.f32.xlu0 %v5118_v44  ;;  %7334 = vst [vmem:[#allocation83_spill] sm:$0xff] %v5222_v29  ;;  %7335 = vst [vmem:[#allocation84_spill] sm:$0xff] %v5227_v5 }
 0x39e   : > { %7336 = vst [vmem:[#allocation85_spill] sm:$0xff] %v5230_v63  ;;  %7337 = vst [vmem:[#allocation86_spill] sm:$0xff] %v5235_v48 }
 0x39f   : > { %7338 = vst [vmem:[#allocation87_spill] sm:$0xff] %v5238_v37  ;;  %7339 = vst [vmem:[#allocation88_spill] sm:$0xff] %v5243_v36 }
 0x3a0   : > { %7340 = vst [vmem:[#allocation89_spill] sm:$0xff] %v5246_v28  ;;  %7341 = vst [vmem:[#allocation90_spill] sm:$0xff] %v5251_v16 }
 0x3a1   : > { %2128 = vadd.xlane.f32.xlu1 %v5123_v49  ;;  %2126 = vadd.xlane.f32.xlu0 %v5126_v50  ;;  %7342 = vst [vmem:[#allocation91_spill] sm:$0xff] %v5254_v22  ;;  %7343 = vst [vmem:[#allocation92_spill] sm:$0xff] %v5259_v10 }
 0x3a2   : > { %7344 = vst [vmem:[#allocation93_spill] sm:$0xff] %v5262_v30  ;;  %7345 = vst [vmem:[#allocation94_spill] sm:$0xff] %v5267_v38 }
 0x3a3   : > { %7346 = vst [vmem:[#allocation95_spill] sm:$0xff] %v5270_v54 }
 0x3a5   : > { %2132 = vadd.xlane.f32.xlu1 %v5131_v15  ;;  %2130 = vadd.xlane.f32.xlu0 %v5134_v59 }
 0x3a9   : > { %2136 = vadd.xlane.f32.xlu1 %v5139_v1  ;;  %2134 = vadd.xlane.f32.xlu0 %v5142_v52 }
 0x3ad   : > { %2140 = vadd.xlane.f32.xlu1 %v5147_v24  ;;  %2138 = vadd.xlane.f32.xlu0 %v5150_v35 }
 0x3b1   : > { %2144 = vadd.xlane.f32.xlu1 %v5155_v42  ;;  %2142 = vadd.xlane.f32.xlu0 %v5158_v3 }
 0x3b5   : > { %2148 = vadd.xlane.f32.xlu1 %v5163_v0  ;;  %2146 = vadd.xlane.f32.xlu0 %v5166_v61 }
 0x3b9   : > { %2152 = vadd.xlane.f32.xlu1 %v5171_v33  ;;  %2150 = vadd.xlane.f32.xlu0 %v5174_v58 }
 0x3bd   : > { %2156 = vadd.xlane.f32.xlu1 %v5179_v14  ;;  %2154 = vadd.xlane.f32.xlu0 %v5182_v6 }
 0x3c1   : > { %2160 = vadd.xlane.f32.xlu1 %v5187_v4  ;;  %2158 = vadd.xlane.f32.xlu0 %v5190_v62 }
 0x3c5   : > { %2164 = vadd.xlane.f32.xlu1 %v5195_v32  ;;  %2162 = vadd.xlane.f32.xlu0 %v5198_v23 }
 0x3c9   : > { %2168 = vadd.xlane.f32.xlu1 %v5203_v20  ;;  %2166 = vadd.xlane.f32.xlu0 %v5206_v12 }
 0x3cd   : > { %2172 = vadd.xlane.f32.xlu1 %v5211_v39  ;;  %2170 = vadd.xlane.f32.xlu0 %v5214_v46  ;;  %v2287_v46 = vmul.f32 %v5227_v5, %v5227_v5  ;;  %v2286_v39 = vmul.f32 %v5230_v63, %v5230_v63 }
 0x3d1   : > { %2176 = vadd.xlane.f32.xlu1 %v5219_v25  ;;  %2174 = vadd.xlane.f32.xlu0 %v5222_v29  ;;  %v2289_v29 = vmul.f32 %v5235_v48, %v5235_v48  ;;  %v2288_v25 = vmul.f32 %v5238_v37, %v5238_v37 }
 0x3d5   : > { %2180 = vadd.xlane.f32.xlu1 %v5227_v5  ;;  %2178 = vadd.xlane.f32.xlu0 %v5230_v63  ;;  %v2291_v63 = vmul.f32 %v5243_v36, %v5243_v36  ;;  %v2290_v5 = vmul.f32 %v5246_v28, %v5246_v28 }
 0x3d9   : > { %2184 = vadd.xlane.f32.xlu1 %v5235_v48  ;;  %2182 = vadd.xlane.f32.xlu0 %v5238_v37  ;;  %v2293_v37 = vmul.f32 %v5251_v16, %v5251_v16  ;;  %v2292_v48 = vmul.f32 %v5254_v22, %v5254_v22 }
 0x3dd   : > { %2188 = vadd.xlane.f32.xlu1 %v5243_v36  ;;  %2186 = vadd.xlane.f32.xlu0 %v5246_v28  ;;  %v2295_v28 = vmul.f32 %v5259_v10, %v5259_v10  ;;  %v2294_v36 = vmul.f32 %v5262_v30, %v5262_v30 }
 0x3e1   : > { %2192 = vadd.xlane.f32.xlu1 %v5251_v16  ;;  %2190 = vadd.xlane.f32.xlu0 %v5254_v22  ;;  %v2297_v22 = vmul.f32 %v5267_v38, %v5267_v38  ;;  %v2296_v16 = vmul.f32 %v5270_v54, %v5270_v54 }
 0x3e5   : > { %2196 = vadd.xlane.f32.xlu1 %v5259_v10  ;;  %2194 = vadd.xlane.f32.xlu0 %v5262_v30 }
 0x3e9   : > { %2200 = vadd.xlane.f32.xlu1 %v5267_v38  ;;  %2198 = vadd.xlane.f32.xlu0 %v5270_v54 }
 0x3ed   : > { %2300 = vadd.xlane.f32.xlu1 %v2251_v56  ;;  %2298 = vadd.xlane.f32.xlu0 %v2250_v2  ;;  %v2257_v56 = vmul.f32 %v5107_v19, %v5107_v19  ;;  %v2256_v2 = vmul.f32 %v5110_v53, %v5110_v53 }
 0x3f1   : > { %2304 = vadd.xlane.f32.xlu1 %v2253_v9  ;;  %2302 = vadd.xlane.f32.xlu0 %v2252_v43  ;;  %v2259_v9 = vmul.f32 %v5115_v47, %v5115_v47  ;;  %v2258_v43 = vmul.f32 %v5118_v44, %v5118_v44 }
 0x3f5   : > { %2308 = vadd.xlane.f32.xlu1 %v2255_v60  ;;  %2306 = vadd.xlane.f32.xlu0 %v2254_v17  ;;  %v2261_v60 = vmul.f32 %v5123_v49, %v5123_v49  ;;  %v2260_v17 = vmul.f32 %v5126_v50, %v5126_v50 }
 0x3f9   : > { %2312 = vadd.xlane.f32.xlu1 %v2257_v56  ;;  %2310 = vadd.xlane.f32.xlu0 %v2256_v2  ;;  %v2263_v56 = vmul.f32 %v5131_v15, %v5131_v15  ;;  %v2262_v2 = vmul.f32 %v5134_v59, %v5134_v59 }
 0x3fd   : > { %2316 = vadd.xlane.f32.xlu1 %v2259_v9  ;;  %2314 = vadd.xlane.f32.xlu0 %v2258_v43  ;;  %v2265_v9 = vmul.f32 %v5139_v1, %v5139_v1  ;;  %v2264_v43 = vmul.f32 %v5142_v52, %v5142_v52 }
 0x401   : > { %2320 = vadd.xlane.f32.xlu1 %v2261_v60  ;;  %2318 = vadd.xlane.f32.xlu0 %v2260_v17  ;;  %v2267_v60 = vmul.f32 %v5147_v24, %v5147_v24  ;;  %v2266_v17 = vmul.f32 %v5150_v35, %v5150_v35 }
 0x405   : > { %2324 = vadd.xlane.f32.xlu1 %v2263_v56  ;;  %2322 = vadd.xlane.f32.xlu0 %v2262_v2  ;;  %v2269_v56 = vmul.f32 %v5155_v42, %v5155_v42  ;;  %v2268_v2 = vmul.f32 %v5158_v3, %v5158_v3 }
 0x409   : > { %2328 = vadd.xlane.f32.xlu1 %v2265_v9  ;;  %2326 = vadd.xlane.f32.xlu0 %v2264_v43  ;;  %v2271_v9 = vmul.f32 %v5163_v0, %v5163_v0  ;;  %v2270_v43 = vmul.f32 %v5166_v61, %v5166_v61 }
 0x40d   : > { %2332 = vadd.xlane.f32.xlu1 %v2267_v60  ;;  %2330 = vadd.xlane.f32.xlu0 %v2266_v17  ;;  %v2273_v60 = vmul.f32 %v5171_v33, %v5171_v33  ;;  %v2272_v17 = vmul.f32 %v5174_v58, %v5174_v58 }
 0x411   : > { %2336 = vadd.xlane.f32.xlu1 %v2269_v56  ;;  %2334 = vadd.xlane.f32.xlu0 %v2268_v2  ;;  %v2275_v56 = vmul.f32 %v5179_v14, %v5179_v14  ;;  %v2274_v2 = vmul.f32 %v5182_v6, %v5182_v6 }
 0x415   : > { %2340 = vadd.xlane.f32.xlu1 %v2271_v9  ;;  %2338 = vadd.xlane.f32.xlu0 %v2270_v43  ;;  %v2277_v9 = vmul.f32 %v5187_v4, %v5187_v4  ;;  %v2276_v43 = vmul.f32 %v5190_v62, %v5190_v62 }
 0x419   : > { %2344 = vadd.xlane.f32.xlu1 %v2273_v60  ;;  %2342 = vadd.xlane.f32.xlu0 %v2272_v17 }
 0x41a   : > { %v5326_v21 = vpop.xlane.xlu1 %2110  ;;  %v5328_v8 = vpop.xlane.xlu0 %2106 }
 0x41b   : > { %v5431_v54 = vmul.f32 0.03125, %v5328_v8  ;;  %v5434_v20 = vmul.f32 0.03125, %v5326_v21 }
 0x41d   : > { %2348 = vadd.xlane.f32.xlu1 %v2275_v56  ;;  %2346 = vadd.xlane.f32.xlu0 %v2274_v2  ;;  %7347 = vst [vmem:[#allocation96_spill] sm:$0xff] %v5431_v54  ;;  %7348 = vst [vmem:[#allocation97_spill] sm:$0xff] %v5434_v20  ;;  %v2394_v8 = vmul.f32 32.0, %v5431_v54  ;;  %v2396_v21 = vmul.f32 32.0, %v5434_v20 }
 0x41e   : > { %v5334_v60 = vpop.xlane.xlu1 %2112  ;;  %v5336_v17 = vpop.xlane.xlu0 %2108 }
 0x41f   : > { %v5477_v58 = vmul.f32 %v2394_v8, %v5431_v54 }
 0x421   : > { %2352 = vadd.xlane.f32.xlu1 %v2277_v9  ;;  %2350 = vadd.xlane.f32.xlu0 %v2276_v43  ;;  %7357 = vst [vmem:[#allocation106_spill] sm:$0xff] %v5477_v58 }
 0x422   : > { %v5342_v56 = vpop.xlane.xlu1 %2116  ;;  %v5344_v2 = vpop.xlane.xlu0 %2114 }
 0x423   : > { %v5447_v62 = vmul.f32 0.03125, %v5342_v56  ;;  %v5450_v4 = vmul.f32 0.03125, %v5344_v2 }
 0x425   : > { %2356 = vadd.xlane.f32.xlu1 %v2279_v40  ;;  %2354 = vadd.xlane.f32.xlu0 %v2278_v18  ;;  %7352 = vst [vmem:[#allocation101_spill] sm:$0xff] %v5450_v4  ;;  %v2399_v14 = vmul.f32 32.0, %v5447_v62  ;;  %v2398_v31 = vmul.f32 32.0, %v5450_v4 }
 0x426   : > { %v5350_v9 = vpop.xlane.xlu1 %2120  ;;  %v5352_v43 = vpop.xlane.xlu0 %2118 }
 0x427   : > { %v5515_v41 = vmul.f32 %v2399_v14, %v5447_v62 }
 0x429   : > { %2360 = vadd.xlane.f32.xlu1 %v2281_v57  ;;  %2358 = vadd.xlane.f32.xlu0 %v2280_v11 }
 0x42a   : > { %v5358_v40 = vpop.xlane.xlu1 %2124  ;;  %v5360_v18 = vpop.xlane.xlu0 %2122 }
 0x42b   : > { %v5466_v2 = vmul.f32 0.03125, %v5358_v40  ;;  %v5518_v40 = vmul.f32 %v2398_v31, %v5450_v4 }
 0x42d   : > { %2364 = vadd.xlane.f32.xlu1 %v2283_v51  ;;  %2362 = vadd.xlane.f32.xlu0 %v2282_v55  ;;  %7354 = vst [vmem:[#allocation103_spill] sm:$0xff] %v5466_v2 }
 0x42e   : > { %v5366_v57 = vpop.xlane.xlu1 %2128  ;;  %v5368_v11 = vpop.xlane.xlu0 %2126 }
 0x42f   : > { %v5486_v27 = vmul.f32 0.03125, %v5366_v57 }
 0x431   : > { %2368 = vadd.xlane.f32.xlu1 %v2285_v7  ;;  %2366 = vadd.xlane.f32.xlu0 %v2284_v26  ;;  %7358 = vst [vmem:[#allocation107_spill] sm:$0xff] %v5486_v27 }
 0x432   : > { %v5374_v51 = vpop.xlane.xlu1 %2132  ;;  %v5376_v55 = vpop.xlane.xlu0 %2130 }
 0x433   : > { %v5526_v34 = vmul.f32 0.03125, %v5376_v55 }
 0x435   : > { %2372 = vadd.xlane.f32.xlu1 %v2287_v46  ;;  %2370 = vadd.xlane.f32.xlu0 %v2286_v39  ;;  %7361 = vst [vmem:[#allocation110_spill] sm:$0xff] %v5526_v34 }
 0x436   : > { %v5382_v7 = vpop.xlane.xlu1 %2136  ;;  %v5384_v26 = vpop.xlane.xlu0 %2134 }
 0x439   : > { %2376 = vadd.xlane.f32.xlu1 %v2289_v29  ;;  %2374 = vadd.xlane.f32.xlu0 %v2288_v25 }
 0x43a   : > { %v5390_v46 = vpop.xlane.xlu1 %2140  ;;  %v5392_v39 = vpop.xlane.xlu0 %2138 }
 0x43d   : > { %2380 = vadd.xlane.f32.xlu1 %v2291_v63  ;;  %2378 = vadd.xlane.f32.xlu0 %v2290_v5 }
 0x43e   : > { %v5398_v29 = vpop.xlane.xlu1 %2144  ;;  %v5400_v25 = vpop.xlane.xlu0 %2142 }
 0x441   : > { %2384 = vadd.xlane.f32.xlu1 %v2293_v37  ;;  %2382 = vadd.xlane.f32.xlu0 %v2292_v48 }
 0x442   : > { %v5406_v63 = vpop.xlane.xlu1 %2148  ;;  %v5408_v5 = vpop.xlane.xlu0 %2146 }
 0x443   : > { %v5586_v44 = vmul.f32 0.03125, %v5406_v63 }
 0x445   : > { %2388 = vadd.xlane.f32.xlu1 %v2295_v28  ;;  %2386 = vadd.xlane.f32.xlu0 %v2294_v36  ;;  %7368 = vst [vmem:[#allocation117_spill] sm:$0xff] %v5586_v44 }
 0x446   : > { %v5414_v37 = vpop.xlane.xlu1 %2152  ;;  %v5416_v48 = vpop.xlane.xlu0 %2150 }
 0x447   : > { %v5606_v59 = vmul.f32 0.03125, %v5414_v37 }
 0x449   : > { %2392 = vadd.xlane.f32.xlu1 %v2297_v22  ;;  %2390 = vadd.xlane.f32.xlu0 %v2296_v16  ;;  %v5437_v22 = vmul.f32 0.03125, %v5336_v17  ;;  %v5440_v16 = vmul.f32 0.03125, %v5334_v60  ;;  %v5455_v17 = vmul.f32 0.03125, %v5350_v9  ;;  %v5458_v60 = vmul.f32 0.03125, %v5352_v43  ;;  %7370 = vst [vmem:[#allocation119_spill] sm:$0xff] %v5606_v59 }
 0x44a   : > { %v5418_v10 = vpop.xlane.xlu1 %2156  ;;  %v5420_v30 = vpop.xlane.xlu0 %2154  ;;  %v5474_v43 = vmul.f32 0.03125, %v5360_v18  ;;  %v5492_v18 = vmul.f32 0.03125, %v5368_v11 }
 0x44b   : > { %7349 = vst [vmem:[#allocation98_spill] sm:$0xff] %v5440_v16  ;;  %7353 = vst [vmem:[#allocation102_spill] sm:$0xff] %v5458_v60  ;;  %v2395_v6 = vmul.f32 32.0, %v5437_v22  ;;  %v2397_v9 = vmul.f32 32.0, %v5440_v16  ;;  %v2401_v54 = vmul.f32 32.0, %v5455_v17  ;;  %v2400_v58 = vmul.f32 32.0, %v5458_v60 }
 0x44c   : > { %7356 = vst [vmem:[#allocation105_spill] sm:$0xff] %v5474_v43  ;;  %7359 = vst [vmem:[#allocation108_spill] sm:$0xff] %v5492_v18  ;;  %v2402_v57 = vmul.f32 32.0, %v5474_v43  ;;  %v2404_v4 = vmul.f32 32.0, %v5492_v18  ;;  %v5643_v24 = vmul.f32 0.03125, %v5418_v10 }
 0x44d   : > { %v5495_v8 = vmul.f32 %v2395_v6, %v5437_v22  ;;  %v5508_v11 = vmul.f32 %v2397_v9, %v5440_v16  ;;  %v2403_v6 = vmul.f32 32.0, %v5466_v2  ;;  %v5530_v16 = vmul.f32 0.03125, %v5382_v7 }
 0x44e   : > { %v5422_v12 = vpop.xlane.xlu1 %2160  ;;  %v5424_v28 = vpop.xlane.xlu0 %2158  ;;  %v5533_v14 = vmul.f32 %v2401_v54, %v5455_v17  ;;  %v5536_v31 = vmul.f32 %v2400_v58, %v5458_v60  ;;  %v5544_v9 = vmul.f32 0.03125, %v5384_v26  ;;  %v5554_v58 = vmul.f32 0.03125, %v5390_v46  ;;  %7372 = vst [vmem:[#allocation121_spill] sm:$0xff] %v5643_v24 }
 0x44f   : > { %7362 = vst [vmem:[#allocation111_spill] sm:$0xff] %v5530_v16  ;;  %v5551_v54 = vmul.f32 %v2403_v6, %v5466_v2  ;;  %v5557_v60 = vmul.f32 0.03125, %v5392_v39  ;;  %v5560_v13 = vmul.f32 %v2402_v57, %v5474_v43  ;;  %v2406_v46 = vmul.f32 32.0, %v5526_v34 }
 0x450   : > { %7363 = vst [vmem:[#allocation112_spill] sm:$0xff] %v5544_v9  ;;  %7364 = vst [vmem:[#allocation113_spill] sm:$0xff] %v5554_v58  ;;  %v5572_v2 = vmul.f32 0.03125, %v5398_v29  ;;  %v5575_v39 = vmul.f32 0.03125, %v5400_v25  ;;  %v5578_v57 = vmul.f32 %v2404_v4, %v5492_v18  ;;  %v2409_v43 = vmul.f32 32.0, %v5530_v16 }
 0x451   : > { %7365 = vst [vmem:[#allocation114_spill] sm:$0xff] %v5557_v60  ;;  %v2408_v25 = vmul.f32 32.0, %v5544_v9  ;;  %v5594_v4 = vmul.f32 0.03125, %v5408_v5  ;;  %v2411_v26 = vmul.f32 32.0, %v5554_v58  ;;  %v2410_v15 = vmul.f32 32.0, %v5557_v60 }
 0x452   : > { %v5426_v36 = vpop.xlane.xlu1 %2164  ;;  %v5428_v38 = vpop.xlane.xlu0 %2162  ;;  %7366 = vst [vmem:[#allocation115_spill] sm:$0xff] %v5572_v2  ;;  %7367 = vst [vmem:[#allocation116_spill] sm:$0xff] %v5575_v39  ;;  %v5612_v5 = vmul.f32 0.03125, %v5416_v48  ;;  %v2412_v49 = vmul.f32 32.0, %v5575_v39  ;;  %v5650_v52 = vmul.f32 0.03125, %v5422_v12  ;;  %v5664_v35 = vmul.f32 0.03125, %v5424_v28 }
 0x453   : > { %7369 = vst [vmem:[#allocation118_spill] sm:$0xff] %v5594_v4  ;;  %v5628_v48 = vmul.f32 %v2408_v25, %v5544_v9  ;;  %v5637_v63 = vmul.f32 %v2410_v15, %v5557_v60  ;;  %v2414_v37 = vmul.f32 32.0, %v5594_v4  ;;  %v5646_v25 = vmul.f32 0.03125, %v5420_v30 }
 0x454   : > { %7371 = vst [vmem:[#allocation120_spill] sm:$0xff] %v5612_v5  ;;  %v2417_v9 = vmul.f32 32.0, %v5606_v59  ;;  %7374 = vst [vmem:[#allocation123_spill] sm:$0xff] %v5650_v52  ;;  %v5656_v15 = vmul.f32 %v2412_v49, %v5575_v39  ;;  %v2416_v42 = vmul.f32 32.0, %v5612_v5  ;;  %v5676_v39 = vmul.f32 0.03125, %v5426_v36 }
 0x455   : > { %7373 = vst [vmem:[#allocation122_spill] sm:$0xff] %v5646_v25  ;;  %7375 = vst [vmem:[#allocation124_spill] sm:$0xff] %v5664_v35  ;;  %v5679_v10 = vmul.f32 0.03125, %v5428_v38  ;;  %v5682_v30 = vmul.f32 %v2414_v37, %v5594_v4  ;;  %v2421_v37 = vmul.f32 32.0, %v5650_v52 }
 0x456   : > { %v5442_v23 = vpop.xlane.xlu1 %2168  ;;  %v5444_v32 = vpop.xlane.xlu0 %2166  ;;  %7377 = vst [vmem:[#allocation126_spill] sm:$0xff] %v5676_v39  ;;  %v5687_v0 = vmul.f32 %v2417_v9, %v5606_v59  ;;  %v5698_v38 = vmul.f32 %v2416_v42, %v5612_v5  ;;  %v2423_v5 = vmul.f32 32.0, %v5676_v39 }
 0x457   : > { %7350 = vst [vmem:[#allocation99_spill] sm:$0xff] %v5442_v23  ;;  %7351 = vst [vmem:[#allocation100_spill] sm:$0xff] %v5444_v32  ;;  %v2422_v28 = vmul.f32 32.0, %v5679_v10 }
 0x458   : > { %7378 = vst [vmem:[#allocation127_spill] sm:$0xff] %v5679_v10  ;;  %7379 = vst [vmem:[#allocation128_spill] sm:$0xff] %v5682_v30  ;;  %v5745_v1 = vmul.f32 %v2423_v5, %v5676_v39 }
 0x459   : > { %7381 = vst [vmem:[#allocation129_spill] sm:$0xff] %v5687_v0  ;;  %7386 = vst [vmem:[#allocation130_spill] sm:$0xff] %v5698_v38 }
 0x45a   : > { %v5468_v32 = vpop.xlane.xlu1 %2172  ;;  %v5470_v23 = vpop.xlane.xlu0 %2170 }
 0x45b   : > { %7355 = vst [vmem:[#allocation104_spill] sm:$0xff] %v5470_v23  ;;  %v5489_v23 = vmul.f32 %v2396_v21, %v5434_v20  ;;  %v5512_v20 = vmul.f32 0.03125, %v5374_v51  ;;  %v2405_v51 = vmul.f32 32.0, %v5486_v27  ;;  %v5704_v9 = vmul.f32 0.03125, %v5468_v32 }
 0x45d   : > { %7360 = vst [vmem:[#allocation109_spill] sm:$0xff] %v5512_v20  ;;  %v2407_v55 = vmul.f32 32.0, %v5512_v20  ;;  %v5568_v6 = vmul.f32 %v2405_v51, %v5486_v27  ;;  %v5609_v27 = vmul.f32 %v2406_v46, %v5526_v34  ;;  %7388 = vst [vmem:[#allocation131_spill] sm:$0xff] %v5704_v9 }
 0x45e   : > { %v5503_v56 = vpop.xlane.xlu1 %2176  ;;  %v5505_v21 = vpop.xlane.xlu0 %2174  ;;  %v7382_v49 = vld [vmem:[#allocation99_spill] sm:$0xff]  ;;  %v7384_v36 = vld [vmem:[#allocation100_spill] sm:$0xff] }
 0x45f   : > { %v5597_v18 = vmul.f32 %v2407_v55, %v5512_v20  ;;  %v5615_v55 = vmul.f32 %v2409_v43, %v5530_v16  ;;  %v2413_v20 = vmul.f32 32.0, %v5572_v2  ;;  %v2415_v43 = vmul.f32 32.0, %v5586_v44 }
 0x460   : > { %v5634_v16 = vmul.f32 %v2411_v26, %v5554_v58  ;;  %v5692_v33 = vmul.f32 0.03125, %v7382_v49  ;;  %v2420_v58 = vmul.f32 32.0, %v5664_v35  ;;  %v5713_v42 = vmul.f32 0.03125, %v5503_v56  ;;  %v7409_v56 = vld [vmem:[#allocation106_spill] sm:$0xff] }
 0x461   : > { %v5653_v26 = vmul.f32 %v2413_v20, %v5572_v2  ;;  %v5671_v20 = vmul.f32 %v2415_v43, %v5586_v44  ;;  %v2419_v43 = vmul.f32 32.0, %v5643_v24  ;;  %v2418_v44 = vmul.f32 32.0, %v5646_v25 }
 0x462   : > { %v5546_v53 = vpop.xlane.xlu1 %2180  ;;  %v5548_v7 = vpop.xlane.xlu0 %2178  ;;  %7383 = vst [vmem:[#allocation99_spill] sm:$0xff] %v5692_v33  ;;  %v5695_v2 = vmul.f32 0.03125, %v7384_v36  ;;  %v7389_v59 = vld [vmem:[#allocation104_spill] sm:$0xff]  ;;  %7392 = vst [vmem:[#allocation132_spill] sm:$0xff] %v5713_v42  ;;  %v5731_v36 = vmul.f32 %v2421_v37, %v5650_v52  ;;  %v2425_v0 = vmul.f32 32.0, %v5692_v33  ;;  %v5748_v52 = vmul.f32 %v2422_v28, %v5679_v10 }
 0x463   : > { %7376 = vst [vmem:[#allocation125_spill] sm:$0xff] %v5671_v20  ;;  %v5707_v4 = vmul.f32 0.03125, %v7389_v59  ;;  %v5720_v59 = vmul.f32 0.03125, %v5505_v21  ;;  %v5723_v34 = vmul.f32 %v2419_v43, %v5643_v24  ;;  %v5726_v38 = vmul.f32 %v2418_v44, %v5646_v25 }
 0x464   : > { %7385 = vst [vmem:[#allocation100_spill] sm:$0xff] %v5695_v2  ;;  %7396 = vst [vmem:[#allocation134_spill] sm:$0xff] %v5731_v36  ;;  %v2424_v30 = vmul.f32 32.0, %v5695_v2  ;;  %v5738_v43 = vmul.f32 %v2420_v58, %v5664_v35  ;;  %v2427_v44 = vmul.f32 32.0, %v5704_v9  ;;  %v2429_v21 = vmul.f32 32.0, %v5713_v42 }
 0x465   : > { %7390 = vst [vmem:[#allocation104_spill] sm:$0xff] %v5707_v4  ;;  %7394 = vst [vmem:[#allocation133_spill] sm:$0xff] %v5720_v59  ;;  %v2426_v25 = vmul.f32 32.0, %v5707_v4  ;;  %v2428_v36 = vmul.f32 32.0, %v5720_v59  ;;  %v5764_v10 = vmul.f32 %v2425_v0, %v5692_v33 }
 0x466   : > { %v5588_v50 = vpop.xlane.xlu1 %2184  ;;  %v5590_v29 = vpop.xlane.xlu0 %2182  ;;  %7398 = vst [vmem:[#allocation135_spill] sm:$0xff] %v5738_v43  ;;  %7400 = vst [vmem:[#allocation136_spill] sm:$0xff] %v5748_v52  ;;  %v5756_v43 = vmul.f32 0.03125, %v5546_v53  ;;  %v5767_v39 = vmul.f32 %v2424_v30, %v5695_v2  ;;  %v5772_v53 = vmul.f32 0.03125, %v5548_v7  ;;  %v5775_v52 = vmul.f32 %v2427_v44, %v5704_v9 }
 0x467   : > { %v5778_v5 = vmul.f32 %v2426_v25, %v5707_v4  ;;  %v5785_v35 = vmul.f32 %v2429_v21, %v5713_v42  ;;  %v5788_v7 = vmul.f32 0.03125, %v5588_v50  ;;  %v5791_v24 = vmul.f32 0.03125, %v5590_v29 }
 0x468   : > { %7403 = vst [vmem:[#allocation137_spill] sm:$0xff] %v5756_v43  ;;  %v5794_v44 = vmul.f32 %v2428_v36, %v5720_v59  ;;  %v2431_v25 = vmul.f32 32.0, %v5756_v43  ;;  %v2430_v0 = vmul.f32 32.0, %v5772_v53 }
 0x469   : > { %7407 = vst [vmem:[#allocation138_spill] sm:$0xff] %v5778_v5  ;;  %7410 = vst [vmem:[#allocation106_spill] sm:$0xff] %v5785_v35 }
 0x46a   : > { %v5623_v51 = vpop.xlane.xlu1 %2188  ;;  %v5625_v46 = vpop.xlane.xlu0 %2186  ;;  %7411 = vst [vmem:[#allocation139_spill] sm:$0xff] %v5794_v44  ;;  %v5840_v2 = vmul.f32 %v2430_v0, %v5772_v53 }
 0x46b   : > { %v5798_v28 = vmul.f32 0.03125, %v5623_v51 }
 0x46e   : > { %v5666_v3 = vpop.xlane.xlu1 %2192  ;;  %v5668_v12 = vpop.xlane.xlu0 %2190 }
 0x46f   : > { %v5809_v29 = vmul.f32 0.03125, %v5668_v12  ;;  %v2433_v12 = vmul.f32 32.0, %v5788_v7 }
 0x471   : > { %7414 = vst [vmem:[#allocation141_spill] sm:$0xff] %v5809_v29 }
 0x472   : > { %v2197_v60 = vpop.xlane.xlu1 %2196  ;;  %v2195_v49 = vpop.xlane.xlu0 %2194 }
 0x473   : > { %v5820_v50 = vmul.f32 0.03125, %v2195_v49 }
 0x475   : > { %7416 = vst [vmem:[#allocation143_spill] sm:$0xff] %v5820_v50  ;;  %v2438_v33 = vmul.f32 32.0, %v5820_v50 }
 0x476   : > { %v2201_v32 = vpop.xlane.xlu1 %2200  ;;  %v2199_v20 = vpop.xlane.xlu0 %2198 }
 0x477   : > { %v5837_v9 = vmul.f32 0.03125, %v2199_v20 }
 0x47a   : > { %v2301_v58 = vpop.xlane.xlu1 %2300  ;;  %v2299_v61 = vpop.xlane.xlu0 %2298 }
 0x47b   : > { %v2491_v30 = vsub.f32 %v2301_v58, %v5495_v8  ;;  %v2490_v37 = vsub.f32 %v2299_v61, %v7409_v56  ;;  %v5801_v8 = vmul.f32 0.03125, %v5625_v46  ;;  %v5806_v58 = vmul.f32 0.03125, %v5666_v3 }
 0x47c   : > { %v5823_v3 = vmul.f32 %v2431_v25, %v5756_v43 }
 0x47d   : > { %v2540_v61 = vmul.f32 0.032258064, %v2491_v30  ;;  %v2539_v56 = vmul.f32 0.032258064, %v2490_v37  ;;  %7413 = vst [vmem:[#allocation140_spill] sm:$0xff] %v5806_v58  ;;  %v5818_v30 = vmul.f32 0.03125, %v2197_v60 }
 0x47e   : > { %v2305_v36 = vpop.xlane.xlu1 %2304  ;;  %v2303_v59 = vpop.xlane.xlu0 %2302  ;;  %7417 = vst [vmem:[#allocation144_spill] sm:$0xff] %v5823_v3  ;;  %v2434_v21 = vmul.f32 32.0, %v5801_v8  ;;  %v2437_v49 = vmul.f32 32.0, %v5806_v58 }
 0x47f   : > { %v5812_v51 = vmax.f32 %v2540_v61, 0.0  ;;  %v5814_v42 = vmax.f32 %v2539_v56, 0.0  ;;  %v2493_v46 = vsub.f32 %v2305_v36, %v5508_v11  ;;  %v2492_v37 = vsub.f32 %v2303_v59, %v5489_v23  ;;  %7415 = vst [vmem:[#allocation142_spill] sm:$0xff] %v5818_v30 }
 0x480   : > { %v2432_v61 = vmul.f32 32.0, %v5791_v24  ;;  %v2435_v56 = vmul.f32 32.0, %v5798_v28  ;;  %v5830_v11 = vmul.f32 0.03125, %v2201_v32  ;;  %v2436_v59 = vmul.f32 32.0, %v5809_v29 }
 0x481   : > { %4002 = vrsqrt.f32 %v5812_v51  ;;  %v2542_v25 = vmul.f32 0.032258064, %v2493_v46  ;;  %v2541_v36 = vmul.f32 0.032258064, %v2492_v37  ;;  %v2439_v32 = vmul.f32 32.0, %v5818_v30 }
 0x482   : > { %7418 = vst [vmem:[#allocation145_spill] sm:$0xff] %v5830_v11  ;;  %4004 = vrsqrt.f32 %v5814_v42  ;;  %v2309_v23 = vpop.xlane.xlu1 %2308  ;;  %v2307_v60 = vpop.xlane.xlu0 %2306  ;;  %v5855_v20 = vmul.f32 %v2435_v56, %v5798_v28  ;;  %v2441_v0 = vmul.f32 32.0, %v5830_v11  ;;  %v5876_v56 = vmul.f32 32.0, %v5837_v9 }
 0x483   : > { %v2495_v43 = vsub.f32 %v2309_v23, %v5515_v41  ;;  %v2494_v4 = vsub.f32 %v2307_v60, %v5518_v40  ;;  %v5844_v3 = vmax.f32 %v2542_v25, 0.0  ;;  %v5846_v44 = vmax.f32 %v2541_v36, 0.0 }
 0x484   : > { %v5849_v41 = vmul.f32 %v2433_v12, %v5788_v7  ;;  %v5852_v40 = vmul.f32 %v2432_v61, %v5791_v24  ;;  %v5860_v23 = vmul.f32 %v2434_v21, %v5801_v8  ;;  %v5870_v12 = vmul.f32 %v2439_v32, %v5818_v30 }
 0x485   : > { %v2544_v35 = vmul.f32 0.032258064, %v2495_v43  ;;  %v2543_v46 = vmul.f32 0.032258064, %v2494_v4  ;;  %4006 = vrsqrt.f32 %v5844_v3  ;;  %v5863_v4 = vmul.f32 %v2437_v49, %v5806_v58 }
 0x486   : > { %v2313_v37 = vpop.xlane.xlu1 %2312  ;;  %v2311_v5 = vpop.xlane.xlu0 %2310  ;;  %v5866_v43 = vmul.f32 %v2436_v59, %v5809_v29  ;;  %4008 = vrsqrt.f32 %v5846_v44  ;;  %v5873_v61 = vmul.f32 %v2438_v33, %v5820_v50  ;;  %vm2644_vm0 = vcmp.eq.f32.partialorder %v5812_v51, inf }
 0x487   : > { %v5878_v60 = vmax.f32 %v2544_v35, 0.0  ;;  %v5880_v21 = vmax.f32 %v2543_v46, 0.0  ;;  %v2497_v49 = vsub.f32 %v2313_v37, %v5533_v14  ;;  %v2496_v59 = vsub.f32 %v2311_v5, %v5536_v31 }
 0x488   : > { %vm2646_vm1 = vcmp.eq.f32.partialorder %v5812_v51, 0.0  ;;  %v2647_v25 = vand.u32 2147483648, %v5812_v51  ;;  %v5888_v33 = vmul.f32 %v2441_v0, %v5830_v11  ;;  %vm2637_vm2 = vcmp.eq.f32.partialorder %v5814_v42, inf }
 0x489   : > { %vm2639_vm3 = vcmp.eq.f32.partialorder %v5814_v42, 0.0  ;;  %v2640_v35 = vand.u32 2147483648, %v5814_v42  ;;  %4010 = vrsqrt.f32 %v5878_v60  ;;  %vm2658_vm4 = vcmp.eq.f32.partialorder %v5844_v3, inf }
 0x48a   : > { %v2317_v14 = vpop.xlane.xlu1 %2316  ;;  %v2315_v31 = vpop.xlane.xlu0 %2314  ;;  %vm2660_vm5 = vcmp.eq.f32.partialorder %v5844_v3, 0.0  ;;  %4012 = vrsqrt.f32 %v5880_v21  ;;  %v2661_v37 = vand.u32 2147483648, %v5844_v3  ;;  %v2546_v0 = vmul.f32 0.032258064, %v2497_v49 }
 0x48b   : > { %v4003_v36 = vpop.eup %4002  ;;  %v2545_v11 = vmul.f32 0.032258064, %v2496_v59  ;;  %vm2651_vm6 = vcmp.eq.f32.partialorder %v5846_v44, inf  ;;  %v2498_v30 = vsub.f32 %v2315_v31, %v5560_v13  ;;  %vm2653_vm7 = vcmp.eq.f32.partialorder %v5846_v44, 0.0 }
 0x48c   : > { %v4005_v5 = vpop.eup %4004  ;;  %v2643_v32 = vmul.f32 %v4003_v36, %v5812_v51  ;;  %v2499_v36 = vsub.f32 %v2317_v14, %v5551_v54  ;;  %v5912_v49 = vmax.f32 %v2546_v0, 0.0  ;;  %vm2672_vm8 = vcmp.eq.f32.partialorder %v5878_v60, inf }
 0x48d   : > { %v2636_v46 = vmul.f32 %v4005_v5, %v5814_v42  ;;  %v5916_v58 = vmax.f32 %v2545_v11, 0.0  ;;  %vm2674_vm9 = vcmp.eq.f32.partialorder %v5878_v60, 0.0  ;;  %v2675_v11 = vand.u32 2147483648, %v5878_v60 }
 0x48e   : > { %v2645_v50 = vsel %vm2644_vm0, %v5812_v51, %v2643_v32  ;;  %v2548_v54 = vmul.f32 0.032258064, %v2499_v36  ;;  %v2654_v51 = vand.u32 2147483648, %v5846_v44  ;;  %4014 = vrsqrt.f32 %v5912_v49 }
 0x48f   : > { %v2648_v29 = vsel %vm2646_vm1, %v2647_v25, %v2645_v50  ;;  %v2638_v5 = vsel %vm2637_vm2, %v5814_v42, %v2636_v46  ;;  %v4007_v14 = vpop.eup %4006  ;;  %v2547_v50 = vmul.f32 0.032258064, %v2498_v30  ;;  %v2321_v42 = vpop.xlane.xlu1 %2320  ;;  %vm2665_vm10 = vcmp.eq.f32.partialorder %v5880_v21, inf }
 0x490   : > { %v2972_v59 = vadd.f32 1e-05, %v2648_v29  ;;  %v2641_v32 = vsel %vm2639_vm3, %v2640_v35, %v2638_v5  ;;  %v4009_v25 = vpop.eup %4008  ;;  %v2657_v31 = vmul.f32 %v4007_v14, %v5844_v3  ;;  %v2319_v35 = vpop.xlane.xlu0 %2318  ;;  %vm2667_vm11 = vcmp.eq.f32.partialorder %v5880_v21, 0.0 }
 0x491   : > { %v2971_v13 = vadd.f32 1e-05, %v2641_v32  ;;  %v2650_v29 = vmul.f32 %v4009_v25, %v5846_v44  ;;  %v5931_v46 = vmax.f32 %v2548_v54, 0.0  ;;  %v5939_v32 = vmax.f32 %v2547_v50, 0.0 }
 0x492   : > { %4016 = vrcp.f32 %v2972_v59  ;;  %v2659_v30 = vsel %vm2658_vm4, %v5844_v3, %v2657_v31  ;;  %v2668_v59 = vand.u32 2147483648, %v5880_v21  ;;  %vm2686_vm12 = vcmp.eq.f32.partialorder %v5912_v49, inf }
 0x493   : > { %4018 = vrcp.f32 %v2971_v13  ;;  %v4011_v0 = vpop.eup %4010  ;;  %v2662_v36 = vsel %vm2660_vm5, %v2661_v37, %v2659_v30  ;;  %v2652_v5 = vsel %vm2651_vm6, %v5846_v44, %v2650_v29  ;;  %v2501_v37 = vsub.f32 %v2321_v42, %v5568_v6  ;;  %v2325_v44 = vpop.xlane.xlu1 %2324 }
 0x494   : > { %4020 = vrsqrt.f32 %v5916_v58  ;;  %v4013_v14 = vpop.eup %4012  ;;  %v2974_v13 = vadd.f32 1e-05, %v2662_v36  ;;  %v2655_v25 = vsel %vm2653_vm7, %v2654_v51, %v2652_v5  ;;  %v2671_v54 = vmul.f32 %v4011_v0, %v5878_v60  ;;  %v2323_v42 = vpop.xlane.xlu0 %2322 }
 0x495   : > { %4022 = vrsqrt.f32 %v5931_v46  ;;  %v2973_v31 = vadd.f32 1e-05, %v2655_v25  ;;  %v2664_v3 = vmul.f32 %v4013_v14, %v5880_v21  ;;  %v2500_v29 = vsub.f32 %v2319_v35, %v5578_v57 }
 0x496   : > { %4024 = vrcp.f32 %v2974_v13  ;;  %v2673_v50 = vsel %vm2672_vm8, %v5878_v60, %v2671_v54  ;;  %vm2688_vm13 = vcmp.eq.f32.partialorder %v5912_v49, 0.0  ;;  %v2689_v57 = vand.u32 2147483648, %v5912_v49 }
 0x497   : > { %4026 = vrcp.f32 %v2973_v31  ;;  %v2676_v51 = vsel %vm2674_vm9, %v2675_v11, %v2673_v50  ;;  %v2666_v6 = vsel %vm2665_vm10, %v5880_v21, %v2664_v3  ;;  %vm2679_vm14 = vcmp.eq.f32.partialorder %v5916_v58, inf }
 0x498   : > { %v2976_v35 = vadd.f32 1e-05, %v2676_v51  ;;  %v2669_v30 = vsel %vm2667_vm11, %v2668_v59, %v2666_v6  ;;  %4028 = vrsqrt.f32 %v5939_v32  ;;  %v4015_v0 = vpop.eup %4014  ;;  %v2550_v5 = vmul.f32 0.032258064, %v2501_v37  ;;  %v7420_v37 = vld [vmem:[#allocation52_spill] sm:$0xff] }
 0x499   : > { %v2975_v36 = vadd.f32 1e-05, %v2669_v30  ;;  %v2549_v60 = vmul.f32 0.032258064, %v2500_v29  ;;  %v2503_v11 = vsub.f32 %v2325_v44, %v5597_v18  ;;  %v2685_v13 = vmul.f32 %v4015_v0, %v5912_v49  ;;  %v7421_v29 = vld [vmem:[#allocation96_spill] sm:$0xff] }
 0x49a   : > { %4030 = vrcp.f32 %v2976_v35  ;;  %vm2681_vm15 = vcmp.eq.f32.partialorder %v5916_v58, 0.0  ;;  %v2502_v25 = vsub.f32 %v2323_v42, %v5609_v27  ;;  %v7419_v59 = vsub.f32 %v5094_v45, %v5437_v22  ;;  %v2329_v45 = vpop.xlane.xlu1 %2328 }
 0x49b   : > { %4032 = vrcp.f32 %v2975_v36  ;;  %v5972_v31 = vmax.f32 %v2550_v5, 0.0  ;;  %v5974_v3 = vmax.f32 %v2549_v60, 0.0  ;;  %v7422_v50 = vsub.f32 %v7420_v37, %v7421_v29  ;;  %v2327_v60 = vpop.xlane.xlu0 %2326 }
 0x49c   : > { %v4017_v14 = vpop.eup %4016  ;;  %v2687_v27 = vsel %vm2686_vm12, %v5912_v49, %v2685_v13  ;;  %v2682_v51 = vand.u32 2147483648, %v5916_v58  ;;  %vm2700_vm0 = vcmp.eq.f32.partialorder %v5931_v46, inf  ;;  %v2552_v42 = vmul.f32 0.032258064, %v2503_v11 }
 0x49d   : > { %v4019_v21 = vpop.eup %4018  ;;  %v5970_v54 = vmul.f32 %v4017_v14, %v7419_v59  ;;  %v2690_v22 = vsel %vm2688_vm13, %v2689_v57, %v2687_v27  ;;  %4034 = vrsqrt.f32 %v5972_v31  ;;  %vm2702_vm1 = vcmp.eq.f32.partialorder %v5931_v46, 0.0  ;;  %v7424_v59 = vld [vmem:[#allocation98_spill] sm:$0xff] }
 0x49e   : > { %v4021_v18 = vpop.eup %4020  ;;  %v5979_v44 = vmul.f32 %v4019_v21, %v7422_v50  ;;  %v2978_v0 = vadd.f32 1e-05, %v2690_v22  ;;  %v2551_v36 = vmul.f32 0.032258064, %v2502_v25  ;;  %4036 = vrsqrt.f32 %v5974_v3  ;;  %v7423_v21 = vld [vmem:[#allocation53_spill] sm:$0xff] }
 0x49f   : > { %v2678_v6 = vmul.f32 %v4021_v18, %v5916_v58  ;;  %v4023_v35 = vpop.eup %4022  ;;  %v2505_v57 = vsub.f32 %v2329_v45, %v5615_v55  ;;  %v2703_v13 = vand.u32 2147483648, %v5931_v46  ;;  %vm2693_vm2 = vcmp.eq.f32.partialorder %v5939_v32, inf  ;;  %3216 = vst [vmem:[%s7078_s5 + $0x8] sm:$0xff] (!%p3479_p6), %v5970_v54 }
 0x4a0   : > { %v3163_v30 = vpack.c.bf16 %v5970_v54, %v5979_v44  ;;  %v2699_v49 = vmul.f32 %v4023_v35, %v5931_v46  ;;  %v4025_v11 = vpop.eup %4024  ;;  %4038 = vrcp.f32 %v2978_v0  ;;  %v7425_v18 = vsub.f32 %v7423_v21, %v7424_v59  ;;  %v2331_v21 = vpop.xlane.xlu0 %2330  ;;  %v7431_v59 = vld [vmem:[#allocation55_spill] sm:$0xff]  ;;  %3215 = vst [vmem:[%s7078_s5] sm:$0xff] (!%p3479_p6), %v5979_v44 }
 0x4a1   : > { %v2680_v5 = vsel %vm2679_vm14, %v5916_v58, %v2678_v6  ;;  %v4027_v25 = vpop.eup %4026  ;;  %v6011_v50 = vmax.f32 %v2552_v42, 0.0  ;;  %v7426_v58 = vld [vmem:[#allocation51_spill] sm:$0xff]  ;;  %vm2695_vm3 = vcmp.eq.f32.partialorder %v5939_v32, 0.0  ;;  %v6021_v35 = vmax.f32 %v2551_v36, 0.0 }
 0x4a2   : > { %3187 = vst [vmem:[#allocation2] sm:$0xff] %v3163_v30  ;;  %v2683_v14 = vsel %vm2681_vm15, %v2682_v51, %v2680_v5  ;;  %v6006_v37 = vmul.f32 %v4025_v11, %v7425_v18  ;;  %v2701_v55 = vsel %vm2700_vm0, %v5931_v46, %v2699_v49  ;;  %v4029_v27 = vpop.eup %4028  ;;  %v7427_v51 = vld [vmem:[#allocation97_spill] sm:$0xff]  ;;  %v2554_v5 = vmul.f32 0.032258064, %v2505_v57 }
 0x4a3   : > { %v2977_v29 = vadd.f32 1e-05, %v2683_v14  ;;  %v7428_v45 = vsub.f32 %v7426_v58, %v7427_v51  ;;  %v2704_v6 = vsel %vm2702_vm1, %v2703_v13, %v2701_v55  ;;  %v2692_v0 = vmul.f32 %v4029_v27, %v5939_v32  ;;  %v7429_v14 = vld [vmem:[#allocation54_spill] sm:$0xff]  ;;  %v7432_v18 = vld [vmem:[#allocation101_spill] sm:$0xff] }
 0x4a4   : > { %v2980_v30 = vadd.f32 1e-05, %v2704_v6  ;;  %v4031_v42 = vpop.eup %4030  ;;  %v2696_v11 = vand.u32 2147483648, %v5939_v32  ;;  %vm2714_vm4 = vcmp.eq.f32.partialorder %v5972_v31, inf  ;;  %v7430_v36 = vsub.f32 %v7429_v14, %v5447_v62  ;;  %3218 = vst [vmem:[%s7078_s5 + $0x18] sm:$0xff] (!%p3479_p6), %v6006_v37 }
 0x4a5   : > { %v6016_v22 = vmul.f32 %v4027_v25, %v7428_v45  ;;  %4040 = vrcp.f32 %v2977_v29  ;;  %v4033_v46 = vpop.eup %4032  ;;  %v2694_v57 = vsel %vm2693_vm2, %v5939_v32, %v2692_v0  ;;  %vm2716_vm5 = vcmp.eq.f32.partialorder %v5972_v31, 0.0  ;;  %v2333_v25 = vpop.xlane.xlu1 %2332 }
 0x4a6   : > { %4042 = vrsqrt.f32 %v6011_v50  ;;  %v6032_v13 = vmul.f32 %v4031_v42, %v7430_v36  ;;  %v7433_v29 = vsub.f32 %v7431_v59, %v7432_v18  ;;  %v2697_v62 = vsel %vm2695_vm3, %v2696_v11, %v2694_v57 }
 0x4a7   : > { %v3164_v49 = vpack.c.bf16 %v6006_v37, %v6016_v22  ;;  %4044 = vrcp.f32 %v2980_v30  ;;  %v2717_v27 = vand.u32 2147483648, %v5972_v31  ;;  %v4035_v58 = vpop.eup %4034  ;;  %v2979_v51 = vadd.f32 1e-05, %v2697_v62  ;;  %3217 = vst [vmem:[%s7078_s5 + $0x10] sm:$0xff] (!%p3479_p6), %v6016_v22 }
 0x4a8   : > { %v6041_v55 = vmul.f32 %v4033_v46, %v7433_v29  ;;  %4046 = vrsqrt.f32 %v6021_v35  ;;  %vm2707_vm6 = vcmp.eq.f32.partialorder %v5974_v3, inf  ;;  %v6048_v45 = vmax.f32 %v2554_v5, 0.0  ;;  %3220 = vst [vmem:[%s7078_s5 + $0x28] sm:$0xff] (!%p3479_p6), %v6032_v13 }
 0x4a9   : > { %3188 = vst [vmem:[#allocation2 + $0x8] sm:$0xff] %v3164_v49  ;;  %v2504_v6 = vsub.f32 %v2327_v60, %v5628_v48  ;;  %v2713_v0 = vmul.f32 %v4035_v58, %v5972_v31  ;;  %v2507_v32 = vsub.f32 %v2333_v25, %v5634_v16  ;;  %v2506_v42 = vsub.f32 %v2331_v21, %v5637_v63  ;;  %v4037_v49 = vpop.eup %4036  ;;  %v2337_v36 = vpop.xlane.xlu1 %2336  ;;  %v7435_v58 = vld [vmem:[#allocation56_spill] sm:$0xff] }
 0x4aa   : > { %v3165_v30 = vpack.c.bf16 %v6032_v13, %v6041_v55  ;;  %4048 = vrcp.f32 %v2979_v51  ;;  %vm2709_vm7 = vcmp.eq.f32.partialorder %v5974_v3, 0.0  ;;  %v2710_v11 = vand.u32 2147483648, %v5974_v3  ;;  %v4039_v5 = vpop.eup %4038  ;;  %v7436_v51 = vld [vmem:[#allocation102_spill] sm:$0xff]  ;;  %3219 = vst [vmem:[%s7078_s5 + $0x20] sm:$0xff] (!%p3479_p6), %v6041_v55 }
 0x4ab   : > { %vm2728_vm8 = vcmp.eq.f32.partialorder %v6011_v50, inf  ;;  %v2715_v48 = vsel %vm2714_vm4, %v5972_v31, %v2713_v0  ;;  %v2706_v60 = vmul.f32 %v4037_v49, %v5974_v3  ;;  %4050 = vrsqrt.f32 %v6048_v45 }
 0x4ac   : > { %3189 = vst [vmem:[#allocation2 + $0x10] sm:$0xff] %v3165_v30  ;;  %v2553_v16 = vmul.f32 0.032258064, %v2504_v6  ;;  %v2718_v63 = vsel %vm2716_vm5, %v2717_v27, %v2715_v48  ;;  %vm2730_vm9 = vcmp.eq.f32.partialorder %v6011_v50, 0.0  ;;  %v2556_v46 = vmul.f32 0.032258064, %v2507_v32 }
 0x4ad   : > { %v2555_v14 = vmul.f32 0.032258064, %v2506_v42  ;;  %v7434_v57 = vsub.f32 %v5107_v19, %v5455_v17  ;;  %v2982_v21 = vadd.f32 1e-05, %v2718_v63  ;;  %v2708_v59 = vsel %vm2707_vm6, %v5974_v3, %v2706_v60  ;;  %v2335_v19 = vpop.xlane.xlu0 %2334 }
 0x4ae   : > { %v6075_v18 = vmax.f32 %v2553_v16, 0.0  ;;  %v2711_v31 = vsel %vm2709_vm7, %v2710_v11, %v2708_v59  ;;  %v2731_v62 = vand.u32 2147483648, %v6011_v50  ;;  %vm2721_vm10 = vcmp.eq.f32.partialorder %v6021_v35, inf }
 0x4af   : > { %v6070_v25 = vmul.f32 %v4039_v5, %v7434_v57  ;;  %v4041_v29 = vpop.eup %4040  ;;  %v6081_v27 = vmax.f32 %v2556_v46, 0.0  ;;  %v7437_v6 = vsub.f32 %v7435_v58, %v7436_v51  ;;  %4052 = vrcp.f32 %v2982_v21  ;;  %v2341_v46 = vpop.xlane.xlu1 %2340 }
 0x4b0   : > { %v4043_v17 = vpop.eup %4042  ;;  %v2981_v0 = vadd.f32 1e-05, %v2711_v31  ;;  %v6088_v32 = vmax.f32 %v2555_v14, 0.0  ;;  %vm2723_vm11 = vcmp.eq.f32.partialorder %v6021_v35, 0.0  ;;  %v2724_v49 = vand.u32 2147483648, %v6021_v35  ;;  %v7438_v14 = vld [vmem:[#allocation103_spill] sm:$0xff] }
 0x4b1   : > { %v6086_v30 = vmul.f32 %v4041_v29, %v7437_v6  ;;  %v4045_v42 = vpop.eup %4044  ;;  %v2727_v3 = vmul.f32 %v4043_v17, %v6011_v50  ;;  %4054 = vrsqrt.f32 %v6075_v18  ;;  %v2509_v48 = vsub.f32 %v2337_v36, %v5653_v26  ;;  %v7440_v31 = vld [vmem:[#allocation57_spill] sm:$0xff]  ;;  %v2339_v6 = vpop.xlane.xlu0 %2338  ;;  %3222 = vst [vmem:[%s7078_s5 + $0x38] sm:$0xff] (!%p3479_p6), %v6070_v25 }
 0x4b2   : > { %v4047_v11 = vpop.eup %4046  ;;  %4056 = vrcp.f32 %v2981_v0  ;;  %v2508_v60 = vsub.f32 %v2335_v19, %v5656_v15  ;;  %vm2742_vm12 = vcmp.eq.f32.partialorder %v6048_v45, inf  ;;  %v7439_v57 = vsub.f32 %v5115_v47, %v7438_v14  ;;  %v7441_v19 = vld [vmem:[#allocation105_spill] sm:$0xff] }
 0x4b3   : > { %v3166_v5 = vpack.c.bf16 %v6070_v25, %v6086_v30  ;;  %v2729_v16 = vsel %vm2728_vm8, %v6011_v50, %v2727_v3  ;;  %v2720_v63 = vmul.f32 %v4047_v11, %v6021_v35  ;;  %4058 = vrsqrt.f32 %v6081_v27  ;;  %v7443_v3 = vld [vmem:[#allocation125_spill] sm:$0xff]  ;;  %v2345_v14 = vpop.xlane.xlu1 %2344  ;;  %3221 = vst [vmem:[%s7078_s5 + $0x30] sm:$0xff] (!%p3479_p6), %v6086_v30 }
 0x4b4   : > { %v6107_v21 = vmul.f32 %v4045_v42, %v7439_v57  ;;  %v2732_v26 = vsel %vm2730_vm9, %v2731_v62, %v2729_v16  ;;  %vm2744_vm13 = vcmp.eq.f32.partialorder %v6048_v45, 0.0  ;;  %4060 = vrsqrt.f32 %v6088_v32  ;;  %v4049_v15 = vpop.eup %4048 }
 0x4b5   : > { %3190 = vst [vmem:[#allocation2 + $0x18] sm:$0xff] %v3166_v5  ;;  %v2984_v36 = vadd.f32 1e-05, %v2732_v26  ;;  %v2722_v59 = vsel %vm2721_vm10, %v6021_v35, %v2720_v63  ;;  %v2745_v29 = vand.u32 2147483648, %v6048_v45  ;;  %vm2735_vm14 = vcmp.eq.f32.partialorder %v6075_v18, inf  ;;  %v4051_v47 = vpop.eup %4050 }
 0x4b6   : > { %v7442_v17 = vsub.f32 %v7440_v31, %v7441_v19  ;;  %v2725_v62 = vsel %vm2723_vm11, %v2724_v49, %v2722_v59  ;;  %v2558_v58 = vmul.f32 0.032258064, %v2509_v48  ;;  %v2557_v51 = vmul.f32 0.032258064, %v2508_v60  ;;  %v7444_v48 = vld [vmem:[#allocation128_spill] sm:$0xff]  ;;  %v7446_v59 = vld [vmem:[#allocation107_spill] sm:$0xff] }
 0x4b7   : > { %4062 = vrcp.f32 %v2984_v36  ;;  %v2983_v0 = vadd.f32 1e-05, %v2725_v62  ;;  %v2741_v42 = vmul.f32 %v4051_v47, %v6048_v45  ;;  %v2511_v11 = vsub.f32 %v2341_v46, %v7443_v3  ;;  %v7445_v36 = vld [vmem:[#allocation58_spill] sm:$0xff]  ;;  %v7448_v62 = vld [vmem:[#allocation129_spill] sm:$0xff]  ;;  %3224 = vst [vmem:[%s7078_s5 + $0x48] sm:$0xff] (!%p3479_p6), %v6107_v21 }
 0x4b8   : > { %v6121_v50 = vmul.f32 %v4049_v15, %v7442_v17  ;;  %vm2737_vm15 = vcmp.eq.f32.partialorder %v6075_v18, 0.0  ;;  %v6130_v16 = vmax.f32 %v2558_v58, 0.0  ;;  %v6132_v63 = vmax.f32 %v2557_v51, 0.0 }
 0x4b9   : > { %4064 = vrcp.f32 %v2983_v0  ;;  %v2743_v35 = vsel %vm2742_vm12, %v6048_v45, %v2741_v42  ;;  %v2560_v49 = vmul.f32 0.032258064, %v2511_v11  ;;  %v2510_v60 = vsub.f32 %v2339_v6, %v7444_v48  ;;  %v4053_v57 = vpop.eup %4052  ;;  %v7449_v6 = vld [vmem:[#allocation59_spill] sm:$0xff]  ;;  %v7450_v0 = vld [vmem:[#allocation108_spill] sm:$0xff] }
 0x4ba   : > { %v3167_v5 = vpack.c.bf16 %v6107_v21, %v6121_v50  ;;  %v2746_v46 = vsel %vm2744_vm13, %v2745_v29, %v2743_v35  ;;  %v2738_v26 = vand.u32 2147483648, %v6075_v18  ;;  %vm2756_vm0 = vcmp.eq.f32.partialorder %v6081_v27, inf  ;;  %v2343_v35 = vpop.xlane.xlu0 %2342  ;;  %3223 = vst [vmem:[%s7078_s5 + $0x40] sm:$0xff] (!%p3479_p6), %v6121_v50 }
 0x4bb   : > { %4066 = vrsqrt.f32 %v6130_v16  ;;  %v4055_v15 = vpop.eup %4054  ;;  %v7447_v47 = vsub.f32 %v7445_v36, %v7446_v59  ;;  %v2986_v19 = vadd.f32 1e-05, %v2746_v46  ;;  %vm2758_vm1 = vcmp.eq.f32.partialorder %v6081_v27, 0.0  ;;  %v2349_v36 = vpop.xlane.xlu1 %2348 }
 0x4bc   : > { %3191 = vst [vmem:[#allocation2 + $0x20] sm:$0xff] %v3167_v5  ;;  %4068 = vrsqrt.f32 %v6132_v63  ;;  %v4057_v17 = vpop.eup %4056  ;;  %v2734_v45 = vmul.f32 %v4055_v15, %v6075_v18  ;;  %v2759_v29 = vand.u32 2147483648, %v6081_v27  ;;  %vm2749_vm2 = vcmp.eq.f32.partialorder %v6088_v32, inf }
 0x4bd   : > { %v6146_v31 = vmul.f32 %v4053_v57, %v7447_v47  ;;  %v2513_v58 = vsub.f32 %v2345_v14, %v7448_v62  ;;  %v4059_v51 = vpop.eup %4058  ;;  %v7451_v42 = vsub.f32 %v7449_v6, %v7450_v0  ;;  %4070 = vrcp.f32 %v2986_v19  ;;  %v7452_v62 = vld [vmem:[#allocation130_spill] sm:$0xff]  ;;  %v7453_v6 = vld [vmem:[#allocation60_spill] sm:$0xff]  ;;  %v7454_v0 = vld [vmem:[#allocation109_spill] sm:$0xff] }
 0x4be   : > { %v6159_v11 = vmax.f32 %v2560_v49, 0.0  ;;  %v2559_v5 = vmul.f32 0.032258064, %v2510_v60  ;;  %v4061_v48 = vpop.eup %4060  ;;  %v2736_v57 = vsel %vm2735_vm14, %v6075_v18, %v2734_v45  ;;  %v2755_v46 = vmul.f32 %v4059_v51, %v6081_v27 }
 0x4bf   : > { %v6157_v3 = vmul.f32 %v4057_v17, %v7451_v42  ;;  %vm2751_vm3 = vcmp.eq.f32.partialorder %v6088_v32, 0.0  ;;  %v2752_v14 = vand.u32 2147483648, %v6088_v32  ;;  %v2739_v49 = vsel %vm2737_vm15, %v2738_v26, %v2736_v57  ;;  %3226 = vst [vmem:[%s7078_s5 + $0x58] sm:$0xff] (!%p3479_p6), %v6146_v31 }
 0x4c0   : > { %v2748_v60 = vmul.f32 %v4061_v48, %v6088_v32  ;;  %4072 = vrsqrt.f32 %v6159_v11  ;;  %v2985_v59 = vadd.f32 1e-05, %v2739_v49  ;;  %v2757_v47 = vsel %vm2756_vm0, %v6081_v27, %v2755_v46  ;;  %v7457_v49 = vld [vmem:[#allocation110_spill] sm:$0xff] }
 0x4c1   : > { %v3168_v15 = vpack.c.bf16 %v6146_v31, %v6157_v3  ;;  %vm2770_vm4 = vcmp.eq.f32.partialorder %v6130_v16, inf  ;;  %v2562_v19 = vmul.f32 0.032258064, %v2513_v58  ;;  %v4063_v17 = vpop.eup %4062  ;;  %v2760_v45 = vsel %vm2758_vm1, %v2759_v29, %v2757_v47  ;;  %3225 = vst [vmem:[%s7078_s5 + $0x50] sm:$0xff] (!%p3479_p6), %v6157_v3 }
 0x4c2   : > { %v2750_v18 = vsel %vm2749_vm2, %v6088_v32, %v2748_v60  ;;  %v6182_v26 = vmax.f32 %v2559_v5, 0.0  ;;  %v2512_v51 = vsub.f32 %v2343_v35, %v7452_v62  ;;  %v7455_v42 = vsub.f32 %v7453_v6, %v7454_v0  ;;  %v2347_v5 = vpop.xlane.xlu0 %2346 }
 0x4c3   : > { %3192 = vst [vmem:[#allocation2 + $0x28] sm:$0xff] %v3168_v15  ;;  %4074 = vrcp.f32 %v2985_v59  ;;  %v2988_v58 = vadd.f32 1e-05, %v2760_v45  ;;  %v2753_v57 = vsel %vm2751_vm3, %v2752_v14, %v2750_v18  ;;  %v4065_v27 = vpop.eup %4064  ;;  %vm2772_vm5 = vcmp.eq.f32.partialorder %v6130_v16, 0.0  ;;  %v7456_v15 = vld [vmem:[#allocation61_spill] sm:$0xff]  ;;  %v2353_v18 = vpop.xlane.xlu1 %2352 }
 0x4c4   : > { %v6188_v48 = vmul.f32 %v4063_v17, %v7455_v42  ;;  %v2987_v29 = vadd.f32 1e-05, %v2753_v57  ;;  %v2773_v46 = vand.u32 2147483648, %v6130_v16  ;;  %4076 = vrsqrt.f32 %v6182_v26 }
 0x4c5   : > { %v4067_v35 = vpop.eup %4066  ;;  %v7458_v60 = vsub.f32 %v7456_v15, %v7457_v49  ;;  %4078 = vrcp.f32 %v2988_v58  ;;  %vm2763_vm6 = vcmp.eq.f32.partialorder %v6132_v63, inf  ;;  %v6201_v32 = vmax.f32 %v2562_v19, 0.0  ;;  %v7459_v49 = vld [vmem:[#allocation62_spill] sm:$0xff] }
 0x4c6   : > { %v4069_v14 = vpop.eup %4068  ;;  %4080 = vrcp.f32 %v2987_v29  ;;  %v2769_v59 = vmul.f32 %v4067_v35, %v6130_v16  ;;  %v2561_v17 = vmul.f32 0.032258064, %v2512_v51  ;;  %v2515_v45 = vsub.f32 %v2349_v36, %v5723_v34  ;;  %v2351_v15 = vpop.xlane.xlu0 %2350  ;;  %3228 = vst [vmem:[%s7078_s5 + $0x68] sm:$0xff] (!%p3479_p6), %v6188_v48 }
 0x4c7   : > { %v6198_v47 = vmul.f32 %v4065_v27, %v7458_v60  ;;  %v2762_v6 = vmul.f32 %v4069_v14, %v6132_v63  ;;  %vm2765_vm7 = vcmp.eq.f32.partialorder %v6132_v63, 0.0  ;;  %4082 = vrsqrt.f32 %v6201_v32  ;;  %v4071_v0 = vpop.eup %4070  ;;  %v7460_v60 = vld [vmem:[#allocation111_spill] sm:$0xff] }
 0x4c8   : > { %v2771_v19 = vsel %vm2770_vm4, %v6130_v16, %v2769_v59  ;;  %v2766_v42 = vand.u32 2147483648, %v6132_v63  ;;  %vm2784_vm8 = vcmp.eq.f32.partialorder %v6159_v11, inf  ;;  %v6215_v34 = vmax.f32 %v2561_v17, 0.0 }
 0x4c9   : > { %v3169_v62 = vpack.c.bf16 %v6188_v48, %v6198_v47  ;;  %v2774_v36 = vsel %vm2772_vm5, %v2773_v46, %v2771_v19  ;;  %v2764_v51 = vsel %vm2763_vm6, %v6132_v63, %v2762_v6  ;;  %vm2786_vm9 = vcmp.eq.f32.partialorder %v6159_v11, 0.0  ;;  %v2357_v6 = vpop.xlane.xlu1 %2356  ;;  %3227 = vst [vmem:[%s7078_s5 + $0x60] sm:$0xff] (!%p3479_p6), %v6198_v47 }
 0x4ca   : > { %v2564_v58 = vmul.f32 0.032258064, %v2515_v45  ;;  %v4073_v57 = vpop.eup %4072  ;;  %v2990_v27 = vadd.f32 1e-05, %v2774_v36  ;;  %v2767_v29 = vsel %vm2765_vm7, %v2766_v42, %v2764_v51  ;;  %v2787_v35 = vand.u32 2147483648, %v6159_v11  ;;  %v7462_v45 = vld [vmem:[#allocation134_spill] sm:$0xff] }
 0x4cb   : > { %3193 = vst [vmem:[#allocation2 + $0x30] sm:$0xff] %v3169_v62  ;;  %4084 = vrsqrt.f32 %v6215_v34  ;;  %v7461_v14 = vsub.f32 %v7459_v49, %v7460_v60  ;;  %v2989_v46 = vadd.f32 1e-05, %v2767_v29  ;;  %v2783_v59 = vmul.f32 %v4073_v57, %v6159_v11  ;;  %v7463_v42 = vld [vmem:[#allocation135_spill] sm:$0xff] }
 0x4cc   : > { %vm2777_vm10 = vcmp.eq.f32.partialorder %v6182_v26, inf  ;;  %4086 = vrcp.f32 %v2990_v27  ;;  %v6232_v63 = vmax.f32 %v2564_v58, 0.0  ;;  %v2514_v17 = vsub.f32 %v2347_v5, %v5726_v38  ;;  %v7464_v57 = vld [vmem:[#allocation63_spill] sm:$0xff]  ;;  %v7465_v27 = vld [vmem:[#allocation112_spill] sm:$0xff] }
 0x4cd   : > { %v6228_v16 = vmul.f32 %v4071_v0, %v7461_v14  ;;  %v2517_v62 = vsub.f32 %v2353_v18, %v7462_v45  ;;  %v4075_v19 = vpop.eup %4074  ;;  %4088 = vrcp.f32 %v2989_v46  ;;  %v2785_v0 = vsel %vm2784_vm8, %v6159_v11, %v2783_v59  ;;  %v7467_v59 = vld [vmem:[#allocation64_spill] sm:$0xff]  ;;  %v7468_v45 = vld [vmem:[#allocation113_spill] sm:$0xff] }
 0x4ce   : > { %vm2779_vm11 = vcmp.eq.f32.partialorder %v6182_v26, 0.0  ;;  %v2516_v36 = vsub.f32 %v2351_v15, %v7463_v42  ;;  %v4077_v51 = vpop.eup %4076  ;;  %v7466_v58 = vsub.f32 %v7464_v57, %v7465_v27  ;;  %v2788_v38 = vsel %vm2786_vm9, %v2787_v35, %v2785_v0  ;;  %v7470_v57 = vld [vmem:[#allocation65_spill] sm:$0xff]  ;;  %v7471_v27 = vld [vmem:[#allocation114_spill] sm:$0xff] }
 0x4cf   : > { %v2780_v5 = vand.u32 2147483648, %v6182_v26  ;;  %4090 = vrsqrt.f32 %v6232_v63  ;;  %v4079_v18 = vpop.eup %4078  ;;  %v2992_v49 = vadd.f32 1e-05, %v2788_v38  ;;  %v2776_v60 = vmul.f32 %v4077_v51, %v6182_v26  ;;  %3230 = vst [vmem:[%s7078_s5 + $0x78] sm:$0xff] (!%p3479_p6), %v6228_v16 }
 0x4d0   : > { %v6244_v29 = vmul.f32 %v4075_v19, %v7466_v58  ;;  %vm2798_vm12 = vcmp.eq.f32.partialorder %v6201_v32, inf  ;;  %v2519_v15 = vsub.f32 %v2357_v6, %v5745_v1  ;;  %v4081_v14 = vpop.eup %4080  ;;  %v7469_v11 = vsub.f32 %v7467_v59, %v7468_v45  ;;  %v2355_v59 = vpop.xlane.xlu0 %2354 }
 0x4d1   : > { %v2563_v19 = vmul.f32 0.032258064, %v2514_v17  ;;  %v2566_v0 = vmul.f32 0.032258064, %v2517_v62  ;;  %v4083_v42 = vpop.eup %4082  ;;  %v7472_v58 = vsub.f32 %v7470_v57, %v7471_v27  ;;  %4092 = vrcp.f32 %v2992_v49 }
 0x4d2   : > { %v3170_v46 = vpack.c.bf16 %v6228_v16, %v6244_v29  ;;  %v6258_v35 = vmul.f32 %v4079_v18, %v7469_v11  ;;  %v2778_v1 = vsel %vm2777_vm10, %v6182_v26, %v2776_v60  ;;  %v2565_v6 = vmul.f32 0.032258064, %v2516_v36  ;;  %3229 = vst [vmem:[%s7078_s5 + $0x70] sm:$0xff] (!%p3479_p6), %v6244_v29 }
 0x4d3   : > { %v6263_v51 = vmul.f32 %v4081_v14, %v7472_v58  ;;  %v2781_v38 = vsel %vm2779_vm11, %v2780_v5, %v2778_v1  ;;  %v2797_v18 = vmul.f32 %v4083_v42, %v6201_v32  ;;  %v6271_v17 = vmax.f32 %v2563_v19, 0.0  ;;  %v2361_v5 = vpop.xlane.xlu1 %2360  ;;  %v7473_v58 = vld [vmem:[#allocation66_spill] sm:$0xff]  ;;  %v7474_v1 = vld [vmem:[#allocation115_spill] sm:$0xff] }
 0x4d4   : > { %3194 = vst [vmem:[#allocation2 + $0x38] sm:$0xff] %v3170_v46  ;;  %v6273_v62 = vmax.f32 %v2566_v0, 0.0  ;;  %v2991_v49 = vadd.f32 1e-05, %v2781_v38  ;;  %v2801_v45 = vand.u32 2147483648, %v6201_v32  ;;  %v6278_v11 = vmax.f32 %v2565_v6, 0.0 }
 0x4d5   : > { %v3171_v14 = vpack.c.bf16 %v6258_v35, %v6263_v51  ;;  %v4085_v36 = vpop.eup %4084  ;;  %v2799_v26 = vsel %vm2798_vm12, %v6201_v32, %v2797_v18  ;;  %vm2800_vm13 = vcmp.eq.f32.partialorder %v6201_v32, 0.0  ;;  %4094 = vrsqrt.f32 %v6271_v17  ;;  %3231 = vst [vmem:[%s7078_s5 + $0x80] sm:$0xff] (!%p3479_p6), %v6263_v51  ;;  %3232 = vst [vmem:[%s7078_s5 + $0x88] sm:$0xff] (!%p3479_p6), %v6258_v35 }
 0x4d6   : > { %v6287_v60 = vmul.f32 %v5876_v56, %v5837_v9  ;;  %4096 = vrcp.f32 %v2991_v49  ;;  %v2802_v46 = vsel %vm2800_vm13, %v2801_v45, %v2799_v26  ;;  %v2790_v19 = vmul.f32 %v4085_v36, %v6215_v34  ;;  %v4087_v0 = vpop.eup %4086  ;;  %v7478_v49 = vld [vmem:[#allocation116_spill] sm:$0xff]  ;;  %v2359_v26 = vpop.xlane.xlu0 %2358 }
 0x4d7   : > { %3195 = vst [vmem:[#allocation2 + $0x40] sm:$0xff] %v3171_v14  ;;  %vm2791_vm14 = vcmp.eq.f32.partialorder %v6215_v34, inf  ;;  %v2994_v42 = vadd.f32 1e-05, %v2802_v46  ;;  %v2794_v57 = vand.u32 2147483648, %v6215_v34  ;;  %4098 = vrsqrt.f32 %v6273_v62  ;;  %v4089_v27 = vpop.eup %4088  ;;  %v7477_v14 = vld [vmem:[#allocation67_spill] sm:$0xff] }
 0x4d8   : > { %v2568_v32 = vmul.f32 0.032258064, %v2519_v15  ;;  %v7475_v6 = vsub.f32 %v7473_v58, %v7474_v1  ;;  %v2792_v38 = vsel %vm2791_vm14, %v6215_v34, %v2790_v19  ;;  %vm2793_vm15 = vcmp.eq.f32.partialorder %v6215_v34, 0.0  ;;  %v7481_v1 = vld [vmem:[#allocation136_spill] sm:$0xff] }
 0x4d9   : > { %4100 = vrsqrt.f32 %v6278_v11  ;;  %v4091_v18 = vpop.eup %4090  ;;  %v7479_v45 = vsub.f32 %v7477_v14, %v7478_v49  ;;  %v2795_v15 = vsel %vm2793_vm15, %v2794_v57, %v2792_v38  ;;  %vm2812_vm0 = vcmp.eq.f32.partialorder %v6232_v63, inf  ;;  %v2365_v57 = vpop.xlane.xlu1 %2364 }
 0x4da   : > { %v6296_v56 = vmul.f32 %v4087_v0, %v7475_v6  ;;  %4102 = vrcp.f32 %v2994_v42  ;;  %v2993_v46 = vadd.f32 1e-05, %v2795_v15  ;;  %v2811_v0 = vmul.f32 %v4091_v18, %v6232_v63 }
 0x4db   : > { %v6304_v36 = vmul.f32 %v4089_v27, %v7479_v45  ;;  %vm2814_vm1 = vcmp.eq.f32.partialorder %v6232_v63, 0.0  ;;  %v2815_v34 = vand.u32 2147483648, %v6232_v63  ;;  %v6312_v58 = vmax.f32 %v2568_v32, 0.0  ;;  %v4093_v6 = vpop.eup %4092  ;;  %v7483_v45 = vld [vmem:[#allocation117_spill] sm:$0xff] }
 0x4dc   : > { %7476 = vst [vmem:[#allocation52_spill] sm:$0xff] %v6296_v56  ;;  %v2518_v27 = vsub.f32 %v2355_v59, %v7481_v1  ;;  %v2521_v42 = vsub.f32 %v2361_v5, %v5764_v10  ;;  %4104 = vrcp.f32 %v2993_v46  ;;  %v2813_v38 = vsel %vm2812_vm0, %v6232_v63, %v2811_v0  ;;  %v7482_v63 = vld [vmem:[#allocation68_spill] sm:$0xff]  ;;  %v2363_v0 = vpop.xlane.xlu0 %2362 }
 0x4dd   : > { %7480 = vst [vmem:[#allocation96_spill] sm:$0xff] %v6304_v36  ;;  %v3172_v19 = vpack.c.bf16 %v6296_v56, %v6304_v36  ;;  %vm2805_vm2 = vcmp.eq.f32.partialorder %v6271_v17, inf  ;;  %v2520_v18 = vsub.f32 %v2359_v26, %v5767_v39  ;;  %v2816_v14 = vsel %vm2814_vm1, %v2815_v34, %v2813_v38  ;;  %v7487_v38 = vld [vmem:[#allocation118_spill] sm:$0xff]  ;;  %v7492_v36 = vld [vmem:[#allocation119_spill] sm:$0xff] }
 0x4de   : > { %vm2807_vm3 = vcmp.eq.f32.partialorder %v6271_v17, 0.0  ;;  %v2808_v32 = vand.u32 2147483648, %v6271_v17  ;;  %4106 = vrsqrt.f32 %v6312_v58  ;;  %v2996_v59 = vadd.f32 1e-05, %v2816_v14  ;;  %v7491_v56 = vld [vmem:[#allocation70_spill] sm:$0xff] }
 0x4df   : > { %3196 = vst [vmem:[#allocation2 + $0x48] sm:$0xff] %v3172_v19  ;;  %vm2826_vm4 = vcmp.eq.f32.partialorder %v6273_v62, inf  ;;  %v2567_v10 = vmul.f32 0.032258064, %v2518_v27  ;;  %v2523_v5 = vsub.f32 %v2365_v57, %v5775_v52  ;;  %v4095_v49 = vpop.eup %4094  ;;  %v7484_v15 = vsub.f32 %v7482_v63, %v7483_v45  ;;  %v7486_v57 = vld [vmem:[#allocation69_spill] sm:$0xff]  ;;  %v2369_v45 = vpop.xlane.xlu1 %2368 }
 0x4e0   : > { %vm2828_vm5 = vcmp.eq.f32.partialorder %v6273_v62, 0.0  ;;  %v2570_v39 = vmul.f32 0.032258064, %v2521_v42  ;;  %v2569_v26 = vmul.f32 0.032258064, %v2520_v18  ;;  %v4097_v34 = vpop.eup %4096  ;;  %v2804_v19 = vmul.f32 %v4095_v49, %v6271_v17 }
 0x4e1   : > { %v6327_v46 = vmul.f32 %v4093_v6, %v7484_v15  ;;  %v2829_v1 = vand.u32 2147483648, %v6273_v62  ;;  %vm2819_vm6 = vcmp.eq.f32.partialorder %v6278_v11, inf  ;;  %v6333_v27 = vmax.f32 %v2567_v10, 0.0  ;;  %v4099_v52 = vpop.eup %4098 }
 0x4e2   : > { %v7488_v14 = vsub.f32 %v7486_v57, %v7487_v38  ;;  %4108 = vrcp.f32 %v2996_v59  ;;  %vm2821_vm7 = vcmp.eq.f32.partialorder %v6278_v11, 0.0  ;;  %v6341_v42 = vmax.f32 %v2570_v39, 0.0 }
 0x4e3   : > { %7485 = vst [vmem:[#allocation53_spill] sm:$0xff] %v6327_v46  ;;  %v4101_v18 = vpop.eup %4100  ;;  %v2806_v49 = vsel %vm2805_vm2, %v6271_v17, %v2804_v19  ;;  %v2825_v63 = vmul.f32 %v4099_v52, %v6273_v62  ;;  %4110 = vrsqrt.f32 %v6333_v27  ;;  %v2572_v10 = vmul.f32 0.032258064, %v2523_v5  ;;  %v7490_v5 = vld [vmem:[#allocation138_spill] sm:$0xff]  ;;  %v7559_v54 = vld [vmem:[#allocation52_spill] sm:$0xff] (!%p3479_p6) }
 0x4e4   : > { %v6338_v6 = vmul.f32 %v4097_v34, %v7488_v14  ;;  %v4103_v15 = vpop.eup %4102  ;;  %v2809_v59 = vsel %vm2807_vm3, %v2808_v32, %v2806_v49  ;;  %v2818_v39 = vmul.f32 %v4101_v18, %v6278_v11  ;;  %v6353_v57 = vmax.f32 %v2569_v26, 0.0  ;;  %v2367_v26 = vpop.xlane.xlu0 %2366  ;;  %3234 = vst [vmem:[%s7078_s5 + $0x98] sm:$0xff] (!%p3479_p6), %v7559_v54 }
 0x4e5   : > { %v2995_v38 = vadd.f32 1e-05, %v2809_v59  ;;  %v2827_v19 = vsel %vm2826_vm4, %v6273_v62, %v2825_v63  ;;  %v2822_v52 = vand.u32 2147483648, %v6278_v11  ;;  %v2522_v14 = vsub.f32 %v2363_v0, %v7490_v5 }
 0x4e6   : > { %7489 = vst [vmem:[#allocation98_spill] sm:$0xff] %v6338_v6  ;;  %v3173_v34 = vpack.c.bf16 %v6327_v46, %v6338_v6  ;;  %v7493_v46 = vsub.f32 %v7491_v56, %v7492_v36  ;;  %v2830_v17 = vsel %vm2828_vm5, %v2829_v1, %v2827_v19  ;;  %v2820_v32 = vsel %vm2819_vm6, %v6278_v11, %v2818_v39  ;;  %v4105_v18 = vpop.eup %4104  ;;  %v7495_v36 = vld [vmem:[#allocation71_spill] sm:$0xff]  ;;  %v2373_v11 = vpop.xlane.xlu1 %2372 }
 0x4e7   : > { %4112 = vrsqrt.f32 %v6341_v42  ;;  %v2998_v49 = vadd.f32 1e-05, %v2830_v17  ;;  %v2823_v0 = vsel %vm2821_vm7, %v2822_v52, %v2820_v32  ;;  %v6373_v63 = vmax.f32 %v2572_v10, 0.0 }
 0x4e8   : > { %3197 = vst [vmem:[#allocation2 + $0x50] sm:$0xff] %v3173_v34  ;;  %v6363_v6 = vmul.f32 %v4103_v15, %v7493_v46  ;;  %4114 = vrcp.f32 %v2995_v38  ;;  %v4107_v56 = vpop.eup %4106  ;;  %v7496_v46 = vld [vmem:[#allocation120_spill] sm:$0xff]  ;;  %v2997_v15 = vadd.f32 1e-05, %v2823_v0  ;;  %v7498_v34 = vld [vmem:[#allocation106_spill] sm:$0xff]  ;;  %vm2840_vm8 = vcmp.eq.f32.partialorder %v6312_v58, inf }
 0x4e9   : > { %v7497_v62 = vsub.f32 %v7495_v36, %v7496_v46  ;;  %4116 = vrsqrt.f32 %v6353_v57  ;;  %v2525_v59 = vsub.f32 %v2369_v45, %v7498_v34  ;;  %v2839_v39 = vmul.f32 %v4107_v56, %v6312_v58  ;;  %v7499_v56 = vld [vmem:[#allocation139_spill] sm:$0xff]  ;;  %v7500_v34 = vld [vmem:[#allocation144_spill] sm:$0xff] }
 0x4ea   : > { %7494 = vst [vmem:[#allocation51_spill] sm:$0xff] %v6363_v6  ;;  %4118 = vrcp.f32 %v2998_v49  ;;  %vm2842_vm9 = vcmp.eq.f32.partialorder %v6312_v58, 0.0  ;;  %v2843_v38 = vand.u32 2147483648, %v6312_v58  ;;  %vm2833_vm10 = vcmp.eq.f32.partialorder %v6333_v27, inf  ;;  %v7561_v37 = vld [vmem:[#allocation53_spill] sm:$0xff] (!%p3479_p6) }
 0x4eb   : > { %v6378_v1 = vmul.f32 %v4105_v18, %v7497_v62  ;;  %4120 = vrcp.f32 %v2997_v15  ;;  %v2841_v19 = vsel %vm2840_vm8, %v6312_v58, %v2839_v39  ;;  %vm2835_vm11 = vcmp.eq.f32.partialorder %v6333_v27, 0.0  ;;  %v2371_v18 = vpop.xlane.xlu0 %2370  ;;  %3236 = vst [vmem:[%s7078_s5 + $0xa8] sm:$0xff] (!%p3479_p6), %v7561_v37 }
 0x4ec   : > { %v2836_v45 = vand.u32 2147483648, %v6333_v27  ;;  %4122 = vrsqrt.f32 %v6373_v63  ;;  %v4109_v52 = vpop.eup %4108  ;;  %v2844_v5 = vsel %vm2842_vm9, %v2843_v38, %v2841_v19  ;;  %vm2854_vm12 = vcmp.eq.f32.partialorder %v6341_v42, inf  ;;  %v7501_v19 = vld [vmem:[#allocation72_spill] sm:$0xff] }
 0x4ed   : > { %v3174_v10 = vpack.c.bf16 %v6363_v6, %v6378_v1  ;;  %v2571_v17 = vmul.f32 0.032258064, %v2522_v14  ;;  %v2574_v32 = vmul.f32 0.032258064, %v2525_v59  ;;  %v4111_v49 = vpop.eup %4110  ;;  %v3000_v0 = vadd.f32 1e-05, %v2844_v5 }
 0x4ee   : > { %vm2856_vm13 = vcmp.eq.f32.partialorder %v6341_v42, 0.0  ;;  %v2857_v58 = vand.u32 2147483648, %v6341_v42  ;;  %v2524_v36 = vsub.f32 %v2367_v26, %v7499_v56  ;;  %v2832_v46 = vmul.f32 %v4111_v49, %v6333_v27  ;;  %v7502_v5 = vld [vmem:[#allocation121_spill] sm:$0xff]  ;;  %v7506_v49 = vld [vmem:[#allocation122_spill] sm:$0xff]  ;;  %3237 = vst [vmem:[%s7078_s5 + $0xb0] sm:$0xff] (!%p3479_p6), %v6378_v1 }
 0x4ef   : > { %3198 = vst [vmem:[#allocation2 + $0x58] sm:$0xff] %v3174_v10  ;;  %v6398_v62 = vmax.f32 %v2571_v17, 0.0  ;;  %v6400_v15 = vmax.f32 %v2574_v32, 0.0  ;;  %v2527_v39 = vsub.f32 %v2373_v11, %v7500_v34  ;;  %4124 = vrcp.f32 %v3000_v0  ;;  %v2377_v10 = vpop.xlane.xlu1 %2376  ;;  %v7560_v44 = vld [vmem:[#allocation98_spill] sm:$0xff] (!%p3479_p6) }
 0x4f0   : > { %vm2847_vm14 = vcmp.eq.f32.partialorder %v6353_v57, inf  ;;  %v2573_v14 = vmul.f32 0.032258064, %v2524_v36  ;;  %v2526_v59 = vsub.f32 %v2371_v18, %v5840_v2  ;;  %v7503_v6 = vsub.f32 %v7501_v19, %v7502_v5  ;;  %3235 = vst [vmem:[%s7078_s5 + $0xa0] sm:$0xff] (!%p3479_p6), %v7560_v44 }
 0x4f1   : > { %v4113_v38 = vpop.eup %4112  ;;  %v2834_v17 = vsel %vm2833_vm10, %v6333_v27, %v2832_v46  ;;  %vm2849_vm15 = vcmp.eq.f32.partialorder %v6353_v57, 0.0  ;;  %4126 = vrsqrt.f32 %v6398_v62  ;;  %v2850_v18 = vand.u32 2147483648, %v6353_v57  ;;  %v7562_v22 = vld [vmem:[#allocation51_spill] sm:$0xff] (!%p3479_p6) }
 0x4f2   : > { %v6408_v26 = vmul.f32 %v4109_v52, %v7503_v6  ;;  %v4115_v11 = vpop.eup %4114  ;;  %v2837_v32 = vsel %vm2835_vm11, %v2836_v45, %v2834_v17  ;;  %v2853_v2 = vmul.f32 %v4113_v38, %v6341_v42  ;;  %4128 = vrsqrt.f32 %v6400_v15  ;;  %v7505_v52 = vld [vmem:[#allocation73_spill] sm:$0xff]  ;;  %3238 = vst [vmem:[%s7078_s5 + $0xb8] sm:$0xff] (!%p3479_p6), %v7562_v22 }
 0x4f3   : > { %v4117_v6 = vpop.eup %4116  ;;  %v7507_v0 = vsub.f32 %v7505_v52, %v7506_v49  ;;  %v2999_v36 = vadd.f32 1e-05, %v2837_v32  ;;  %v2576_v46 = vmul.f32 0.032258064, %v2527_v39  ;;  %v2529_v34 = vsub.f32 %v2377_v10, %v5849_v41  ;;  %v7509_v49 = vld [vmem:[#allocation123_spill] sm:$0xff] }
 0x4f4   : > { %7504 = vst [vmem:[#allocation97_spill] sm:$0xff] %v6408_v26  ;;  %v4119_v19 = vpop.eup %4118  ;;  %v2855_v27 = vsel %vm2854_vm12, %v6341_v42, %v2853_v2  ;;  %v2846_v45 = vmul.f32 %v4117_v6, %v6353_v57  ;;  %v6430_v38 = vmax.f32 %v2573_v14, 0.0  ;;  %v2575_v5 = vmul.f32 0.032258064, %v2526_v59  ;;  %v7511_v2 = vld [vmem:[#allocation75_spill] sm:$0xff] }
 0x4f5   : > { %v6423_v56 = vmul.f32 %v4115_v11, %v7507_v0  ;;  %v4121_v17 = vpop.eup %4120  ;;  %v7508_v11 = vld [vmem:[#allocation74_spill] sm:$0xff]  ;;  %4130 = vrcp.f32 %v2999_v36  ;;  %v2858_v41 = vsel %vm2856_vm13, %v2857_v58, %v2855_v27  ;;  %v7512_v0 = vld [vmem:[#allocation124_spill] sm:$0xff]  ;;  %vm2868_vm0 = vcmp.eq.f32.partialorder %v6373_v63, inf  ;;  %v2375_v58 = vpop.xlane.xlu0 %2374 }
 0x4f6   : > { %v7510_v32 = vsub.f32 %v7508_v11, %v7509_v49  ;;  %v4123_v10 = vpop.eup %4122  ;;  %v7513_v6 = vsub.f32 %v7511_v2, %v7512_v0  ;;  %v3002_v59 = vadd.f32 1e-05, %v2858_v41  ;;  %4132 = vrsqrt.f32 %v6430_v38  ;;  %v7515_v0 = vld [vmem:[#allocation126_spill] sm:$0xff] }
 0x4f7   : > { %v3175_v52 = vpack.c.bf16 %v6408_v26, %v6423_v56  ;;  %v2848_v26 = vsel %vm2847_vm14, %v6353_v57, %v2846_v45  ;;  %v2867_v42 = vmul.f32 %v4123_v10, %v6373_v63  ;;  %vm2870_vm1 = vcmp.eq.f32.partialorder %v6373_v63, 0.0  ;;  %3239 = vst [vmem:[%s7078_s5 + $0xc0] sm:$0xff] (!%p3479_p6), %v6423_v56 }
 0x4f8   : > { %v6437_v39 = vmul.f32 %v4119_v19, %v7510_v32  ;;  %v6444_v14 = vmul.f32 %v4121_v17, %v7513_v6  ;;  %v2851_v36 = vsel %vm2849_vm15, %v2850_v18, %v2848_v26  ;;  %4134 = vrcp.f32 %v3002_v59  ;;  %v2381_v17 = vpop.xlane.xlu1 %2380 }
 0x4f9   : > { %3199 = vst [vmem:[#allocation2 + $0x60] sm:$0xff] %v3175_v52  ;;  %v3001_v27 = vadd.f32 1e-05, %v2851_v36  ;;  %v2871_v45 = vand.u32 2147483648, %v6373_v63  ;;  %v2869_v52 = vsel %vm2868_vm0, %v6373_v63, %v2867_v42  ;;  %vm2861_vm2 = vcmp.eq.f32.partialorder %v6398_v62, inf  ;;  %v4125_v18 = vpop.eup %4124 }
 0x4fa   : > { %v3176_v19 = vpack.c.bf16 %v6437_v39, %v6444_v14  ;;  %v6460_v57 = vmax.f32 %v2576_v46, 0.0  ;;  %v6462_v26 = vmax.f32 %v2575_v5, 0.0  ;;  %v2578_v49 = vmul.f32 0.032258064, %v2529_v34  ;;  %v7514_v34 = vld [vmem:[#allocation76_spill] sm:$0xff]  ;;  %3241 = vst [vmem:[%s7078_s5 + $0xd0] sm:$0xff] (!%p3479_p6), %v6444_v14 }
 0x4fb   : > { %4136 = vrcp.f32 %v3001_v27  ;;  %v2872_v11 = vsel %vm2870_vm1, %v2871_v45, %v2869_v52  ;;  %v2528_v32 = vsub.f32 %v2375_v58, %v5852_v40  ;;  %v4127_v41 = vpop.eup %4126  ;;  %vm2863_vm3 = vcmp.eq.f32.partialorder %v6398_v62, 0.0  ;;  %v2379_v52 = vpop.xlane.xlu0 %2378  ;;  %v7563_v13 = vld [vmem:[#allocation97_spill] sm:$0xff] (!%p3479_p6)  ;;  %3242 = vst [vmem:[%s7078_s5 + $0xd8] sm:$0xff] (!%p3479_p6), %v6437_v39 }
 0x4fc   : > { %3200 = vst [vmem:[#allocation2 + $0x68] sm:$0xff] %v3176_v19  ;;  %v3004_v10 = vadd.f32 1e-05, %v2872_v11  ;;  %4138 = vrsqrt.f32 %v6460_v57  ;;  %v2531_v63 = vsub.f32 %v2381_v17, %v5855_v20  ;;  %v4129_v2 = vpop.eup %4128  ;;  %v2860_v46 = vmul.f32 %v4127_v41, %v6398_v62  ;;  %v7517_v11 = vld [vmem:[#allocation77_spill] sm:$0xff]  ;;  %v7518_v41 = vld [vmem:[#allocation127_spill] sm:$0xff]  ;;  %3240 = vst [vmem:[%s7078_s5 + $0xc8] sm:$0xff] (!%p3479_p6), %v7563_v13 }
 0x4fd   : > { %v2864_v5 = vand.u32 2147483648, %v6398_v62  ;;  %vm2882_vm4 = vcmp.eq.f32.partialorder %v6400_v15, inf  ;;  %4140 = vrsqrt.f32 %v6462_v26  ;;  %v7516_v40 = vsub.f32 %v7514_v34, %v7515_v0 }
 0x4fe   : > { %v2881_v59 = vmul.f32 %v4129_v2, %v6400_v15  ;;  %vm2884_vm5 = vcmp.eq.f32.partialorder %v6400_v15, 0.0  ;;  %v2885_v20 = vand.u32 2147483648, %v6400_v15  ;;  %4142 = vrcp.f32 %v3004_v10 }
 0x4ff   : > { %v6475_v6 = vmul.f32 %v4125_v18, %v7516_v40  ;;  %v2862_v36 = vsel %vm2861_vm2, %v6398_v62, %v2860_v46  ;;  %v6483_v42 = vmax.f32 %v2578_v49, 0.0  ;;  %v2577_v58 = vmul.f32 0.032258064, %v2528_v32  ;;  %v4131_v19 = vpop.eup %4130  ;;  %v7520_v40 = vld [vmem:[#allocation78_spill] sm:$0xff] }
 0x500   : > { %v2865_v27 = vsel %vm2863_vm3, %v2864_v5, %v2862_v36  ;;  %v2883_v45 = vsel %vm2882_vm4, %v6400_v15, %v2881_v59  ;;  %vm2875_vm6 = vcmp.eq.f32.partialorder %v6430_v38, inf  ;;  %v2580_v17 = vmul.f32 0.032258064, %v2531_v63  ;;  %v4133_v18 = vpop.eup %4132  ;;  %v7521_v59 = vld [vmem:[#allocation99_spill] sm:$0xff] }
 0x501   : > { %v7519_v10 = vsub.f32 %v7517_v11, %v7518_v41  ;;  %v3003_v46 = vadd.f32 1e-05, %v2865_v27  ;;  %v2886_v49 = vsel %vm2884_vm5, %v2885_v20, %v2883_v45  ;;  %4144 = vrsqrt.f32 %v6483_v42  ;;  %v7524_v11 = vld [vmem:[#allocation100_spill] sm:$0xff]  ;;  %3244 = vst [vmem:[%s7078_s5 + $0xe8] sm:$0xff] (!%p3479_p6), %v6475_v6 }
 0x502   : > { %v3006_v32 = vadd.f32 1e-05, %v2886_v49  ;;  %v2874_v62 = vmul.f32 %v4133_v18, %v6430_v38  ;;  %vm2877_vm7 = vcmp.eq.f32.partialorder %v6430_v38, 0.0  ;;  %v2878_v15 = vand.u32 2147483648, %v6430_v38  ;;  %v4135_v5 = vpop.eup %4134 }
 0x503   : > { %v6492_v2 = vmul.f32 %v4131_v19, %v7519_v10  ;;  %4146 = vrcp.f32 %v3003_v46  ;;  %v6500_v34 = vmax.f32 %v2577_v58, 0.0  ;;  %v2530_v0 = vsub.f32 %v2379_v52, %v5860_v23  ;;  %v2385_v23 = vpop.xlane.xlu1 %2384  ;;  %v7523_v52 = vld [vmem:[#allocation79_spill] sm:$0xff] }
 0x504   : > { %v7522_v20 = vsub.f32 %v7520_v40, %v7521_v59  ;;  %4148 = vrcp.f32 %v3006_v32  ;;  %v2876_v19 = vsel %vm2875_vm6, %v6430_v38, %v2874_v62  ;;  %v6511_v27 = vmax.f32 %v2580_v17, 0.0  ;;  %v2383_v17 = vpop.xlane.xlu0 %2382 }
 0x505   : > { %v3177_v63 = vpack.c.bf16 %v6475_v6, %v6492_v2  ;;  %v4137_v45 = vpop.eup %4136  ;;  %v2879_v18 = vsel %vm2877_vm7, %v2878_v15, %v2876_v19  ;;  %vm2896_vm8 = vcmp.eq.f32.partialorder %v6460_v57, inf  ;;  %vm2898_vm9 = vcmp.eq.f32.partialorder %v6460_v57, 0.0  ;;  %3243 = vst [vmem:[%s7078_s5 + $0xe0] sm:$0xff] (!%p3479_p6), %v6492_v2 }
 0x506   : > { %v6506_v36 = vmul.f32 %v4135_v5, %v7522_v20  ;;  %4150 = vrsqrt.f32 %v6500_v34  ;;  %v4139_v58 = vpop.eup %4138  ;;  %v7525_v41 = vsub.f32 %v7523_v52, %v7524_v11  ;;  %v3005_v46 = vadd.f32 1e-05, %v2879_v18 }
 0x507   : > { %3201 = vst [vmem:[#allocation2 + $0x70] sm:$0xff] %v3177_v63  ;;  %v2899_v38 = vand.u32 2147483648, %v6460_v57  ;;  %4152 = vrsqrt.f32 %v6511_v27  ;;  %v4141_v49 = vpop.eup %4140  ;;  %v2895_v32 = vmul.f32 %v4139_v58, %v6460_v57  ;;  %vm2889_vm10 = vcmp.eq.f32.partialorder %v6462_v26, inf }
 0x508   : > { %v6519_v10 = vmul.f32 %v4137_v45, %v7525_v41  ;;  %vm2891_vm11 = vcmp.eq.f32.partialorder %v6462_v26, 0.0  ;;  %v2892_v62 = vand.u32 2147483648, %v6462_v26  ;;  %4154 = vrcp.f32 %v3005_v46  ;;  %v4143_v40 = vpop.eup %4142  ;;  %3246 = vst [vmem:[%s7078_s5 + $0xf8] sm:$0xff] (!%p3479_p6), %v6506_v36 }
 0x509   : > { %v2888_v5 = vmul.f32 %v4141_v49, %v6462_v26  ;;  %v2579_v63 = vmul.f32 0.032258064, %v2530_v0  ;;  %v2897_v59 = vsel %vm2896_vm8, %v6460_v57, %v2895_v32  ;;  %vm2910_vm12 = vcmp.eq.f32.partialorder %v6483_v42, inf }
 0x50a   : > { %v3178_v15 = vpack.c.bf16 %v6506_v36, %v6519_v10  ;;  %v2533_v20 = vsub.f32 %v2385_v23, %v5863_v4  ;;  %v2532_v19 = vsub.f32 %v2383_v17, %v5866_v43  ;;  %v2900_v45 = vsel %vm2898_vm9, %v2899_v38, %v2897_v59  ;;  %v2389_v4 = vpop.xlane.xlu1 %2388  ;;  %v7526_v23 = vld [vmem:[#allocation80_spill] sm:$0xff]  ;;  %v7527_v43 = vld [vmem:[#allocation131_spill] sm:$0xff]  ;;  %3245 = vst [vmem:[%s7078_s5 + $0xf0] sm:$0xff] (!%p3479_p6), %v6519_v10 }
 0x50b   : > { %v2890_v18 = vsel %vm2889_vm10, %v6462_v26, %v2888_v5  ;;  %vm2912_vm13 = vcmp.eq.f32.partialorder %v6483_v42, 0.0  ;;  %v6540_v0 = vmax.f32 %v2579_v63, 0.0  ;;  %v4145_v58 = vpop.eup %4144  ;;  %v3008_v52 = vadd.f32 1e-05, %v2900_v45  ;;  %v7530_v63 = vld [vmem:[#allocation81_spill] sm:$0xff]  ;;  %v7531_v59 = vld [vmem:[#allocation104_spill] sm:$0xff] }
 0x50c   : > { %3202 = vst [vmem:[#allocation2 + $0x78] sm:$0xff] %v3178_v15  ;;  %v2893_v11 = vsel %vm2891_vm11, %v2892_v62, %v2890_v18  ;;  %v2582_v41 = vmul.f32 0.032258064, %v2533_v20  ;;  %v2581_v46 = vmul.f32 0.032258064, %v2532_v19  ;;  %v7528_v17 = vsub.f32 %v7526_v23, %v7527_v43  ;;  %v2387_v62 = vpop.xlane.xlu0 %2386 }
 0x50d   : > { %v3007_v57 = vadd.f32 1e-05, %v2893_v11  ;;  %v2909_v38 = vmul.f32 %v4145_v58, %v6483_v42  ;;  %4156 = vrsqrt.f32 %v6540_v0  ;;  %v4147_v32 = vpop.eup %4146  ;;  %v2913_v15 = vand.u32 2147483648, %v6483_v42 }
 0x50e   : > { %v6547_v49 = vmul.f32 %v4143_v40, %v7528_v17  ;;  %4158 = vrcp.f32 %v3008_v52  ;;  %vm2903_vm14 = vcmp.eq.f32.partialorder %v6500_v34, inf  ;;  %v6553_v26 = vmax.f32 %v2582_v41, 0.0  ;;  %v4149_v5 = vpop.eup %4148  ;;  %v7533_v17 = vld [vmem:[#allocation82_spill] sm:$0xff] }
 0x50f   : > { %v7532_v20 = vsub.f32 %v7530_v63, %v7531_v59  ;;  %4160 = vrcp.f32 %v3007_v57  ;;  %v2911_v19 = vsel %vm2910_vm12, %v6483_v42, %v2909_v38  ;;  %v6563_v45 = vmax.f32 %v2581_v46, 0.0  ;;  %v7534_v57 = vld [vmem:[#allocation132_spill] sm:$0xff]  ;;  %v7537_v59 = vld [vmem:[#allocation133_spill] sm:$0xff] }
 0x510   : > { %7529 = vst [vmem:[#allocation54_spill] sm:$0xff] %v6547_v49  ;;  %v4151_v18 = vpop.eup %4150  ;;  %v2914_v58 = vsel %vm2912_vm13, %v2913_v15, %v2911_v19  ;;  %vm2905_vm15 = vcmp.eq.f32.partialorder %v6500_v34, 0.0  ;;  %4162 = vrsqrt.f32 %v6553_v26  ;;  %v2535_v52 = vsub.f32 %v2389_v4, %v5870_v12  ;;  %v2393_v12 = vpop.xlane.xlu1 %2392 }
 0x511   : > { %v6558_v40 = vmul.f32 %v4147_v32, %v7532_v20  ;;  %v4153_v11 = vpop.eup %4152  ;;  %v3010_v23 = vadd.f32 1e-05, %v2914_v58  ;;  %v2902_v43 = vmul.f32 %v4151_v18, %v6500_v34  ;;  %v2906_v46 = vand.u32 2147483648, %v6500_v34 }
 0x512   : > { %v7535_v38 = vsub.f32 %v7533_v17, %v7534_v57  ;;  %v2923_v32 = vmul.f32 %v4153_v11, %v6511_v27  ;;  %vm2924_vm0 = vcmp.eq.f32.partialorder %v6511_v27, inf  ;;  %4164 = vrsqrt.f32 %v6563_v45  ;;  %v4155_v4 = vpop.eup %4154 }
 0x513   : > { %v3179_v41 = vpack.c.bf16 %v6547_v49, %v6558_v40  ;;  %4166 = vrcp.f32 %v3010_v23  ;;  %v2904_v15 = vsel %vm2903_vm14, %v6500_v34, %v2902_v43  ;;  %vm2926_vm1 = vcmp.eq.f32.partialorder %v6511_v27, 0.0  ;;  %3247 = vst [vmem:[%s7078_s5 + $0x100] sm:$0xff] (!%p3479_p6), %v6558_v40 }
 0x514   : > { %v6577_v42 = vmul.f32 %v4149_v5, %v7535_v38  ;;  %v2927_v63 = vand.u32 2147483648, %v6511_v27  ;;  %v7536_v5 = vld [vmem:[#allocation83_spill] sm:$0xff]  ;;  %v2907_v18 = vsel %vm2905_vm15, %v2906_v46, %v2904_v15  ;;  %v2925_v58 = vsel %vm2924_vm0, %v6511_v27, %v2923_v32  ;;  %v7539_v38 = vld [vmem:[#allocation85_spill] sm:$0xff] }
 0x515   : > { %3203 = vst [vmem:[#allocation2 + $0x80] sm:$0xff] %v3179_v41  ;;  %v7538_v20 = vsub.f32 %v7536_v5, %v7537_v59  ;;  %v2584_v11 = vmul.f32 0.032258064, %v2535_v52  ;;  %v2391_v41 = vpop.xlane.xlu0 %2390  ;;  %v3009_v23 = vadd.f32 1e-05, %v2907_v18  ;;  %v2534_v43 = vsub.f32 %v2387_v62, %v5873_v61  ;;  %v7540_v61 = vld [vmem:[#allocation86_spill] sm:$0xff] }
 0x516   : > { %v2928_v17 = vsel %vm2926_vm1, %v2927_v63, %v2925_v58  ;;  %v2537_v57 = vsub.f32 %v2393_v12, %v5888_v33  ;;  %v3055_v49 = vsub.f32 %v7539_v38, %v5772_v53  ;;  %v2536_v46 = vsub.f32 %v2391_v41, %v6287_v60  ;;  %v7541_v12 = vld [vmem:[#allocation84_spill] sm:$0xff]  ;;  %v7542_v15 = vld [vmem:[#allocation137_spill] sm:$0xff]  ;;  %3250 = vst [vmem:[%s7078_s5 + $0x118] sm:$0xff] (!%p3479_p6), %v6577_v42 }
 0x517   : > { %v6590_v19 = vmul.f32 %v4155_v4, %v7538_v20  ;;  %v3012_v5 = vadd.f32 1e-05, %v2928_v17  ;;  %v6601_v59 = vmax.f32 %v2584_v11, 0.0  ;;  %v4157_v34 = vpop.eup %4156  ;;  %4168 = vrcp.f32 %v3009_v23  ;;  %v7564_v55 = vld [vmem:[#allocation54_spill] sm:$0xff] (!%p3479_p6) }
 0x518   : > { %v2583_v27 = vmul.f32 0.032258064, %v2534_v43  ;;  %v2586_v52 = vmul.f32 0.032258064, %v2537_v57  ;;  %v4159_v32 = vpop.eup %4158  ;;  %v3058_v62 = vsub.f32 %v7540_v61, %v5788_v7  ;;  %v2916_v33 = vmul.f32 %v4157_v34, %v6540_v0  ;;  %3248 = vst [vmem:[%s7078_s5 + $0x108] sm:$0xff] (!%p3479_p6), %v7564_v55 }
 0x519   : > { %v3180_v4 = vpack.c.bf16 %v6577_v42, %v6590_v19  ;;  %vm2917_vm2 = vcmp.eq.f32.partialorder %v6540_v0, inf  ;;  %vm2919_vm3 = vcmp.eq.f32.partialorder %v6540_v0, 0.0  ;;  %v4161_v53 = vpop.eup %4160  ;;  %v7543_v63 = vsub.f32 %v7541_v12, %v7542_v15  ;;  %3249 = vst [vmem:[%s7078_s5 + $0x110] sm:$0xff] (!%p3479_p6), %v6590_v19 }
 0x51a   : > { %v2920_v18 = vand.u32 2147483648, %v6540_v0  ;;  %4170 = vrsqrt.f32 %v6601_v59  ;;  %v6616_v60 = vmax.f32 %v2583_v27, 0.0  ;;  %v4163_v7 = vpop.eup %4162  ;;  %v6618_v58 = vmul.f32 %v4161_v53, %v3055_v49 }
 0x51b   : > { %3204 = vst [vmem:[#allocation2 + $0x88] sm:$0xff] %v3180_v4  ;;  %v6612_v20 = vmul.f32 %v4159_v32, %v7543_v63  ;;  %4172 = vrcp.f32 %v3012_v5  ;;  %v2918_v11 = vsel %vm2917_vm2, %v6540_v0, %v2916_v33  ;;  %v6621_v41 = vmax.f32 %v2586_v52, 0.0  ;;  %v7544_v33 = vld [vmem:[#allocation87_spill] sm:$0xff] }
 0x51c   : > { %v2921_v23 = vsel %vm2919_vm3, %v2920_v18, %v2918_v11  ;;  %v2937_v17 = vmul.f32 %v4163_v7, %v6553_v26  ;;  %4174 = vrsqrt.f32 %v6616_v60  ;;  %v2585_v43 = vmul.f32 0.032258064, %v2536_v46  ;;  %v4165_v57 = vpop.eup %4164  ;;  %3251 = vst [vmem:[%s7078_s5 + $0x120] sm:$0xff] (!%p3479_p6), %v6618_v58 }
 0x51d   : > { %v3181_v38 = vpack.c.bf16 %v6612_v20, %v6618_v58  ;;  %v3011_v4 = vadd.f32 1e-05, %v2921_v23  ;;  %vm2938_vm4 = vcmp.eq.f32.partialorder %v6553_v26, inf  ;;  %v2941_v49 = vand.u32 2147483648, %v6553_v26  ;;  %v4167_v5 = vpop.eup %4166  ;;  %3252 = vst [vmem:[%s7078_s5 + $0x128] sm:$0xff] (!%p3479_p6), %v6612_v20 }
 0x51e   : > { %v2939_v0 = vsel %vm2938_vm4, %v6553_v26, %v2937_v17  ;;  %vm2940_vm5 = vcmp.eq.f32.partialorder %v6553_v26, 0.0  ;;  %v2930_v34 = vmul.f32 %v4165_v57, %v6563_v45  ;;  %4176 = vrsqrt.f32 %v6621_v41 }
 0x51f   : > { %3205 = vst [vmem:[#allocation2 + $0x90] sm:$0xff] %v3181_v38  ;;  %4178 = vrcp.f32 %v3011_v4  ;;  %v2942_v27 = vsel %vm2940_vm5, %v2941_v49, %v2939_v0  ;;  %vm2931_vm6 = vcmp.eq.f32.partialorder %v6563_v45, inf  ;;  %v2934_v52 = vand.u32 2147483648, %v6563_v45  ;;  %v7547_v4 = vld [vmem:[#allocation140_spill] sm:$0xff]  ;;  %v7548_v49 = vld [vmem:[#allocation90_spill] sm:$0xff] }
 0x520   : > { %v3014_v46 = vadd.f32 1e-05, %v2942_v27  ;;  %v2932_v32 = vsel %vm2931_vm6, %v6563_v45, %v2930_v34  ;;  %vm2933_vm7 = vcmp.eq.f32.partialorder %v6563_v45, 0.0  ;;  %v2633_v61 = vmax.f32 %v2585_v43, 0.0  ;;  %v7546_v43 = vld [vmem:[#allocation89_spill] sm:$0xff] }
 0x521   : > { %v3057_v26 = vsub.f32 %v7544_v33, %v5791_v24  ;;  %v6639_v53 = vmul.f32 %v4167_v5, %v3058_v62  ;;  %v2935_v12 = vsel %vm2933_vm7, %v2934_v52, %v2932_v32  ;;  %v4169_v15 = vpop.eup %4168  ;;  %v7545_v24 = vld [vmem:[#allocation88_spill] sm:$0xff]  ;;  %v3059_v57 = vsub.f32 %v7546_v43, %v5801_v8 }
 0x522   : > { %4180 = vrcp.f32 %v3014_v46  ;;  %v3013_v63 = vadd.f32 1e-05, %v2935_v12  ;;  %v3060_v62 = vsub.f32 %v7545_v24, %v5798_v28  ;;  %vm2952_vm8 = vcmp.eq.f32.partialorder %v6601_v59, inf  ;;  %v7550_v24 = vld [vmem:[#allocation91_spill] sm:$0xff] }
 0x523   : > { %v6641_v18 = vmul.f32 %v4169_v15, %v3057_v26  ;;  %4182 = vrsqrt.f32 %v2633_v61  ;;  %v2955_v38 = vand.u32 2147483648, %v6601_v59  ;;  %v3062_v5 = vsub.f32 %v7548_v49, %v7547_v4  ;;  %3254 = vst [vmem:[%s7078_s5 + $0x138] sm:$0xff] (!%p3479_p6), %v6639_v53 }
 0x524   : > { %v4171_v7 = vpop.eup %4170  ;;  %4184 = vrcp.f32 %v3013_v63  ;;  %vm2954_vm9 = vcmp.eq.f32.partialorder %v6601_v59, 0.0  ;;  %vm2945_vm10 = vcmp.eq.f32.partialorder %v6616_v60, inf  ;;  %v2948_v8 = vand.u32 2147483648, %v6616_v60 }
 0x525   : > { %v4173_v11 = vpop.eup %4172  ;;  %v3182_v23 = vpack.c.bf16 %v6639_v53, %v6641_v18  ;;  %v2951_v45 = vmul.f32 %v4171_v7, %v6601_v59  ;;  %vm2947_vm11 = vcmp.eq.f32.partialorder %v6616_v60, 0.0  ;;  %vm2966_vm12 = vcmp.eq.f32.partialorder %v6621_v41, inf  ;;  %3253 = vst [vmem:[%s7078_s5 + $0x130] sm:$0xff] (!%p3479_p6), %v6641_v18 }
 0x526   : > { %v4175_v17 = vpop.eup %4174  ;;  %v6657_v52 = vmul.f32 %v4173_v11, %v3060_v62  ;;  %v2969_v15 = vand.u32 2147483648, %v6621_v41  ;;  %vm2968_vm13 = vcmp.eq.f32.partialorder %v6621_v41, 0.0  ;;  %vm2959_vm14 = vcmp.eq.f32.partialorder %v2633_v61, inf }
 0x527   : > { %3206 = vst [vmem:[#allocation2 + $0x98] sm:$0xff] %v3182_v23  ;;  %v2953_v0 = vsel %vm2952_vm8, %v6601_v59, %v2951_v45  ;;  %v2944_v34 = vmul.f32 %v4175_v17, %v6616_v60  ;;  %v7549_v17 = vld [vmem:[#allocation141_spill] sm:$0xff]  ;;  %vm2961_vm15 = vcmp.eq.f32.partialorder %v2633_v61, 0.0 }
 0x528   : > { %v4177_v27 = vpop.eup %4176  ;;  %v2956_v28 = vsel %vm2954_vm9, %v2955_v38, %v2953_v0  ;;  %v3061_v62 = vsub.f32 %v7550_v24, %v7549_v17  ;;  %v7557_v17 = vld [vmem:[#allocation95_spill] sm:$0xff]  ;;  %3256 = vst [vmem:[%s7078_s5 + $0x148] sm:$0xff] (!%p3479_p6), %v6657_v52 }
 0x529   : > { %v4179_v46 = vpop.eup %4178  ;;  %v3016_v32 = vadd.f32 1e-05, %v2956_v28  ;;  %v2946_v33 = vsel %vm2945_vm10, %v6616_v60, %v2944_v34  ;;  %v2965_v26 = vmul.f32 %v4177_v27, %v6621_v41  ;;  %v3065_v24 = vsub.f32 %v7557_v17, %v5837_v9  ;;  %v7558_v9 = vld [vmem:[#allocation96_spill] sm:$0xff] (!%p3479_p6) }
 0x52a   : > { %v6664_v12 = vmul.f32 %v4179_v46, %v3059_v57  ;;  %v2949_v59 = vsel %vm2947_vm11, %v2948_v8, %v2946_v33  ;;  %v7552_v8 = vld [vmem:[#allocation92_spill] sm:$0xff]  ;;  %v7553_v33 = vld [vmem:[#allocation143_spill] sm:$0xff]  ;;  %3233 = vst [vmem:[%s7078_s5 + $0x90] sm:$0xff] (!%p3479_p6), %v7558_v9 }
 0x52b   : > { %4186 = vrcp.f32 %v3016_v32  ;;  %v3015_v63 = vadd.f32 1e-05, %v2949_v59  ;;  %v2967_v7 = vsel %vm2966_vm12, %v6621_v41, %v2965_v26  ;;  %v2962_v41 = vand.u32 2147483648, %v2633_v61  ;;  %v7554_v26 = vld [vmem:[#allocation93_spill] sm:$0xff] }
 0x52c   : > { %v4181_v11 = vpop.eup %4180  ;;  %v3183_v23 = vpack.c.bf16 %v6657_v52, %v6664_v12  ;;  %v2970_v60 = vsel %vm2968_vm13, %v2969_v15, %v2967_v7  ;;  %v3063_v59 = vsub.f32 %v7554_v26, %v7553_v33  ;;  %3255 = vst [vmem:[%s7078_s5 + $0x140] sm:$0xff] (!%p3479_p6), %v6664_v12 }
 0x52d   : > { %v4183_v45 = vpop.eup %4182  ;;  %v6674_v43 = vmul.f32 %v4181_v11, %v3062_v5  ;;  %4188 = vrcp.f32 %v3015_v63  ;;  %v3018_v57 = vadd.f32 1e-05, %v2970_v60  ;;  %v7551_v5 = vld [vmem:[#allocation142_spill] sm:$0xff] }
 0x52e   : > { %v4185_v38 = vpop.eup %4184  ;;  %3207 = vst [vmem:[#allocation2 + $0xa0] sm:$0xff] %v3183_v23  ;;  %v2958_v4 = vmul.f32 %v4183_v45, %v2633_v61  ;;  %v3064_v46 = vsub.f32 %v7552_v8, %v7551_v5  ;;  %v7556_v60 = vld [vmem:[#allocation94_spill] sm:$0xff] }
 0x52f   : > { %v6676_v49 = vmul.f32 %v4185_v38, %v3061_v62  ;;  %4190 = vrcp.f32 %v3018_v57  ;;  %3258 = vst [vmem:[%s7078_s5 + $0x158] sm:$0xff] (!%p3479_p6), %v6674_v43 }
 0x530   : > { %v2960_v0 = vsel %vm2959_vm14, %v2633_v61, %v2958_v4  ;;  %v7555_v61 = vld [vmem:[#allocation145_spill] sm:$0xff] }
 0x531   : > { %v3184_v34 = vpack.c.bf16 %v6674_v43, %v6676_v49  ;;  %v2963_v27 = vsel %vm2961_vm15, %v2962_v41, %v2960_v0  ;;  %v3066_v45 = vsub.f32 %v7556_v60, %v7555_v61  ;;  %3257 = vst [vmem:[%s7078_s5 + $0x150] sm:$0xff] (!%p3479_p6), %v6676_v49 }
 0x532   : > { %v3017_v28 = vadd.f32 1e-05, %v2963_v27 }
 0x533   : > { %3208 = vst [vmem:[#allocation2 + $0xa8] sm:$0xff] %v3184_v34 }
 0x534   : > { %4192 = vrcp.f32 %v3017_v28 }
 0x535   : > { %v4187_v32 = vpop.eup %4186 }
 0x536   : > { %v3160_v15 = vmul.f32 %v4187_v32, %v3064_v46 }
 0x537   : > { %v4189_v63 = vpop.eup %4188 }
 0x538   : > { %v3159_v7 = vmul.f32 %v4189_v63, %v3063_v59  ;;  %3260 = vst [vmem:[%s7078_s5 + $0x168] sm:$0xff] (!%p3479_p6), %v3160_v15 }
 0x539   : > { %v4191_v11 = vpop.eup %4190 }
 0x53a   : > { %v3185_v23 = vpack.c.bf16 %v3160_v15, %v3159_v7  ;;  %v3162_v62 = vmul.f32 %v4191_v11, %v3066_v45  ;;  %3259 = vst [vmem:[%s7078_s5 + $0x160] sm:$0xff] (!%p3479_p6), %v3159_v7 }
 0x53c   : > { %3209 = vst [vmem:[#allocation2 + $0xb0] sm:$0xff] %v3185_v23  ;;  %3262 = vst [vmem:[%s7078_s5 + $0x178] sm:$0xff] (!%p3479_p6), %v3162_v62 }
 0x53d   : > { %3214 = sbr.rel (%p3479_p6) target bundleno = 1348 (0x544), region = 48 }
 0x53e   : > { %v4193_v57 = vpop.eup %4192 }
 0x53f   : > { %v3161_v38 = vmul.f32 %v4193_v57, %v3065_v24 }
 0x541   : > { %v3186_v4 = vpack.c.bf16 %v3162_v62, %v3161_v38  ;;  %3261 = vst [vmem:[%s7078_s5 + $0x170] sm:$0xff] (!%p3479_p6), %v3161_v38 }
 0x543   : > { %3210 = vst [vmem:[#allocation2 + $0xb8] sm:$0xff] %v3186_v4 }
 0x544 PF: > { %p3480_p7 = scmp.ne.s32.totalorder %s4239_s19, 2 }
 0x545   : > { %v7565_v25 = vld [vmem:[#allocation4_spill] sm:$0xff] (!%p3480_p7)  ;;  %v7566_v30 = vld [vmem:[#allocation6_spill] sm:$0xff] (!%p3480_p7)  ;;  %v7567_v21 = vld [vmem:[#allocation3_spill] sm:$0xff] (!%p3480_p7) }
 0x546   : > { %3266 = sbr.rel (%p3480_p7) target bundleno = 1374 (0x55e), region = 52  ;;  %3267 = vst [vmem:[%s7077_s4] sm:$0xff] (!%p3480_p7), %v7565_v25  ;;  %3268 = vst [vmem:[%s7077_s4 + $0x8] sm:$0xff] (!%p3480_p7), %v7566_v30  ;;  %v7568_v50 = vld [vmem:[#allocation5_spill] sm:$0xff] (!%p3480_p7)  ;;  %v7569_v31 = vld [vmem:[#allocation8_spill] sm:$0xff] (!%p3480_p7) }
 0x547   : > { %3269 = vst [vmem:[%s7077_s4 + $0x10] sm:$0xff] (!%p3480_p7), %v7567_v21  ;;  %3270 = vst [vmem:[%s7077_s4 + $0x18] sm:$0xff] (!%p3480_p7), %v7568_v50  ;;  %v7570_v3 = vld [vmem:[#allocation10_spill] sm:$0xff] (!%p3480_p7)  ;;  %v7571_v48 = vld [vmem:[#allocation7_spill] sm:$0xff] (!%p3480_p7) }
 0x548   : > { %3271 = vst [vmem:[%s7077_s4 + $0x20] sm:$0xff] (!%p3480_p7), %v7569_v31  ;;  %3272 = vst [vmem:[%s7077_s4 + $0x28] sm:$0xff] (!%p3480_p7), %v7570_v3  ;;  %v7572_v47 = vld [vmem:[#allocation9_spill] sm:$0xff] (!%p3480_p7)  ;;  %v7573_v16 = vld [vmem:[#allocation12_spill] sm:$0xff] (!%p3480_p7) }
 0x549   : > { %3273 = vst [vmem:[%s7077_s4 + $0x30] sm:$0xff] (!%p3480_p7), %v7571_v48  ;;  %3274 = vst [vmem:[%s7077_s4 + $0x38] sm:$0xff] (!%p3480_p7), %v7572_v47  ;;  %v7574_v29 = vld [vmem:[#allocation14_spill] sm:$0xff] (!%p3480_p7)  ;;  %v7575_v35 = vld [vmem:[#allocation11_spill] sm:$0xff] (!%p3480_p7) }
 0x54a   : > { %3275 = vst [vmem:[%s7077_s4 + $0x40] sm:$0xff] (!%p3480_p7), %v7573_v16  ;;  %3276 = vst [vmem:[%s7077_s4 + $0x48] sm:$0xff] (!%p3480_p7), %v7574_v29  ;;  %v7576_v51 = vld [vmem:[#allocation13_spill] sm:$0xff] (!%p3480_p7)  ;;  %v7577_v1 = vld [vmem:[#allocation16_spill] sm:$0xff] (!%p3480_p7) }
 0x54b   : > { %3277 = vst [vmem:[%s7077_s4 + $0x50] sm:$0xff] (!%p3480_p7), %v7575_v35  ;;  %3278 = vst [vmem:[%s7077_s4 + $0x58] sm:$0xff] (!%p3480_p7), %v7576_v51  ;;  %v7578_v56 = vld [vmem:[#allocation18_spill] sm:$0xff] (!%p3480_p7)  ;;  %v7579_v39 = vld [vmem:[#allocation15_spill] sm:$0xff] (!%p3480_p7) }
 0x54c   : > { %3279 = vst [vmem:[%s7077_s4 + $0x60] sm:$0xff] (!%p3480_p7), %v7577_v1  ;;  %3280 = vst [vmem:[%s7077_s4 + $0x68] sm:$0xff] (!%p3480_p7), %v7578_v56  ;;  %v7580_v14 = vld [vmem:[#allocation17_spill] sm:$0xff] (!%p3480_p7)  ;;  %v7581_v6 = vld [vmem:[#allocation20_spill] sm:$0xff] (!%p3480_p7) }
 0x54d   : > { %3281 = vst [vmem:[%s7077_s4 + $0x70] sm:$0xff] %v7579_v39  ;;  %3282 = vst [vmem:[%s7077_s4 + $0x78] sm:$0xff] %v7580_v14  ;;  %v7582_v2 = vld [vmem:[#allocation22_spill] sm:$0xff]  ;;  %v7583_v36 = vld [vmem:[#allocation19_spill] sm:$0xff] }
 0x54e   : > { %3283 = vst [vmem:[%s7077_s4 + $0x80] sm:$0xff] %v7581_v6  ;;  %3284 = vst [vmem:[%s7077_s4 + $0x88] sm:$0xff] %v7582_v2  ;;  %v7584_v10 = vld [vmem:[#allocation21_spill] sm:$0xff]  ;;  %v7585_v40 = vld [vmem:[#allocation24_spill] sm:$0xff] }
 0x54f   : > { %3285 = vst [vmem:[%s7077_s4 + $0x90] sm:$0xff] %v7583_v36  ;;  %3286 = vst [vmem:[%s7077_s4 + $0x98] sm:$0xff] %v7584_v10  ;;  %v7586_v42 = vld [vmem:[#allocation26_spill] sm:$0xff]  ;;  %v7587_v19 = vld [vmem:[#allocation23_spill] sm:$0xff] }
 0x550   : > { %3287 = vst [vmem:[%s7077_s4 + $0xa0] sm:$0xff] %v7585_v40  ;;  %3288 = vst [vmem:[%s7077_s4 + $0xa8] sm:$0xff] %v7586_v42  ;;  %v7588_v20 = vld [vmem:[#allocation25_spill] sm:$0xff]  ;;  %v7589_v58 = vld [vmem:[#allocation28_spill] sm:$0xff] }
 0x551   : > { %3289 = vst [vmem:[%s7077_s4 + $0xb0] sm:$0xff] %v7587_v19  ;;  %3290 = vst [vmem:[%s7077_s4 + $0xb8] sm:$0xff] %v7588_v20  ;;  %v7590_v53 = vld [vmem:[#allocation30_spill] sm:$0xff]  ;;  %v7591_v18 = vld [vmem:[#allocation27_spill] sm:$0xff] }
 0x552   : > { %3291 = vst [vmem:[%s7077_s4 + $0xc0] sm:$0xff] %v7589_v58  ;;  %3292 = vst [vmem:[%s7077_s4 + $0xc8] sm:$0xff] %v7590_v53  ;;  %v7592_v52 = vld [vmem:[#allocation29_spill] sm:$0xff]  ;;  %v7593_v12 = vld [vmem:[#allocation32_spill] sm:$0xff] }
 0x553   : > { %3293 = vst [vmem:[%s7077_s4 + $0xd0] sm:$0xff] %v7591_v18  ;;  %3294 = vst [vmem:[%s7077_s4 + $0xd8] sm:$0xff] %v7592_v52  ;;  %v7594_v43 = vld [vmem:[#allocation34_spill] sm:$0xff]  ;;  %v7595_v49 = vld [vmem:[#allocation31_spill] sm:$0xff] }
 0x554   : > { %3295 = vst [vmem:[%s7077_s4 + $0xe0] sm:$0xff] %v7593_v12  ;;  %3296 = vst [vmem:[%s7077_s4 + $0xe8] sm:$0xff] %v7594_v43  ;;  %v7596_v41 = vld [vmem:[#allocation33_spill] sm:$0xff]  ;;  %v7597_v0 = vld [vmem:[#allocation36_spill] sm:$0xff] }
 0x555   : > { %3297 = vst [vmem:[%s7077_s4 + $0xf0] sm:$0xff] %v7595_v49  ;;  %3298 = vst [vmem:[%s7077_s4 + $0xf8] sm:$0xff] %v7596_v41  ;;  %v7598_v34 = vld [vmem:[#allocation38_spill] sm:$0xff]  ;;  %v7599_v27 = vld [vmem:[#allocation35_spill] sm:$0xff] }
 0x556   : > { %3299 = vst [vmem:[%s7077_s4 + $0x100] sm:$0xff] %v7597_v0  ;;  %3300 = vst [vmem:[%s7077_s4 + $0x108] sm:$0xff] %v7598_v34  ;;  %v7600_v28 = vld [vmem:[#allocation37_spill] sm:$0xff]  ;;  %v7601_v5 = vld [vmem:[#allocation40_spill] sm:$0xff] }
 0x557   : > { %3301 = vst [vmem:[%s7077_s4 + $0x110] sm:$0xff] %v7599_v27  ;;  %3302 = vst [vmem:[%s7077_s4 + $0x118] sm:$0xff] %v7600_v28  ;;  %v7602_v8 = vld [vmem:[#allocation42_spill] sm:$0xff]  ;;  %v7603_v46 = vld [vmem:[#allocation39_spill] sm:$0xff] }
 0x558   : > { %3303 = vst [vmem:[%s7077_s4 + $0x120] sm:$0xff] %v7601_v5  ;;  %3304 = vst [vmem:[%s7077_s4 + $0x128] sm:$0xff] %v7602_v8  ;;  %v7604_v32 = vld [vmem:[#allocation41_spill] sm:$0xff]  ;;  %v7605_v33 = vld [vmem:[#allocation44_spill] sm:$0xff] }
 0x559   : > { %3305 = vst [vmem:[%s7077_s4 + $0x130] sm:$0xff] %v7603_v46  ;;  %3306 = vst [vmem:[%s7077_s4 + $0x138] sm:$0xff] %v7604_v32  ;;  %v7606_v26 = vld [vmem:[#allocation46_spill] sm:$0xff]  ;;  %v7607_v59 = vld [vmem:[#allocation43_spill] sm:$0xff] }
 0x55a   : > { %3307 = vst [vmem:[%s7077_s4 + $0x140] sm:$0xff] %v7605_v33  ;;  %3308 = vst [vmem:[%s7077_s4 + $0x148] sm:$0xff] %v7606_v26  ;;  %v7608_v15 = vld [vmem:[#allocation45_spill] sm:$0xff]  ;;  %v7609_v63 = vld [vmem:[#allocation48_spill] sm:$0xff] }
 0x55b   : > { %3309 = vst [vmem:[%s7077_s4 + $0x150] sm:$0xff] %v7607_v59  ;;  %3310 = vst [vmem:[%s7077_s4 + $0x158] sm:$0xff] %v7608_v15  ;;  %v7610_v7 = vld [vmem:[#allocation50_spill] sm:$0xff]  ;;  %v7611_v11 = vld [vmem:[#allocation47_spill] sm:$0xff] }
 0x55c   : > { %3311 = vst [vmem:[%s7077_s4 + $0x160] sm:$0xff] %v7609_v63  ;;  %3312 = vst [vmem:[%s7077_s4 + $0x168] sm:$0xff] %v7610_v7  ;;  %v7612_v23 = vld [vmem:[#allocation49_spill] sm:$0xff] }
 0x55d   : > { %3313 = vst [vmem:[%s7077_s4 + $0x170] sm:$0xff] %v7611_v11  ;;  %3314 = vst [vmem:[%s7077_s4 + $0x178] sm:$0xff] %v7612_v23 }
 0x55e PF: > { %s16_s18 = sadd.s32 1, %s4200_s18  }
 0x55f   : > { %p13_p8 = scmp.ge.s32.totalorder %s16_s18, 5  }
 0x561   :  { %15 = sbr.rel (!%p13_p8) target bundleno = 1 (0x1), region = 89 }

</bundles_post_ra>
